<compile_context>
chip_gen: v7x
topology: tpu7x:2x2x1
jax: 0.10.0
libtpu: 0.0.40
codegen_flags: <defaults>
</compile_context>

<pallas_src>
import functools

import numpy as np
import jax
import jax.numpy as jnp
from jax import lax
from jax.experimental import pallas as pl
from jax.experimental.pallas import tpu as pltpu


# ----------------------------------------------------------------------------
# Pallas kernel: all 4 LSTM directions fused into one block-diagonal recurrence.
# ----------------------------------------------------------------------------
def _four_dir_lstm_kernel(x_ref, wih_ref, whh_ref, b_ref, h0_ref, c0_ref, out_ref,
                          *, t_max, batch, hidden, dir_lengths):
    """x_ref: (T_max*B, Dsum); wih_ref: (Dsum, 16H); whh_ref: (4H, 16H);
    b_ref: (1, 16H); h0_ref/c0_ref/out_ref: (B, 4H).

    Lane layout of h/c/out: [rl_fw | rl_bw | du_fw | du_bw], H lanes each.
    Gate-column layout of wih/whh/b: gate-major [i | f | g | o], each gate
    block is 4H lanes ordered exactly like h/c."""
    n_dir = len(dir_lengths)
    G = n_dir * hidden                       # packed state width (4H = 128 lanes)

    # (1) Hoisted input projection: ONE matmul for all directions & timesteps.
    gx = jnp.dot(x_ref[...], wih_ref[...],
                 preferred_element_type=jnp.float32) + b_ref[...]   # (T_max*B, 4G)

    h = h0_ref[...]                          # (B, G)
    c = c0_ref[...]

    # Lane mask of directions that run for the full t_max steps; used to freeze
    # the shorter directions once their (real) sequence is exhausted.
    t_min = min(dir_lengths)
    long_mask = None
    if t_min < t_max:
        lane = lax.broadcasted_iota(jnp.int32, (1, G), 1)
        long_mask = jnp.zeros((1, G), jnp.bool_)
        for k, length in enumerate(dir_lengths):
            if length == t_max:
                long_mask = jnp.logical_or(
                    long_mask, (lane >= k * hidden) & (lane < (k + 1) * hidden))

    # (2) Fully unrolled serial recurrence: one MXU matmul per step.
    for t in range(t_max):
        gates = gx[t * batch:(t + 1) * batch, :] + jnp.dot(
            h, whh_ref[...], preferred_element_type=jnp.float32)    # (B, 4G)
        # vreg-aligned 128-lane gate slices (PyTorch gate order i, f, g, o)
        i = jax.nn.sigmoid(gates[:, 0 * G:1 * G])
        f = jax.nn.sigmoid(gates[:, 1 * G:2 * G])
        g = jnp.tanh(gates[:, 2 * G:3 * G])
        o = jax.nn.sigmoid(gates[:, 3 * G:4 * G])
        c_new = f * c + i * g
        h_new = o * jnp.tanh(c_new)
        if t < t_min:                         # static per unrolled step
            h, c = h_new, c_new
        else:                                 # freeze finished (shorter) directions
            h = jnp.where(long_mask, h_new, h)
            c = jnp.where(long_mask, c_new, c)

    out_ref[...] = h                          # lane-dense (B, 4H) final hidden states


# ----------------------------------------------------------------------------
# Weight packing: 4 directions -> block-diagonal, gate-major layout.
# ----------------------------------------------------------------------------
def pack_four_dir_params(params_rl, params_du, hidden_size):
    """Directions k = 0..3 are (rl_fw, rl_bw, du_fw, du_bw).
    Gate columns: for gate gi in [i,f,g,o] and direction k, the block lives at
    columns gi*4H + k*H : gi*4H + (k+1)*H."""
    H = hidden_size
    dirs = [(params_rl["w_ih"][0], params_rl["w_hh"][0], params_rl["b"][0]),
            (params_rl["w_ih"][1], params_rl["w_hh"][1], params_rl["b"][1]),
            (params_du["w_ih"][0], params_du["w_hh"][0], params_du["b"][0]),
            (params_du["w_ih"][1], params_du["w_hh"][1], params_du["b"][1])]
    n_dir = len(dirs)
    G = n_dir * H                 # packed state width
    GC = 4 * G                    # packed gate width
    d_sizes = [int(w.shape[0]) for (w, _, _) in dirs]
    d_offs = [0]
    for d in d_sizes:
        d_offs.append(d_offs[-1] + d)

    wih_big = jnp.zeros((d_offs[-1], GC), jnp.float32)
    whh_big = jnp.zeros((G, GC), jnp.float32)
    b_big = jnp.zeros((1, GC), jnp.float32)
    for k, (wih, whh, b) in enumerate(dirs):
        for gi in range(4):                               # PyTorch order i, f, g, o
            col = gi * G + k * H
            wih_big = wih_big.at[d_offs[k]:d_offs[k + 1], col:col + H].set(
                wih[:, gi * H:(gi + 1) * H])
            whh_big = whh_big.at[k * H:(k + 1) * H, col:col + H].set(
                whh[:, gi * H:(gi + 1) * H])
            b_big = b_big.at[0, col:col + H].set(b[gi * H:(gi + 1) * H])
    return {"wih": wih_big, "whh": whh_big, "b": b_big}


# ----------------------------------------------------------------------------
# Parameter init (deterministic, PyTorch-style uniform(-1/sqrt(H), 1/sqrt(H))).
# ----------------------------------------------------------------------------
def init_lstm_params(key, input_size, hidden_size):
    k = 1.0 / float(np.sqrt(hidden_size))
    keys = jax.random.split(key, 8)

    def u(kk, shape):
        return jax.random.uniform(kk, shape, jnp.float32, minval=-k, maxval=k)

    # stored pre-transposed: (dir, in, 4H), (dir, H, 4H), gate order [i, f, g, o]
    w_ih = jnp.stack([u(keys[0], (input_size, 4 * hidden_size)),
                      u(keys[1], (input_size, 4 * hidden_size))])
    w_hh = jnp.stack([u(keys[2], (hidden_size, 4 * hidden_size)),
                      u(keys[3], (hidden_size, 4 * hidden_size))])
    b_ih = jnp.stack([u(keys[4], (4 * hidden_size,)), u(keys[5], (4 * hidden_size,))])
    b_hh = jnp.stack([u(keys[6], (4 * hidden_size,)), u(keys[7], (4 * hidden_size,))])
    return {"w_ih": w_ih, "w_hh": w_hh, "b": b_ih + b_hh}


# ----------------------------------------------------------------------------
# FourDirectionalLSTM forward: glue + ONE pallas_call.
# ----------------------------------------------------------------------------
def four_directional_lstm(x, packed, hidden_rl, hidden_du, seq_size, hidden_size):
    B, F = x.shape
    feat_size = F // seq_size
    H = hidden_size
    T_rl, T_du = seq_size, feat_size          # rl runs over seq, du over feat
    T_max = max(T_rl, T_du)

    x_rl = x.reshape(B, seq_size, feat_size)
    x_rl_tm = jnp.transpose(x_rl, (1, 0, 2))  # (T_rl, B, feat)
    x_du_tm = jnp.transpose(x_rl, (2, 0, 1))  # (T_du, B, seq)

    def pad_t(a):                             # zero-pad time up to T_max (masked in-kernel)
        return jnp.pad(a, ((0, T_max - a.shape[0]), (0, 0), (0, 0)))

    # Per-direction time-major inputs, backward directions pre-reversed so the
    # kernel needs no flips / dynamic time indices; concatenated on features so
    # the hoisted projection is a single matmul against block-diagonal W_ih.
    x_big = jnp.concatenate([pad_t(x_rl_tm),
                             pad_t(jnp.flip(x_rl_tm, axis=0)),
                             pad_t(x_du_tm),
                             pad_t(jnp.flip(x_du_tm, axis=0))], axis=-1)  # (T_max, B, Dsum)
    x_big2d = x_big.reshape(T_max * B, x_big.shape[-1])

    # Packed initial states: lanes [rl_fw | rl_bw | du_fw | du_bw]
    h0 = jnp.concatenate([hidden_rl[0][0], hidden_rl[0][1],
                          hidden_du[0][0], hidden_du[0][1]], axis=-1)     # (B, 4H)
    c0 = jnp.concatenate([hidden_rl[1][0], hidden_rl[1][1],
                          hidden_du[1][0], hidden_du[1][1]], axis=-1)

    kernel = functools.partial(_four_dir_lstm_kernel,
                               t_max=T_max, batch=B, hidden=H,
                               dir_lengths=(T_rl, T_rl, T_du, T_du))
    vmem = pl.BlockSpec(memory_space=pltpu.MemorySpace.VMEM)
    # output lane order == torch.cat([hlr_fw, hlr_bw, hud_fw, hud_bw], dim=1)
    return pl.pallas_call(
        kernel,
        out_shape=jax.ShapeDtypeStruct((B, 4 * H), jnp.float32),
        in_specs=[vmem] * 6,
        out_specs=vmem,
    )(x_big2d, packed["wih"], packed["whh"], packed["b"], h0, c0)


# ----------------------------------------------------------------------------
# Pure-JAX reference (unpacked, per-direction scan) for correctness check.
# ----------------------------------------------------------------------------
def _lstm_dir_ref(x_tm, w_ih, w_hh, b, h0, c0):
    H = h0.shape[-1]

    def step(carry, x_t):
        h, c = carry
        gates = (jnp.dot(x_t, w_ih, precision="highest")
                 + jnp.dot(h, w_hh, precision="highest") + b)
        i = jax.nn.sigmoid(gates[:, 0 * H:1 * H])
        f = jax.nn.sigmoid(gates[:, 1 * H:2 * H])
        g = jnp.tanh(gates[:, 2 * H:3 * H])
        o = jax.nn.sigmoid(gates[:, 3 * H:4 * H])
        c_new = f * c + i * g
        h_new = o * jnp.tanh(c_new)
        return (h_new, c_new), None

    (h, _), _ = lax.scan(step, (h0, c0), x_tm)
    return h


def four_directional_lstm_ref(x, params_rl, params_du, hidden_rl, hidden_du, seq_size):
    B, F = x.shape
    feat_size = F // seq_size
    x_rl = x.reshape(B, seq_size, feat_size)
    x_rl_tm = jnp.transpose(x_rl, (1, 0, 2))
    x_du_tm = jnp.transpose(x_rl, (2, 0, 1))

    def both(x_tm, p, hid):
        hf = _lstm_dir_ref(x_tm, p["w_ih"][0], p["w_hh"][0], p["b"][0],
                           hid[0][0], hid[1][0])
        hb = _lstm_dir_ref(jnp.flip(x_tm, 0), p["w_ih"][1], p["w_hh"][1], p["b"][1],
                           hid[0][1], hid[1][1])
        return hf, hb

    hlr_fw, hlr_bw = both(x_rl_tm, params_rl, hidden_rl)
    hud_fw, hud_bw = both(x_du_tm, params_du, hidden_du)
    return jnp.concatenate([hlr_fw, hlr_bw, hud_fw, hud_bw], axis=1)


if __name__ == "__main__":
    # Module config: seq_size=8, origin_feat_size=128 -> feat_size=16, hidden=32
    seq_size, origin_feat_size, hidden_size = 8, 128, 32
    batch = 2
    feat_size = origin_feat_size // seq_size

    key = jax.random.PRNGKey(0)
    kx, kp1, kp2, kh1, kh2 = jax.random.split(key, 5)
    x = jax.random.normal(kx, (batch, origin_feat_size), jnp.float32)

    params_rl = init_lstm_params(kp1, feat_size, hidden_size)   # lstm_rightleft
    params_du = init_lstm_params(kp2, seq_size, hidden_size)    # lstm_downup
    packed = pack_four_dir_params(params_rl, params_du, hidden_size)

    # init_hidden_: (h0, c0) each (2 directions, B, H).  The PyTorch module uses
    # torch.randn every forward; here deterministic from PRNGKey(0).
    kh1a, kh1b = jax.random.split(kh1)
    kh2a, kh2b = jax.random.split(kh2)
    hidden_rl = (jax.random.normal(kh1a, (2, batch, hidden_size), jnp.float32),
                 jax.random.normal(kh1b, (2, batch, hidden_size), jnp.float32))
    hidden_du = (jax.random.normal(kh2a, (2, batch, hidden_size), jnp.float32),
                 jax.random.normal(kh2b, (2, batch, hidden_size), jnp.float32))

    out = four_directional_lstm(x, packed, hidden_rl, hidden_du, seq_size, hidden_size)
    out = jax.block_until_ready(out)
    assert out.shape == (batch, 4 * hidden_size), out.shape

    ref = four_directional_lstm_ref(x, params_rl, params_du, hidden_rl, hidden_du, seq_size)
    np.testing.assert_allclose(np.asarray(out), np.asarray(ref), rtol=2e-3, atol=2e-3)

    print("KERNEL_OK")
</pallas_src>

<mosaic_0001>
module attributes {stable_mosaic.version = 11 : i64} {
  func.func @_four_dir_lstm_kernel(%arg0: memref<32x48xf32, #tpu.memory_space<vmem>>, %arg1: memref<48x512xf32, #tpu.memory_space<vmem>>, %arg2: memref<128x512xf32, #tpu.memory_space<vmem>>, %arg3: memref<1x512xf32, #tpu.memory_space<vmem>>, %arg4: memref<2x128xf32, #tpu.memory_space<vmem>>, %arg5: memref<2x128xf32, #tpu.memory_space<vmem>>, %arg6: memref<2x128xf32, #tpu.memory_space<vmem>>) attributes {dimension_semantics = [], scalar_prefetch = 0 : i64, scratch_operands = 0 : i64, tpu.core_type = #tpu.core_type<tc>} {
    %c0 = arith.constant 0 : index
    %c0_0 = arith.constant 0 : index
    %0 = vector.load %arg0[%c0, %c0_0] : memref<32x48xf32, #tpu.memory_space<vmem>>, vector<32x48xf32>
    %c0_1 = arith.constant 0 : index
    %c0_2 = arith.constant 0 : index
    %1 = vector.load %arg1[%c0_1, %c0_2] : memref<48x512xf32, #tpu.memory_space<vmem>>, vector<48x512xf32>
    %cst = arith.constant dense<0.000000e+00> : vector<32x512xf32>
    %2 = tpu.matmul %0, %1, %cst {dimension_numbers = #tpu.dot_dimension_numbers<[1], [0], [0], [1], [0, 0, 1, 1], [], []>} : vector<32x48xf32>, vector<48x512xf32>, vector<32x512xf32> -> vector<32x512xf32>
    %c0_3 = arith.constant 0 : index
    %c0_4 = arith.constant 0 : index
    %3 = vector.load %arg3[%c0_3, %c0_4] : memref<1x512xf32, #tpu.memory_space<vmem>>, vector<1x512xf32>
    %4 = vector.broadcast %3 : vector<1x512xf32> to vector<32x512xf32>
    %5 = arith.addf %2, %4 : vector<32x512xf32>
    %c0_5 = arith.constant 0 : index
    %c0_6 = arith.constant 0 : index
    %6 = vector.load %arg4[%c0_5, %c0_6] : memref<2x128xf32, #tpu.memory_space<vmem>>, vector<2x128xf32>
    %c0_7 = arith.constant 0 : index
    %c0_8 = arith.constant 0 : index
    %7 = vector.load %arg5[%c0_7, %c0_8] : memref<2x128xf32, #tpu.memory_space<vmem>>, vector<2x128xf32>
    %8 = tpu.iota {dimensions = array<i32: 1>} : vector<1x128xi32>
    %false = arith.constant false
    %9 = vector.broadcast %false : i1 to vector<1x128xi1>
    %c64_i32 = arith.constant 64 : i32
    %10 = vector.broadcast %c64_i32 : i32 to vector<1x128xi32>
    %11 = arith.cmpi sge, %8, %10 : vector<1x128xi32>
    %c96_i32 = arith.constant 96 : i32
    %12 = vector.broadcast %c96_i32 : i32 to vector<1x128xi32>
    %13 = arith.cmpi slt, %8, %12 : vector<1x128xi32>
    %14 = arith.andi %11, %13 : vector<1x128xi1>
    %15 = arith.ori %9, %14 : vector<1x128xi1>
    %c96_i32_9 = arith.constant 96 : i32
    %16 = vector.broadcast %c96_i32_9 : i32 to vector<1x128xi32>
    %17 = arith.cmpi sge, %8, %16 : vector<1x128xi32>
    %c128_i32 = arith.constant 128 : i32
    %18 = vector.broadcast %c128_i32 : i32 to vector<1x128xi32>
    %19 = arith.cmpi slt, %8, %18 : vector<1x128xi32>
    %20 = arith.andi %17, %19 : vector<1x128xi1>
    %21 = arith.ori %15, %20 : vector<1x128xi1>
    %22 = vector.extract_strided_slice %5 {offsets = [0, 0], sizes = [2, 512], strides = [1, 1]} : vector<32x512xf32> to vector<2x512xf32>
    %c0_10 = arith.constant 0 : index
    %c0_11 = arith.constant 0 : index
    %23 = vector.load %arg2[%c0_10, %c0_11] : memref<128x512xf32, #tpu.memory_space<vmem>>, vector<128x512xf32>
    %cst_12 = arith.constant dense<0.000000e+00> : vector<2x512xf32>
    %24 = tpu.matmul %6, %23, %cst_12 {dimension_numbers = #tpu.dot_dimension_numbers<[1], [0], [0], [1], [0, 0, 1, 1], [], []>} : vector<2x128xf32>, vector<128x512xf32>, vector<2x512xf32> -> vector<2x512xf32>
    %25 = arith.addf %22, %24 : vector<2x512xf32>
    %26 = vector.extract_strided_slice %25 {offsets = [0, 0], sizes = [2, 128], strides = [1, 1]} : vector<2x512xf32> to vector<2x128xf32>
    %27 = arith.negf %26 : vector<2x128xf32>
    %28 = math.exp %27 : vector<2x128xf32>
    %cst_13 = arith.constant 1.000000e+00 : f32
    %29 = vector.broadcast %cst_13 : f32 to vector<2x128xf32>
    %30 = arith.addf %29, %28 : vector<2x128xf32>
    %31 = arith.divf %29, %30 : vector<2x128xf32>
    %32 = vector.extract_strided_slice %25 {offsets = [0, 128], sizes = [2, 128], strides = [1, 1]} : vector<2x512xf32> to vector<2x128xf32>
    %33 = arith.negf %32 : vector<2x128xf32>
    %34 = math.exp %33 : vector<2x128xf32>
    %cst_14 = arith.constant 1.000000e+00 : f32
    %35 = vector.broadcast %cst_14 : f32 to vector<2x128xf32>
    %36 = arith.addf %35, %34 : vector<2x128xf32>
    %37 = arith.divf %35, %36 : vector<2x128xf32>
    %38 = vector.extract_strided_slice %25 {offsets = [0, 256], sizes = [2, 128], strides = [1, 1]} : vector<2x512xf32> to vector<2x128xf32>
    %39 = math.tanh %38 : vector<2x128xf32>
    %40 = vector.extract_strided_slice %25 {offsets = [0, 384], sizes = [2, 128], strides = [1, 1]} : vector<2x512xf32> to vector<2x128xf32>
    %41 = arith.negf %40 : vector<2x128xf32>
    %42 = math.exp %41 : vector<2x128xf32>
    %cst_15 = arith.constant 1.000000e+00 : f32
    %43 = vector.broadcast %cst_15 : f32 to vector<2x128xf32>
    %44 = arith.addf %43, %42 : vector<2x128xf32>
    %45 = arith.divf %43, %44 : vector<2x128xf32>
    %46 = arith.mulf %37, %7 : vector<2x128xf32>
    %47 = arith.mulf %31, %39 : vector<2x128xf32>
    %48 = arith.addf %46, %47 : vector<2x128xf32>
    %49 = math.tanh %48 : vector<2x128xf32>
    %50 = arith.mulf %45, %49 : vector<2x128xf32>
    %51 = vector.extract_strided_slice %5 {offsets = [2, 0], sizes = [2, 512], strides = [1, 1]} : vector<32x512xf32> to vector<2x512xf32>
    %c0_16 = arith.constant 0 : index
    %c0_17 = arith.constant 0 : index
    %52 = vector.load %arg2[%c0_16, %c0_17] : memref<128x512xf32, #tpu.memory_space<vmem>>, vector<128x512xf32>
    %cst_18 = arith.constant dense<0.000000e+00> : vector<2x512xf32>
    %53 = tpu.matmul %50, %52, %cst_18 {dimension_numbers = #tpu.dot_dimension_numbers<[1], [0], [0], [1], [0, 0, 1, 1], [], []>} : vector<2x128xf32>, vector<128x512xf32>, vector<2x512xf32> -> vector<2x512xf32>
    %54 = arith.addf %51, %53 : vector<2x512xf32>
    %55 = vector.extract_strided_slice %54 {offsets = [0, 0], sizes = [2, 128], strides = [1, 1]} : vector<2x512xf32> to vector<2x128xf32>
    %56 = arith.negf %55 : vector<2x128xf32>
    %57 = math.exp %56 : vector<2x128xf32>
    %cst_19 = arith.constant 1.000000e+00 : f32
    %58 = vector.broadcast %cst_19 : f32 to vector<2x128xf32>
    %59 = arith.addf %58, %57 : vector<2x128xf32>
    %60 = arith.divf %58, %59 : vector<2x128xf32>
    %61 = vector.extract_strided_slice %54 {offsets = [0, 128], sizes = [2, 128], strides = [1, 1]} : vector<2x512xf32> to vector<2x128xf32>
    %62 = arith.negf %61 : vector<2x128xf32>
    %63 = math.exp %62 : vector<2x128xf32>
    %cst_20 = arith.constant 1.000000e+00 : f32
    %64 = vector.broadcast %cst_20 : f32 to vector<2x128xf32>
    %65 = arith.addf %64, %63 : vector<2x128xf32>
    %66 = arith.divf %64, %65 : vector<2x128xf32>
    %67 = vector.extract_strided_slice %54 {offsets = [0, 256], sizes = [2, 128], strides = [1, 1]} : vector<2x512xf32> to vector<2x128xf32>
    %68 = math.tanh %67 : vector<2x128xf32>
    %69 = vector.extract_strided_slice %54 {offsets = [0, 384], sizes = [2, 128], strides = [1, 1]} : vector<2x512xf32> to vector<2x128xf32>
    %70 = arith.negf %69 : vector<2x128xf32>
    %71 = math.exp %70 : vector<2x128xf32>
    %cst_21 = arith.constant 1.000000e+00 : f32
    %72 = vector.broadcast %cst_21 : f32 to vector<2x128xf32>
    %73 = arith.addf %72, %71 : vector<2x128xf32>
    %74 = arith.divf %72, %73 : vector<2x128xf32>
    %75 = arith.mulf %66, %48 : vector<2x128xf32>
    %76 = arith.mulf %60, %68 : vector<2x128xf32>
    %77 = arith.addf %75, %76 : vector<2x128xf32>
    %78 = math.tanh %77 : vector<2x128xf32>
    %79 = arith.mulf %74, %78 : vector<2x128xf32>
    %80 = vector.extract_strided_slice %5 {offsets = [4, 0], sizes = [2, 512], strides = [1, 1]} : vector<32x512xf32> to vector<2x512xf32>
    %c0_22 = arith.constant 0 : index
    %c0_23 = arith.constant 0 : index
    %81 = vector.load %arg2[%c0_22, %c0_23] : memref<128x512xf32, #tpu.memory_space<vmem>>, vector<128x512xf32>
    %cst_24 = arith.constant dense<0.000000e+00> : vector<2x512xf32>
    %82 = tpu.matmul %79, %81, %cst_24 {dimension_numbers = #tpu.dot_dimension_numbers<[1], [0], [0], [1], [0, 0, 1, 1], [], []>} : vector<2x128xf32>, vector<128x512xf32>, vector<2x512xf32> -> vector<2x512xf32>
    %83 = arith.addf %80, %82 : vector<2x512xf32>
    %84 = vector.extract_strided_slice %83 {offsets = [0, 0], sizes = [2, 128], strides = [1, 1]} : vector<2x512xf32> to vector<2x128xf32>
    %85 = arith.negf %84 : vector<2x128xf32>
    %86 = math.exp %85 : vector<2x128xf32>
    %cst_25 = arith.constant 1.000000e+00 : f32
    %87 = vector.broadcast %cst_25 : f32 to vector<2x128xf32>
    %88 = arith.addf %87, %86 : vector<2x128xf32>
    %89 = arith.divf %87, %88 : vector<2x128xf32>
    %90 = vector.extract_strided_slice %83 {offsets = [0, 128], sizes = [2, 128], strides = [1, 1]} : vector<2x512xf32> to vector<2x128xf32>
    %91 = arith.negf %90 : vector<2x128xf32>
    %92 = math.exp %91 : vector<2x128xf32>
    %cst_26 = arith.constant 1.000000e+00 : f32
    %93 = vector.broadcast %cst_26 : f32 to vector<2x128xf32>
    %94 = arith.addf %93, %92 : vector<2x128xf32>
    %95 = arith.divf %93, %94 : vector<2x128xf32>
    %96 = vector.extract_strided_slice %83 {offsets = [0, 256], sizes = [2, 128], strides = [1, 1]} : vector<2x512xf32> to vector<2x128xf32>
    %97 = math.tanh %96 : vector<2x128xf32>
    %98 = vector.extract_strided_slice %83 {offsets = [0, 384], sizes = [2, 128], strides = [1, 1]} : vector<2x512xf32> to vector<2x128xf32>
    %99 = arith.negf %98 : vector<2x128xf32>
    %100 = math.exp %99 : vector<2x128xf32>
    %cst_27 = arith.constant 1.000000e+00 : f32
    %101 = vector.broadcast %cst_27 : f32 to vector<2x128xf32>
    %102 = arith.addf %101, %100 : vector<2x128xf32>
    %103 = arith.divf %101, %102 : vector<2x128xf32>
    %104 = arith.mulf %95, %77 : vector<2x128xf32>
    %105 = arith.mulf %89, %97 : vector<2x128xf32>
    %106 = arith.addf %104, %105 : vector<2x128xf32>
    %107 = math.tanh %106 : vector<2x128xf32>
    %108 = arith.mulf %103, %107 : vector<2x128xf32>
    %109 = vector.extract_strided_slice %5 {offsets = [6, 0], sizes = [2, 512], strides = [1, 1]} : vector<32x512xf32> to vector<2x512xf32>
    %c0_28 = arith.constant 0 : index
    %c0_29 = arith.constant 0 : index
    %110 = vector.load %arg2[%c0_28, %c0_29] : memref<128x512xf32, #tpu.memory_space<vmem>>, vector<128x512xf32>
    %cst_30 = arith.constant dense<0.000000e+00> : vector<2x512xf32>
    %111 = tpu.matmul %108, %110, %cst_30 {dimension_numbers = #tpu.dot_dimension_numbers<[1], [0], [0], [1], [0, 0, 1, 1], [], []>} : vector<2x128xf32>, vector<128x512xf32>, vector<2x512xf32> -> vector<2x512xf32>
    %112 = arith.addf %109, %111 : vector<2x512xf32>
    %113 = vector.extract_strided_slice %112 {offsets = [0, 0], sizes = [2, 128], strides = [1, 1]} : vector<2x512xf32> to vector<2x128xf32>
    %114 = arith.negf %113 : vector<2x128xf32>
    %115 = math.exp %114 : vector<2x128xf32>
    %cst_31 = arith.constant 1.000000e+00 : f32
    %116 = vector.broadcast %cst_31 : f32 to vector<2x128xf32>
    %117 = arith.addf %116, %115 : vector<2x128xf32>
    %118 = arith.divf %116, %117 : vector<2x128xf32>
    %119 = vector.extract_strided_slice %112 {offsets = [0, 128], sizes = [2, 128], strides = [1, 1]} : vector<2x512xf32> to vector<2x128xf32>
    %120 = arith.negf %119 : vector<2x128xf32>
    %121 = math.exp %120 : vector<2x128xf32>
    %cst_32 = arith.constant 1.000000e+00 : f32
    %122 = vector.broadcast %cst_32 : f32 to vector<2x128xf32>
    %123 = arith.addf %122, %121 : vector<2x128xf32>
    %124 = arith.divf %122, %123 : vector<2x128xf32>
    %125 = vector.extract_strided_slice %112 {offsets = [0, 256], sizes = [2, 128], strides = [1, 1]} : vector<2x512xf32> to vector<2x128xf32>
    %126 = math.tanh %125 : vector<2x128xf32>
    %127 = vector.extract_strided_slice %112 {offsets = [0, 384], sizes = [2, 128], strides = [1, 1]} : vector<2x512xf32> to vector<2x128xf32>
    %128 = arith.negf %127 : vector<2x128xf32>
    %129 = math.exp %128 : vector<2x128xf32>
    %cst_33 = arith.constant 1.000000e+00 : f32
    %130 = vector.broadcast %cst_33 : f32 to vector<2x128xf32>
    %131 = arith.addf %130, %129 : vector<2x128xf32>
    %132 = arith.divf %130, %131 : vector<2x128xf32>
    %133 = arith.mulf %124, %106 : vector<2x128xf32>
    %134 = arith.mulf %118, %126 : vector<2x128xf32>
    %135 = arith.addf %133, %134 : vector<2x128xf32>
    %136 = math.tanh %135 : vector<2x128xf32>
    %137 = arith.mulf %132, %136 : vector<2x128xf32>
    %138 = vector.extract_strided_slice %5 {offsets = [8, 0], sizes = [2, 512], strides = [1, 1]} : vector<32x512xf32> to vector<2x512xf32>
    %c0_34 = arith.constant 0 : index
    %c0_35 = arith.constant 0 : index
    %139 = vector.load %arg2[%c0_34, %c0_35] : memref<128x512xf32, #tpu.memory_space<vmem>>, vector<128x512xf32>
    %cst_36 = arith.constant dense<0.000000e+00> : vector<2x512xf32>
    %140 = tpu.matmul %137, %139, %cst_36 {dimension_numbers = #tpu.dot_dimension_numbers<[1], [0], [0], [1], [0, 0, 1, 1], [], []>} : vector<2x128xf32>, vector<128x512xf32>, vector<2x512xf32> -> vector<2x512xf32>
    %141 = arith.addf %138, %140 : vector<2x512xf32>
    %142 = vector.extract_strided_slice %141 {offsets = [0, 0], sizes = [2, 128], strides = [1, 1]} : vector<2x512xf32> to vector<2x128xf32>
    %143 = arith.negf %142 : vector<2x128xf32>
    %144 = math.exp %143 : vector<2x128xf32>
    %cst_37 = arith.constant 1.000000e+00 : f32
    %145 = vector.broadcast %cst_37 : f32 to vector<2x128xf32>
    %146 = arith.addf %145, %144 : vector<2x128xf32>
    %147 = arith.divf %145, %146 : vector<2x128xf32>
    %148 = vector.extract_strided_slice %141 {offsets = [0, 128], sizes = [2, 128], strides = [1, 1]} : vector<2x512xf32> to vector<2x128xf32>
    %149 = arith.negf %148 : vector<2x128xf32>
    %150 = math.exp %149 : vector<2x128xf32>
    %cst_38 = arith.constant 1.000000e+00 : f32
    %151 = vector.broadcast %cst_38 : f32 to vector<2x128xf32>
    %152 = arith.addf %151, %150 : vector<2x128xf32>
    %153 = arith.divf %151, %152 : vector<2x128xf32>
    %154 = vector.extract_strided_slice %141 {offsets = [0, 256], sizes = [2, 128], strides = [1, 1]} : vector<2x512xf32> to vector<2x128xf32>
    %155 = math.tanh %154 : vector<2x128xf32>
    %156 = vector.extract_strided_slice %141 {offsets = [0, 384], sizes = [2, 128], strides = [1, 1]} : vector<2x512xf32> to vector<2x128xf32>
    %157 = arith.negf %156 : vector<2x128xf32>
    %158 = math.exp %157 : vector<2x128xf32>
    %cst_39 = arith.constant 1.000000e+00 : f32
    %159 = vector.broadcast %cst_39 : f32 to vector<2x128xf32>
    %160 = arith.addf %159, %158 : vector<2x128xf32>
    %161 = arith.divf %159, %160 : vector<2x128xf32>
    %162 = arith.mulf %153, %135 : vector<2x128xf32>
    %163 = arith.mulf %147, %155 : vector<2x128xf32>
    %164 = arith.addf %162, %163 : vector<2x128xf32>
    %165 = math.tanh %164 : vector<2x128xf32>
    %166 = arith.mulf %161, %165 : vector<2x128xf32>
    %167 = vector.extract_strided_slice %5 {offsets = [10, 0], sizes = [2, 512], strides = [1, 1]} : vector<32x512xf32> to vector<2x512xf32>
    %c0_40 = arith.constant 0 : index
    %c0_41 = arith.constant 0 : index
    %168 = vector.load %arg2[%c0_40, %c0_41] : memref<128x512xf32, #tpu.memory_space<vmem>>, vector<128x512xf32>
    %cst_42 = arith.constant dense<0.000000e+00> : vector<2x512xf32>
    %169 = tpu.matmul %166, %168, %cst_42 {dimension_numbers = #tpu.dot_dimension_numbers<[1], [0], [0], [1], [0, 0, 1, 1], [], []>} : vector<2x128xf32>, vector<128x512xf32>, vector<2x512xf32> -> vector<2x512xf32>
    %170 = arith.addf %167, %169 : vector<2x512xf32>
    %171 = vector.extract_strided_slice %170 {offsets = [0, 0], sizes = [2, 128], strides = [1, 1]} : vector<2x512xf32> to vector<2x128xf32>
    %172 = arith.negf %171 : vector<2x128xf32>
    %173 = math.exp %172 : vector<2x128xf32>
    %cst_43 = arith.constant 1.000000e+00 : f32
    %174 = vector.broadcast %cst_43 : f32 to vector<2x128xf32>
    %175 = arith.addf %174, %173 : vector<2x128xf32>
    %176 = arith.divf %174, %175 : vector<2x128xf32>
    %177 = vector.extract_strided_slice %170 {offsets = [0, 128], sizes = [2, 128], strides = [1, 1]} : vector<2x512xf32> to vector<2x128xf32>
    %178 = arith.negf %177 : vector<2x128xf32>
    %179 = math.exp %178 : vector<2x128xf32>
    %cst_44 = arith.constant 1.000000e+00 : f32
    %180 = vector.broadcast %cst_44 : f32 to vector<2x128xf32>
    %181 = arith.addf %180, %179 : vector<2x128xf32>
    %182 = arith.divf %180, %181 : vector<2x128xf32>
    %183 = vector.extract_strided_slice %170 {offsets = [0, 256], sizes = [2, 128], strides = [1, 1]} : vector<2x512xf32> to vector<2x128xf32>
    %184 = math.tanh %183 : vector<2x128xf32>
    %185 = vector.extract_strided_slice %170 {offsets = [0, 384], sizes = [2, 128], strides = [1, 1]} : vector<2x512xf32> to vector<2x128xf32>
    %186 = arith.negf %185 : vector<2x128xf32>
    %187 = math.exp %186 : vector<2x128xf32>
    %cst_45 = arith.constant 1.000000e+00 : f32
    %188 = vector.broadcast %cst_45 : f32 to vector<2x128xf32>
    %189 = arith.addf %188, %187 : vector<2x128xf32>
    %190 = arith.divf %188, %189 : vector<2x128xf32>
    %191 = arith.mulf %182, %164 : vector<2x128xf32>
    %192 = arith.mulf %176, %184 : vector<2x128xf32>
    %193 = arith.addf %191, %192 : vector<2x128xf32>
    %194 = math.tanh %193 : vector<2x128xf32>
    %195 = arith.mulf %190, %194 : vector<2x128xf32>
    %196 = vector.extract_strided_slice %5 {offsets = [12, 0], sizes = [2, 512], strides = [1, 1]} : vector<32x512xf32> to vector<2x512xf32>
    %c0_46 = arith.constant 0 : index
    %c0_47 = arith.constant 0 : index
    %197 = vector.load %arg2[%c0_46, %c0_47] : memref<128x512xf32, #tpu.memory_space<vmem>>, vector<128x512xf32>
    %cst_48 = arith.constant dense<0.000000e+00> : vector<2x512xf32>
    %198 = tpu.matmul %195, %197, %cst_48 {dimension_numbers = #tpu.dot_dimension_numbers<[1], [0], [0], [1], [0, 0, 1, 1], [], []>} : vector<2x128xf32>, vector<128x512xf32>, vector<2x512xf32> -> vector<2x512xf32>
    %199 = arith.addf %196, %198 : vector<2x512xf32>
    %200 = vector.extract_strided_slice %199 {offsets = [0, 0], sizes = [2, 128], strides = [1, 1]} : vector<2x512xf32> to vector<2x128xf32>
    %201 = arith.negf %200 : vector<2x128xf32>
    %202 = math.exp %201 : vector<2x128xf32>
    %cst_49 = arith.constant 1.000000e+00 : f32
    %203 = vector.broadcast %cst_49 : f32 to vector<2x128xf32>
    %204 = arith.addf %203, %202 : vector<2x128xf32>
    %205 = arith.divf %203, %204 : vector<2x128xf32>
    %206 = vector.extract_strided_slice %199 {offsets = [0, 128], sizes = [2, 128], strides = [1, 1]} : vector<2x512xf32> to vector<2x128xf32>
    %207 = arith.negf %206 : vector<2x128xf32>
    %208 = math.exp %207 : vector<2x128xf32>
    %cst_50 = arith.constant 1.000000e+00 : f32
    %209 = vector.broadcast %cst_50 : f32 to vector<2x128xf32>
    %210 = arith.addf %209, %208 : vector<2x128xf32>
    %211 = arith.divf %209, %210 : vector<2x128xf32>
    %212 = vector.extract_strided_slice %199 {offsets = [0, 256], sizes = [2, 128], strides = [1, 1]} : vector<2x512xf32> to vector<2x128xf32>
    %213 = math.tanh %212 : vector<2x128xf32>
    %214 = vector.extract_strided_slice %199 {offsets = [0, 384], sizes = [2, 128], strides = [1, 1]} : vector<2x512xf32> to vector<2x128xf32>
    %215 = arith.negf %214 : vector<2x128xf32>
    %216 = math.exp %215 : vector<2x128xf32>
    %cst_51 = arith.constant 1.000000e+00 : f32
    %217 = vector.broadcast %cst_51 : f32 to vector<2x128xf32>
    %218 = arith.addf %217, %216 : vector<2x128xf32>
    %219 = arith.divf %217, %218 : vector<2x128xf32>
    %220 = arith.mulf %211, %193 : vector<2x128xf32>
    %221 = arith.mulf %205, %213 : vector<2x128xf32>
    %222 = arith.addf %220, %221 : vector<2x128xf32>
    %223 = math.tanh %222 : vector<2x128xf32>
    %224 = arith.mulf %219, %223 : vector<2x128xf32>
    %225 = vector.extract_strided_slice %5 {offsets = [14, 0], sizes = [2, 512], strides = [1, 1]} : vector<32x512xf32> to vector<2x512xf32>
    %c0_52 = arith.constant 0 : index
    %c0_53 = arith.constant 0 : index
    %226 = vector.load %arg2[%c0_52, %c0_53] : memref<128x512xf32, #tpu.memory_space<vmem>>, vector<128x512xf32>
    %cst_54 = arith.constant dense<0.000000e+00> : vector<2x512xf32>
    %227 = tpu.matmul %224, %226, %cst_54 {dimension_numbers = #tpu.dot_dimension_numbers<[1], [0], [0], [1], [0, 0, 1, 1], [], []>} : vector<2x128xf32>, vector<128x512xf32>, vector<2x512xf32> -> vector<2x512xf32>
    %228 = arith.addf %225, %227 : vector<2x512xf32>
    %229 = vector.extract_strided_slice %228 {offsets = [0, 0], sizes = [2, 128], strides = [1, 1]} : vector<2x512xf32> to vector<2x128xf32>
    %230 = arith.negf %229 : vector<2x128xf32>
    %231 = math.exp %230 : vector<2x128xf32>
    %cst_55 = arith.constant 1.000000e+00 : f32
    %232 = vector.broadcast %cst_55 : f32 to vector<2x128xf32>
    %233 = arith.addf %232, %231 : vector<2x128xf32>
    %234 = arith.divf %232, %233 : vector<2x128xf32>
    %235 = vector.extract_strided_slice %228 {offsets = [0, 128], sizes = [2, 128], strides = [1, 1]} : vector<2x512xf32> to vector<2x128xf32>
    %236 = arith.negf %235 : vector<2x128xf32>
    %237 = math.exp %236 : vector<2x128xf32>
    %cst_56 = arith.constant 1.000000e+00 : f32
    %238 = vector.broadcast %cst_56 : f32 to vector<2x128xf32>
    %239 = arith.addf %238, %237 : vector<2x128xf32>
    %240 = arith.divf %238, %239 : vector<2x128xf32>
    %241 = vector.extract_strided_slice %228 {offsets = [0, 256], sizes = [2, 128], strides = [1, 1]} : vector<2x512xf32> to vector<2x128xf32>
    %242 = math.tanh %241 : vector<2x128xf32>
    %243 = vector.extract_strided_slice %228 {offsets = [0, 384], sizes = [2, 128], strides = [1, 1]} : vector<2x512xf32> to vector<2x128xf32>
    %244 = arith.negf %243 : vector<2x128xf32>
    %245 = math.exp %244 : vector<2x128xf32>
    %cst_57 = arith.constant 1.000000e+00 : f32
    %246 = vector.broadcast %cst_57 : f32 to vector<2x128xf32>
    %247 = arith.addf %246, %245 : vector<2x128xf32>
    %248 = arith.divf %246, %247 : vector<2x128xf32>
    %249 = arith.mulf %240, %222 : vector<2x128xf32>
    %250 = arith.mulf %234, %242 : vector<2x128xf32>
    %251 = arith.addf %249, %250 : vector<2x128xf32>
    %252 = math.tanh %251 : vector<2x128xf32>
    %253 = arith.mulf %248, %252 : vector<2x128xf32>
    %254 = vector.extract_strided_slice %5 {offsets = [16, 0], sizes = [2, 512], strides = [1, 1]} : vector<32x512xf32> to vector<2x512xf32>
    %c0_58 = arith.constant 0 : index
    %c0_59 = arith.constant 0 : index
    %255 = vector.load %arg2[%c0_58, %c0_59] : memref<128x512xf32, #tpu.memory_space<vmem>>, vector<128x512xf32>
    %cst_60 = arith.constant dense<0.000000e+00> : vector<2x512xf32>
    %256 = tpu.matmul %253, %255, %cst_60 {dimension_numbers = #tpu.dot_dimension_numbers<[1], [0], [0], [1], [0, 0, 1, 1], [], []>} : vector<2x128xf32>, vector<128x512xf32>, vector<2x512xf32> -> vector<2x512xf32>
    %257 = arith.addf %254, %256 : vector<2x512xf32>
    %258 = vector.extract_strided_slice %257 {offsets = [0, 0], sizes = [2, 128], strides = [1, 1]} : vector<2x512xf32> to vector<2x128xf32>
    %259 = arith.negf %258 : vector<2x128xf32>
    %260 = math.exp %259 : vector<2x128xf32>
    %cst_61 = arith.constant 1.000000e+00 : f32
    %261 = vector.broadcast %cst_61 : f32 to vector<2x128xf32>
    %262 = arith.addf %261, %260 : vector<2x128xf32>
    %263 = arith.divf %261, %262 : vector<2x128xf32>
    %264 = vector.extract_strided_slice %257 {offsets = [0, 128], sizes = [2, 128], strides = [1, 1]} : vector<2x512xf32> to vector<2x128xf32>
    %265 = arith.negf %264 : vector<2x128xf32>
    %266 = math.exp %265 : vector<2x128xf32>
    %cst_62 = arith.constant 1.000000e+00 : f32
    %267 = vector.broadcast %cst_62 : f32 to vector<2x128xf32>
    %268 = arith.addf %267, %266 : vector<2x128xf32>
    %269 = arith.divf %267, %268 : vector<2x128xf32>
    %270 = vector.extract_strided_slice %257 {offsets = [0, 256], sizes = [2, 128], strides = [1, 1]} : vector<2x512xf32> to vector<2x128xf32>
    %271 = math.tanh %270 : vector<2x128xf32>
    %272 = vector.extract_strided_slice %257 {offsets = [0, 384], sizes = [2, 128], strides = [1, 1]} : vector<2x512xf32> to vector<2x128xf32>
    %273 = arith.negf %272 : vector<2x128xf32>
    %274 = math.exp %273 : vector<2x128xf32>
    %cst_63 = arith.constant 1.000000e+00 : f32
    %275 = vector.broadcast %cst_63 : f32 to vector<2x128xf32>
    %276 = arith.addf %275, %274 : vector<2x128xf32>
    %277 = arith.divf %275, %276 : vector<2x128xf32>
    %278 = arith.mulf %269, %251 : vector<2x128xf32>
    %279 = arith.mulf %263, %271 : vector<2x128xf32>
    %280 = arith.addf %278, %279 : vector<2x128xf32>
    %281 = math.tanh %280 : vector<2x128xf32>
    %282 = arith.mulf %277, %281 : vector<2x128xf32>
    %283 = vector.shape_cast %21 : vector<1x128xi1> to vector<1x128xi1>
    %284 = vector.broadcast %283 : vector<1x128xi1> to vector<2x128xi1>
    %285 = arith.select %284, %282, %253 : vector<2x128xi1>, vector<2x128xf32>
    %286 = vector.shape_cast %21 : vector<1x128xi1> to vector<1x128xi1>
    %287 = vector.broadcast %286 : vector<1x128xi1> to vector<2x128xi1>
    %288 = arith.select %287, %280, %251 : vector<2x128xi1>, vector<2x128xf32>
    %289 = vector.extract_strided_slice %5 {offsets = [18, 0], sizes = [2, 512], strides = [1, 1]} : vector<32x512xf32> to vector<2x512xf32>
    %c0_64 = arith.constant 0 : index
    %c0_65 = arith.constant 0 : index
    %290 = vector.load %arg2[%c0_64, %c0_65] : memref<128x512xf32, #tpu.memory_space<vmem>>, vector<128x512xf32>
    %cst_66 = arith.constant dense<0.000000e+00> : vector<2x512xf32>
    %291 = tpu.matmul %285, %290, %cst_66 {dimension_numbers = #tpu.dot_dimension_numbers<[1], [0], [0], [1], [0, 0, 1, 1], [], []>} : vector<2x128xf32>, vector<128x512xf32>, vector<2x512xf32> -> vector<2x512xf32>
    %292 = arith.addf %289, %291 : vector<2x512xf32>
    %293 = vector.extract_strided_slice %292 {offsets = [0, 0], sizes = [2, 128], strides = [1, 1]} : vector<2x512xf32> to vector<2x128xf32>
    %294 = arith.negf %293 : vector<2x128xf32>
    %295 = math.exp %294 : vector<2x128xf32>
    %cst_67 = arith.constant 1.000000e+00 : f32
    %296 = vector.broadcast %cst_67 : f32 to vector<2x128xf32>
    %297 = arith.addf %296, %295 : vector<2x128xf32>
    %298 = arith.divf %296, %297 : vector<2x128xf32>
    %299 = vector.extract_strided_slice %292 {offsets = [0, 128], sizes = [2, 128], strides = [1, 1]} : vector<2x512xf32> to vector<2x128xf32>
    %300 = arith.negf %299 : vector<2x128xf32>
    %301 = math.exp %300 : vector<2x128xf32>
    %cst_68 = arith.constant 1.000000e+00 : f32
    %302 = vector.broadcast %cst_68 : f32 to vector<2x128xf32>
    %303 = arith.addf %302, %301 : vector<2x128xf32>
    %304 = arith.divf %302, %303 : vector<2x128xf32>
    %305 = vector.extract_strided_slice %292 {offsets = [0, 256], sizes = [2, 128], strides = [1, 1]} : vector<2x512xf32> to vector<2x128xf32>
    %306 = math.tanh %305 : vector<2x128xf32>
    %307 = vector.extract_strided_slice %292 {offsets = [0, 384], sizes = [2, 128], strides = [1, 1]} : vector<2x512xf32> to vector<2x128xf32>
    %308 = arith.negf %307 : vector<2x128xf32>
    %309 = math.exp %308 : vector<2x128xf32>
    %cst_69 = arith.constant 1.000000e+00 : f32
    %310 = vector.broadcast %cst_69 : f32 to vector<2x128xf32>
    %311 = arith.addf %310, %309 : vector<2x128xf32>
    %312 = arith.divf %310, %311 : vector<2x128xf32>
    %313 = arith.mulf %304, %288 : vector<2x128xf32>
    %314 = arith.mulf %298, %306 : vector<2x128xf32>
    %315 = arith.addf %313, %314 : vector<2x128xf32>
    %316 = math.tanh %315 : vector<2x128xf32>
    %317 = arith.mulf %312, %316 : vector<2x128xf32>
    %318 = vector.shape_cast %21 : vector<1x128xi1> to vector<1x128xi1>
    %319 = vector.broadcast %318 : vector<1x128xi1> to vector<2x128xi1>
    %320 = arith.select %319, %317, %285 : vector<2x128xi1>, vector<2x128xf32>
    %321 = vector.shape_cast %21 : vector<1x128xi1> to vector<1x128xi1>
    %322 = vector.broadcast %321 : vector<1x128xi1> to vector<2x128xi1>
    %323 = arith.select %322, %315, %288 : vector<2x128xi1>, vector<2x128xf32>
    %324 = vector.extract_strided_slice %5 {offsets = [20, 0], sizes = [2, 512], strides = [1, 1]} : vector<32x512xf32> to vector<2x512xf32>
    %c0_70 = arith.constant 0 : index
    %c0_71 = arith.constant 0 : index
    %325 = vector.load %arg2[%c0_70, %c0_71] : memref<128x512xf32, #tpu.memory_space<vmem>>, vector<128x512xf32>
    %cst_72 = arith.constant dense<0.000000e+00> : vector<2x512xf32>
    %326 = tpu.matmul %320, %325, %cst_72 {dimension_numbers = #tpu.dot_dimension_numbers<[1], [0], [0], [1], [0, 0, 1, 1], [], []>} : vector<2x128xf32>, vector<128x512xf32>, vector<2x512xf32> -> vector<2x512xf32>
    %327 = arith.addf %324, %326 : vector<2x512xf32>
    %328 = vector.extract_strided_slice %327 {offsets = [0, 0], sizes = [2, 128], strides = [1, 1]} : vector<2x512xf32> to vector<2x128xf32>
    %329 = arith.negf %328 : vector<2x128xf32>
    %330 = math.exp %329 : vector<2x128xf32>
    %cst_73 = arith.constant 1.000000e+00 : f32
    %331 = vector.broadcast %cst_73 : f32 to vector<2x128xf32>
    %332 = arith.addf %331, %330 : vector<2x128xf32>
    %333 = arith.divf %331, %332 : vector<2x128xf32>
    %334 = vector.extract_strided_slice %327 {offsets = [0, 128], sizes = [2, 128], strides = [1, 1]} : vector<2x512xf32> to vector<2x128xf32>
    %335 = arith.negf %334 : vector<2x128xf32>
    %336 = math.exp %335 : vector<2x128xf32>
    %cst_74 = arith.constant 1.000000e+00 : f32
    %337 = vector.broadcast %cst_74 : f32 to vector<2x128xf32>
    %338 = arith.addf %337, %336 : vector<2x128xf32>
    %339 = arith.divf %337, %338 : vector<2x128xf32>
    %340 = vector.extract_strided_slice %327 {offsets = [0, 256], sizes = [2, 128], strides = [1, 1]} : vector<2x512xf32> to vector<2x128xf32>
    %341 = math.tanh %340 : vector<2x128xf32>
    %342 = vector.extract_strided_slice %327 {offsets = [0, 384], sizes = [2, 128], strides = [1, 1]} : vector<2x512xf32> to vector<2x128xf32>
    %343 = arith.negf %342 : vector<2x128xf32>
    %344 = math.exp %343 : vector<2x128xf32>
    %cst_75 = arith.constant 1.000000e+00 : f32
    %345 = vector.broadcast %cst_75 : f32 to vector<2x128xf32>
    %346 = arith.addf %345, %344 : vector<2x128xf32>
    %347 = arith.divf %345, %346 : vector<2x128xf32>
    %348 = arith.mulf %339, %323 : vector<2x128xf32>
    %349 = arith.mulf %333, %341 : vector<2x128xf32>
    %350 = arith.addf %348, %349 : vector<2x128xf32>
    %351 = math.tanh %350 : vector<2x128xf32>
    %352 = arith.mulf %347, %351 : vector<2x128xf32>
    %353 = vector.shape_cast %21 : vector<1x128xi1> to vector<1x128xi1>
    %354 = vector.broadcast %353 : vector<1x128xi1> to vector<2x128xi1>
    %355 = arith.select %354, %352, %320 : vector<2x128xi1>, vector<2x128xf32>
    %356 = vector.shape_cast %21 : vector<1x128xi1> to vector<1x128xi1>
    %357 = vector.broadcast %356 : vector<1x128xi1> to vector<2x128xi1>
    %358 = arith.select %357, %350, %323 : vector<2x128xi1>, vector<2x128xf32>
    %359 = vector.extract_strided_slice %5 {offsets = [22, 0], sizes = [2, 512], strides = [1, 1]} : vector<32x512xf32> to vector<2x512xf32>
    %c0_76 = arith.constant 0 : index
    %c0_77 = arith.constant 0 : index
    %360 = vector.load %arg2[%c0_76, %c0_77] : memref<128x512xf32, #tpu.memory_space<vmem>>, vector<128x512xf32>
    %cst_78 = arith.constant dense<0.000000e+00> : vector<2x512xf32>
    %361 = tpu.matmul %355, %360, %cst_78 {dimension_numbers = #tpu.dot_dimension_numbers<[1], [0], [0], [1], [0, 0, 1, 1], [], []>} : vector<2x128xf32>, vector<128x512xf32>, vector<2x512xf32> -> vector<2x512xf32>
    %362 = arith.addf %359, %361 : vector<2x512xf32>
    %363 = vector.extract_strided_slice %362 {offsets = [0, 0], sizes = [2, 128], strides = [1, 1]} : vector<2x512xf32> to vector<2x128xf32>
    %364 = arith.negf %363 : vector<2x128xf32>
    %365 = math.exp %364 : vector<2x128xf32>
    %cst_79 = arith.constant 1.000000e+00 : f32
    %366 = vector.broadcast %cst_79 : f32 to vector<2x128xf32>
    %367 = arith.addf %366, %365 : vector<2x128xf32>
    %368 = arith.divf %366, %367 : vector<2x128xf32>
    %369 = vector.extract_strided_slice %362 {offsets = [0, 128], sizes = [2, 128], strides = [1, 1]} : vector<2x512xf32> to vector<2x128xf32>
    %370 = arith.negf %369 : vector<2x128xf32>
    %371 = math.exp %370 : vector<2x128xf32>
    %cst_80 = arith.constant 1.000000e+00 : f32
    %372 = vector.broadcast %cst_80 : f32 to vector<2x128xf32>
    %373 = arith.addf %372, %371 : vector<2x128xf32>
    %374 = arith.divf %372, %373 : vector<2x128xf32>
    %375 = vector.extract_strided_slice %362 {offsets = [0, 256], sizes = [2, 128], strides = [1, 1]} : vector<2x512xf32> to vector<2x128xf32>
    %376 = math.tanh %375 : vector<2x128xf32>
    %377 = vector.extract_strided_slice %362 {offsets = [0, 384], sizes = [2, 128], strides = [1, 1]} : vector<2x512xf32> to vector<2x128xf32>
    %378 = arith.negf %377 : vector<2x128xf32>
    %379 = math.exp %378 : vector<2x128xf32>
    %cst_81 = arith.constant 1.000000e+00 : f32
    %380 = vector.broadcast %cst_81 : f32 to vector<2x128xf32>
    %381 = arith.addf %380, %379 : vector<2x128xf32>
    %382 = arith.divf %380, %381 : vector<2x128xf32>
    %383 = arith.mulf %374, %358 : vector<2x128xf32>
    %384 = arith.mulf %368, %376 : vector<2x128xf32>
    %385 = arith.addf %383, %384 : vector<2x128xf32>
    %386 = math.tanh %385 : vector<2x128xf32>
    %387 = arith.mulf %382, %386 : vector<2x128xf32>
    %388 = vector.shape_cast %21 : vector<1x128xi1> to vector<1x128xi1>
    %389 = vector.broadcast %388 : vector<1x128xi1> to vector<2x128xi1>
    %390 = arith.select %389, %387, %355 : vector<2x128xi1>, vector<2x128xf32>
    %391 = vector.shape_cast %21 : vector<1x128xi1> to vector<1x128xi1>
    %392 = vector.broadcast %391 : vector<1x128xi1> to vector<2x128xi1>
    %393 = arith.select %392, %385, %358 : vector<2x128xi1>, vector<2x128xf32>
    %394 = vector.extract_strided_slice %5 {offsets = [24, 0], sizes = [2, 512], strides = [1, 1]} : vector<32x512xf32> to vector<2x512xf32>
    %c0_82 = arith.constant 0 : index
    %c0_83 = arith.constant 0 : index
    %395 = vector.load %arg2[%c0_82, %c0_83] : memref<128x512xf32, #tpu.memory_space<vmem>>, vector<128x512xf32>
    %cst_84 = arith.constant dense<0.000000e+00> : vector<2x512xf32>
    %396 = tpu.matmul %390, %395, %cst_84 {dimension_numbers = #tpu.dot_dimension_numbers<[1], [0], [0], [1], [0, 0, 1, 1], [], []>} : vector<2x128xf32>, vector<128x512xf32>, vector<2x512xf32> -> vector<2x512xf32>
    %397 = arith.addf %394, %396 : vector<2x512xf32>
    %398 = vector.extract_strided_slice %397 {offsets = [0, 0], sizes = [2, 128], strides = [1, 1]} : vector<2x512xf32> to vector<2x128xf32>
    %399 = arith.negf %398 : vector<2x128xf32>
    %400 = math.exp %399 : vector<2x128xf32>
    %cst_85 = arith.constant 1.000000e+00 : f32
    %401 = vector.broadcast %cst_85 : f32 to vector<2x128xf32>
    %402 = arith.addf %401, %400 : vector<2x128xf32>
    %403 = arith.divf %401, %402 : vector<2x128xf32>
    %404 = vector.extract_strided_slice %397 {offsets = [0, 128], sizes = [2, 128], strides = [1, 1]} : vector<2x512xf32> to vector<2x128xf32>
    %405 = arith.negf %404 : vector<2x128xf32>
    %406 = math.exp %405 : vector<2x128xf32>
    %cst_86 = arith.constant 1.000000e+00 : f32
    %407 = vector.broadcast %cst_86 : f32 to vector<2x128xf32>
    %408 = arith.addf %407, %406 : vector<2x128xf32>
    %409 = arith.divf %407, %408 : vector<2x128xf32>
    %410 = vector.extract_strided_slice %397 {offsets = [0, 256], sizes = [2, 128], strides = [1, 1]} : vector<2x512xf32> to vector<2x128xf32>
    %411 = math.tanh %410 : vector<2x128xf32>
    %412 = vector.extract_strided_slice %397 {offsets = [0, 384], sizes = [2, 128], strides = [1, 1]} : vector<2x512xf32> to vector<2x128xf32>
    %413 = arith.negf %412 : vector<2x128xf32>
    %414 = math.exp %413 : vector<2x128xf32>
    %cst_87 = arith.constant 1.000000e+00 : f32
    %415 = vector.broadcast %cst_87 : f32 to vector<2x128xf32>
    %416 = arith.addf %415, %414 : vector<2x128xf32>
    %417 = arith.divf %415, %416 : vector<2x128xf32>
    %418 = arith.mulf %409, %393 : vector<2x128xf32>
    %419 = arith.mulf %403, %411 : vector<2x128xf32>
    %420 = arith.addf %418, %419 : vector<2x128xf32>
    %421 = math.tanh %420 : vector<2x128xf32>
    %422 = arith.mulf %417, %421 : vector<2x128xf32>
    %423 = vector.shape_cast %21 : vector<1x128xi1> to vector<1x128xi1>
    %424 = vector.broadcast %423 : vector<1x128xi1> to vector<2x128xi1>
    %425 = arith.select %424, %422, %390 : vector<2x128xi1>, vector<2x128xf32>
    %426 = vector.shape_cast %21 : vector<1x128xi1> to vector<1x128xi1>
    %427 = vector.broadcast %426 : vector<1x128xi1> to vector<2x128xi1>
    %428 = arith.select %427, %420, %393 : vector<2x128xi1>, vector<2x128xf32>
    %429 = vector.extract_strided_slice %5 {offsets = [26, 0], sizes = [2, 512], strides = [1, 1]} : vector<32x512xf32> to vector<2x512xf32>
    %c0_88 = arith.constant 0 : index
    %c0_89 = arith.constant 0 : index
    %430 = vector.load %arg2[%c0_88, %c0_89] : memref<128x512xf32, #tpu.memory_space<vmem>>, vector<128x512xf32>
    %cst_90 = arith.constant dense<0.000000e+00> : vector<2x512xf32>
    %431 = tpu.matmul %425, %430, %cst_90 {dimension_numbers = #tpu.dot_dimension_numbers<[1], [0], [0], [1], [0, 0, 1, 1], [], []>} : vector<2x128xf32>, vector<128x512xf32>, vector<2x512xf32> -> vector<2x512xf32>
    %432 = arith.addf %429, %431 : vector<2x512xf32>
    %433 = vector.extract_strided_slice %432 {offsets = [0, 0], sizes = [2, 128], strides = [1, 1]} : vector<2x512xf32> to vector<2x128xf32>
    %434 = arith.negf %433 : vector<2x128xf32>
    %435 = math.exp %434 : vector<2x128xf32>
    %cst_91 = arith.constant 1.000000e+00 : f32
    %436 = vector.broadcast %cst_91 : f32 to vector<2x128xf32>
    %437 = arith.addf %436, %435 : vector<2x128xf32>
    %438 = arith.divf %436, %437 : vector<2x128xf32>
    %439 = vector.extract_strided_slice %432 {offsets = [0, 128], sizes = [2, 128], strides = [1, 1]} : vector<2x512xf32> to vector<2x128xf32>
    %440 = arith.negf %439 : vector<2x128xf32>
    %441 = math.exp %440 : vector<2x128xf32>
    %cst_92 = arith.constant 1.000000e+00 : f32
    %442 = vector.broadcast %cst_92 : f32 to vector<2x128xf32>
    %443 = arith.addf %442, %441 : vector<2x128xf32>
    %444 = arith.divf %442, %443 : vector<2x128xf32>
    %445 = vector.extract_strided_slice %432 {offsets = [0, 256], sizes = [2, 128], strides = [1, 1]} : vector<2x512xf32> to vector<2x128xf32>
    %446 = math.tanh %445 : vector<2x128xf32>
    %447 = vector.extract_strided_slice %432 {offsets = [0, 384], sizes = [2, 128], strides = [1, 1]} : vector<2x512xf32> to vector<2x128xf32>
    %448 = arith.negf %447 : vector<2x128xf32>
    %449 = math.exp %448 : vector<2x128xf32>
    %cst_93 = arith.constant 1.000000e+00 : f32
    %450 = vector.broadcast %cst_93 : f32 to vector<2x128xf32>
    %451 = arith.addf %450, %449 : vector<2x128xf32>
    %452 = arith.divf %450, %451 : vector<2x128xf32>
    %453 = arith.mulf %444, %428 : vector<2x128xf32>
    %454 = arith.mulf %438, %446 : vector<2x128xf32>
    %455 = arith.addf %453, %454 : vector<2x128xf32>
    %456 = math.tanh %455 : vector<2x128xf32>
    %457 = arith.mulf %452, %456 : vector<2x128xf32>
    %458 = vector.shape_cast %21 : vector<1x128xi1> to vector<1x128xi1>
    %459 = vector.broadcast %458 : vector<1x128xi1> to vector<2x128xi1>
    %460 = arith.select %459, %457, %425 : vector<2x128xi1>, vector<2x128xf32>
    %461 = vector.shape_cast %21 : vector<1x128xi1> to vector<1x128xi1>
    %462 = vector.broadcast %461 : vector<1x128xi1> to vector<2x128xi1>
    %463 = arith.select %462, %455, %428 : vector<2x128xi1>, vector<2x128xf32>
    %464 = vector.extract_strided_slice %5 {offsets = [28, 0], sizes = [2, 512], strides = [1, 1]} : vector<32x512xf32> to vector<2x512xf32>
    %c0_94 = arith.constant 0 : index
    %c0_95 = arith.constant 0 : index
    %465 = vector.load %arg2[%c0_94, %c0_95] : memref<128x512xf32, #tpu.memory_space<vmem>>, vector<128x512xf32>
    %cst_96 = arith.constant dense<0.000000e+00> : vector<2x512xf32>
    %466 = tpu.matmul %460, %465, %cst_96 {dimension_numbers = #tpu.dot_dimension_numbers<[1], [0], [0], [1], [0, 0, 1, 1], [], []>} : vector<2x128xf32>, vector<128x512xf32>, vector<2x512xf32> -> vector<2x512xf32>
    %467 = arith.addf %464, %466 : vector<2x512xf32>
    %468 = vector.extract_strided_slice %467 {offsets = [0, 0], sizes = [2, 128], strides = [1, 1]} : vector<2x512xf32> to vector<2x128xf32>
    %469 = arith.negf %468 : vector<2x128xf32>
    %470 = math.exp %469 : vector<2x128xf32>
    %cst_97 = arith.constant 1.000000e+00 : f32
    %471 = vector.broadcast %cst_97 : f32 to vector<2x128xf32>
    %472 = arith.addf %471, %470 : vector<2x128xf32>
    %473 = arith.divf %471, %472 : vector<2x128xf32>
    %474 = vector.extract_strided_slice %467 {offsets = [0, 128], sizes = [2, 128], strides = [1, 1]} : vector<2x512xf32> to vector<2x128xf32>
    %475 = arith.negf %474 : vector<2x128xf32>
    %476 = math.exp %475 : vector<2x128xf32>
    %cst_98 = arith.constant 1.000000e+00 : f32
    %477 = vector.broadcast %cst_98 : f32 to vector<2x128xf32>
    %478 = arith.addf %477, %476 : vector<2x128xf32>
    %479 = arith.divf %477, %478 : vector<2x128xf32>
    %480 = vector.extract_strided_slice %467 {offsets = [0, 256], sizes = [2, 128], strides = [1, 1]} : vector<2x512xf32> to vector<2x128xf32>
    %481 = math.tanh %480 : vector<2x128xf32>
    %482 = vector.extract_strided_slice %467 {offsets = [0, 384], sizes = [2, 128], strides = [1, 1]} : vector<2x512xf32> to vector<2x128xf32>
    %483 = arith.negf %482 : vector<2x128xf32>
    %484 = math.exp %483 : vector<2x128xf32>
    %cst_99 = arith.constant 1.000000e+00 : f32
    %485 = vector.broadcast %cst_99 : f32 to vector<2x128xf32>
    %486 = arith.addf %485, %484 : vector<2x128xf32>
    %487 = arith.divf %485, %486 : vector<2x128xf32>
    %488 = arith.mulf %479, %463 : vector<2x128xf32>
    %489 = arith.mulf %473, %481 : vector<2x128xf32>
    %490 = arith.addf %488, %489 : vector<2x128xf32>
    %491 = math.tanh %490 : vector<2x128xf32>
    %492 = arith.mulf %487, %491 : vector<2x128xf32>
    %493 = vector.shape_cast %21 : vector<1x128xi1> to vector<1x128xi1>
    %494 = vector.broadcast %493 : vector<1x128xi1> to vector<2x128xi1>
    %495 = arith.select %494, %492, %460 : vector<2x128xi1>, vector<2x128xf32>
    %496 = vector.shape_cast %21 : vector<1x128xi1> to vector<1x128xi1>
    %497 = vector.broadcast %496 : vector<1x128xi1> to vector<2x128xi1>
    %498 = arith.select %497, %490, %463 : vector<2x128xi1>, vector<2x128xf32>
    %499 = vector.extract_strided_slice %5 {offsets = [30, 0], sizes = [2, 512], strides = [1, 1]} : vector<32x512xf32> to vector<2x512xf32>
    %c0_100 = arith.constant 0 : index
    %c0_101 = arith.constant 0 : index
    %500 = vector.load %arg2[%c0_100, %c0_101] : memref<128x512xf32, #tpu.memory_space<vmem>>, vector<128x512xf32>
    %cst_102 = arith.constant dense<0.000000e+00> : vector<2x512xf32>
    %501 = tpu.matmul %495, %500, %cst_102 {dimension_numbers = #tpu.dot_dimension_numbers<[1], [0], [0], [1], [0, 0, 1, 1], [], []>} : vector<2x128xf32>, vector<128x512xf32>, vector<2x512xf32> -> vector<2x512xf32>
    %502 = arith.addf %499, %501 : vector<2x512xf32>
    %503 = vector.extract_strided_slice %502 {offsets = [0, 0], sizes = [2, 128], strides = [1, 1]} : vector<2x512xf32> to vector<2x128xf32>
    %504 = arith.negf %503 : vector<2x128xf32>
    %505 = math.exp %504 : vector<2x128xf32>
    %cst_103 = arith.constant 1.000000e+00 : f32
    %506 = vector.broadcast %cst_103 : f32 to vector<2x128xf32>
    %507 = arith.addf %506, %505 : vector<2x128xf32>
    %508 = arith.divf %506, %507 : vector<2x128xf32>
    %509 = vector.extract_strided_slice %502 {offsets = [0, 128], sizes = [2, 128], strides = [1, 1]} : vector<2x512xf32> to vector<2x128xf32>
    %510 = arith.negf %509 : vector<2x128xf32>
    %511 = math.exp %510 : vector<2x128xf32>
    %cst_104 = arith.constant 1.000000e+00 : f32
    %512 = vector.broadcast %cst_104 : f32 to vector<2x128xf32>
    %513 = arith.addf %512, %511 : vector<2x128xf32>
    %514 = arith.divf %512, %513 : vector<2x128xf32>
    %515 = vector.extract_strided_slice %502 {offsets = [0, 256], sizes = [2, 128], strides = [1, 1]} : vector<2x512xf32> to vector<2x128xf32>
    %516 = math.tanh %515 : vector<2x128xf32>
    %517 = vector.extract_strided_slice %502 {offsets = [0, 384], sizes = [2, 128], strides = [1, 1]} : vector<2x512xf32> to vector<2x128xf32>
    %518 = arith.negf %517 : vector<2x128xf32>
    %519 = math.exp %518 : vector<2x128xf32>
    %cst_105 = arith.constant 1.000000e+00 : f32
    %520 = vector.broadcast %cst_105 : f32 to vector<2x128xf32>
    %521 = arith.addf %520, %519 : vector<2x128xf32>
    %522 = arith.divf %520, %521 : vector<2x128xf32>
    %523 = arith.mulf %514, %498 : vector<2x128xf32>
    %524 = arith.mulf %508, %516 : vector<2x128xf32>
    %525 = arith.addf %523, %524 : vector<2x128xf32>
    %526 = math.tanh %525 : vector<2x128xf32>
    %527 = arith.mulf %522, %526 : vector<2x128xf32>
    %528 = vector.shape_cast %21 : vector<1x128xi1> to vector<1x128xi1>
    %529 = vector.broadcast %528 : vector<1x128xi1> to vector<2x128xi1>
    %530 = arith.select %529, %527, %495 : vector<2x128xi1>, vector<2x128xf32>
    %c0_106 = arith.constant 0 : index
    %c0_107 = arith.constant 0 : index
    %531 = vector.load %arg6[%c0_106, %c0_107] : memref<2x128xf32, #tpu.memory_space<vmem>>, vector<2x128xf32>
    tpu.vector_store %arg6[%c0_106, %c0_107], %530 {strides = array<i32>} : memref<2x128xf32, #tpu.memory_space<vmem>>, vector<2x128xf32>,
    return
  }
}

</mosaic_0001>

<bundles_post_ra>
// kernel: tpu_custom_call.1
= control target key start
LH: loop header
LB: loop body
LE: loop exit
PB: predicated region body
PF: predicated region fallthrough
CT: control target
= control target key end

     0   :  { %11 = vsyncpa [#allocation3], 0  ;;  %s5784_s0 = inlined_call_operand.hbm [shape: f32[32,48], index: 0, kind: input, shape index: {}]   ;;  %s5785_s1 = inlined_call_operand.hbm [shape: f32[48,512], index: 1, kind: input, shape index: {}]   ;;  %s5786_s2 = inlined_call_operand.hbm [shape: f32[128,512], index: 2, kind: input, shape index: {}]   ;;  %s5787_s3 = inlined_call_operand.vmem [shape: f32[1,512], index: 3, kind: input, shape index: {}]   ;;  %s5788_s4 = inlined_call_operand.vmem [shape: f32[2,128], index: 4, kind: input, shape index: {}]   ;;  %s5789_s5 = inlined_call_operand.vmem [shape: f32[2,128], index: 5, kind: input, shape index: {}]   ;;  %s5790_s6 = inlined_call_operand.hbm [shape: f32[2,128], index: 6, kind: output, shape index: {}]  }
   0x1   :  { %12 = vsyncpa [#allocation6], 0 }
   0x2   :  { %13 = vsyncpa [#allocation4], 0  ;;  %s4828_s21 = smov [#allocation5]   ;;  %s4734_s25 = scalar_lea.hbm %s5785_s1, 3072 }
   0x3   :  { %s31_s22 = sshll.u32 %s4828_s21, 4  ;;  %p4735_p0 = scmp.ne.s32.totalorder %s5785_s1, %s4734_s25  ;;  %s32_s22 = int_to_ptr.vmem [resolvable:$true] %s31_s22 }
   0x4   :  { %p4738_p1 = scmp.lt.u32.totalorder %s4734_s25, %s5785_s1 }
   0x6   :  { %p4740_p2 = pnand %p4738_p1, %p4735_p0 }
   0x8   :  { %4743 = shalt.err (!%p4740_p2)
}
   0x9   :  { %s4744_s30 = scalar_lea.vmem %s32_s22, 3072  ;;  %p4749_p4 = scmp.lt.s32.totalorder %s32_s22, %s32_s22 }
   0xa   :  { %p4745_p3 = scmp.ne.s32.totalorder %s32_s22, %s4744_s30  ;;  %p4750_p5 = scmp.lt.s32.totalorder %s4744_s30, %s4744_s30 }
   0xc   :  { %p4751_p6 = por %p4750_p5, %p4749_p4 }
   0xe   :  { %p4752_p7 = pnand %p4751_p6, %p4745_p3 }
  0x10   :  { %4755 = shalt.err (!%p4752_p7)
}
  0x11   :  { %s4829_s7 = smov 512   ;;  %s4830_s8 = smov 32  }
  0x12   :  { %37 = dma.hbm_to_vmem [thread:$0]  %s5785_s1, 3072, %s32_s22, [#allocation6], %s4829_s7, %s4829_s7, %s4830_s8  }
  0x13   :  { %s4831_s11 = smov [#allocation2]   ;;  %s4756_s15 = scalar_lea.hbm %s5784_s0, 512 }
  0x14   :  { %s19_s12 = sshll.u32 %s4831_s11, 4  ;;  %p4757_p8 = scmp.ne.s32.totalorder %s5784_s0, %s4756_s15  ;;  %s20_s12 = int_to_ptr.vmem [resolvable:$true] %s19_s12 }
  0x15   :  { %p4760_p9 = scmp.lt.u32.totalorder %s4756_s15, %s5784_s0 }
  0x17   :  { %p4762_p10 = pnand %p4760_p9, %p4757_p8 }
  0x19   :  { %4765 = shalt.err (!%p4762_p10)
}
  0x1a   :  { %s4766_s20 = scalar_lea.vmem %s20_s12, 512  ;;  %p4771_p12 = scmp.lt.s32.totalorder %s20_s12, %s20_s12 }
  0x1b   :  { %p4767_p11 = scmp.ne.s32.totalorder %s20_s12, %s4766_s20  ;;  %p4772_p13 = scmp.lt.s32.totalorder %s4766_s20, %s4766_s20 }
  0x1d   :  { %p4773_p0 = por %p4772_p13, %p4771_p12 }
  0x1f   :  { %p4774_p1 = pnand %p4773_p0, %p4767_p11 }
  0x21   :  { %4777 = shalt.err (!%p4774_p1)
}
  0x22   :  { %s4832_s1 = smov 128   ;;  %s4833_s21 = smov 8  }
  0x23   :  { %25 = dma.hbm_to_vmem [thread:$0]  %s5784_s0, 512, %s20_s12, [#allocation3], %s4832_s1, %s4832_s1, %s4833_s21  }
  0x24   :  { %s4834_s24 = smov [#allocation7]   ;;  %s4778_s28 = scalar_lea.hbm %s5786_s2, 8192 }
  0x25   :  { %s43_s25 = sshll.u32 %s4834_s24, 4  ;;  %p4779_p2 = scmp.ne.s32.totalorder %s5786_s2, %s4778_s28  ;;  %s44_s25 = int_to_ptr.vmem [resolvable:$true] %s43_s25 }
  0x26   :  { %p4782_p3 = scmp.lt.u32.totalorder %s4778_s28, %s5786_s2 }
  0x28   :  { %p4784_p4 = pnand %p4782_p3, %p4779_p2 }
  0x2a   :  { %4787 = shalt.err (!%p4784_p4)
}
  0x2b   :  { %s4788_s11 = scalar_lea.vmem %s44_s25, 8192  ;;  %p4793_p6 = scmp.lt.s32.totalorder %s44_s25, %s44_s25 }
  0x2c   :  { %p4789_p5 = scmp.ne.s32.totalorder %s44_s25, %s4788_s11  ;;  %p4794_p7 = scmp.lt.s32.totalorder %s4788_s11, %s4788_s11 }
  0x2e   :  { %p4795_p8 = por %p4794_p7, %p4793_p6 }
  0x30   :  { %p4796_p9 = pnand %p4795_p8, %p4789_p5 }
  0x32   :  { %4799 = shalt.err (!%p4796_p9)
}
  0x33   :  { %49 = dma.hbm_to_vmem [thread:$0]  %s5786_s2, 8192, %s44_s25, [#allocation6], %s4829_s7, %s4829_s7, %s4830_s8  }
  0x34   :  { %4822 = dma.done.wait [#allocation3], 512  }
  0x35   :  { %4823 = vsyncadd [#allocation3], 4294966784 }
  0x36   :  { %4824 = dma.done.wait [#allocation6], 11264  }
  0x37   :  { %4825 = vsyncadd [#allocation6], 4294956032  ;;  %v5792_v0 = vmov 0.0   ;;  %v70_v1 = vld [vmem:[#allocation5 + $0x8] sm:$0xff]  ;;  %v72_v3 = vld [vmem:[#allocation5 + $0x18] sm:$0xff]  ;;  %vm115_vm0 = vcmask 392192  }
  0x38   :  { %192 = vmatprep.mubr.f32.mxu0 %v5792_v0  ;;  %281 = vmatprep.mubr.f32.mxu1 %v5792_v0  ;;  %v74_v2 = vld [vmem:[#allocation5 + $0x28] sm:$0xff]  ;;  %v76_v5 = vld [vmem:[#allocation5 + $0x38] sm:$0xff]  ;;  %v69_v6 = vld [vmem:[#allocation5] sm:$0xff] }
  0x39   :  { %v3421_v4 = vpack.c.bf16 %v74_v2, %v70_v1  ;;  %v73_v7 = vld [vmem:[#allocation5 + $0x20] sm:$0xff]  ;;  %v3433_v8 = vpack.c.bf16 %v76_v5, %v72_v3  ;;  %v71_v10 = vld [vmem:[#allocation5 + $0x10] sm:$0xff]  ;;  %v78_v12 = vld [vmem:[#allocation5 + $0x48] sm:$0xff] }
  0x3a   :  { %v3423_v9 = vpack.c.bf16 %v73_v7, %v69_v6  ;;  %v75_v11 = vld [vmem:[#allocation5 + $0x30] sm:$0xff]  ;;  %v82_v14 = vld [vmem:[#allocation5 + $0x68] sm:$0xff]  ;;  %v80_v15 = vld [vmem:[#allocation5 + $0x58] sm:$0xff] }
  0x3b   :  { %3422 = vmatprep.subr.bf16.mxu0 %v3421_v4  ;;  %v3435_v13 = vpack.c.bf16 %v75_v11, %v71_v10  ;;  %v84_v16 = vld [vmem:[#allocation5 + $0x78] sm:$0xff]  ;;  %3434 = vmatprep.subr.bf16.mxu1 %v3433_v8  ;;  %v3425_v17 = vpack.c.bf16 %v82_v14, %v78_v12  ;;  %v77_v19 = vld [vmem:[#allocation5 + $0x40] sm:$0xff]  ;;  %v79_v21 = vld [vmem:[#allocation5 + $0x50] sm:$0xff] }
  0x3c   :  { %3424 = vmatpush1.bf16.msra.mxu0 %v3423_v9  ;;  %v3437_v18 = vpack.c.bf16 %v84_v16, %v80_v15  ;;  %v81_v20 = vld [vmem:[#allocation5 + $0x60] sm:$0xff]  ;;  %v83_v23 = vld [vmem:[#allocation5 + $0x70] sm:$0xff]  ;;  %v86_v24 = vld [vmem:[#allocation5 + $0x88] sm:$0xff] }
  0x3d   :  { %3436 = vmatpush1.bf16.msra.mxu1 %v3435_v13  ;;  %v3427_v22 = vpack.c.bf16 %v81_v20, %v77_v19  ;;  %v90_v25 = vld [vmem:[#allocation5 + $0xa8] sm:$0xff]  ;;  %3426 = vmatprep.subr.bf16.mxu0 %v3425_v17  ;;  %v3439_v26 = vpack.c.bf16 %v83_v23, %v79_v21  ;;  %v88_v28 = vld [vmem:[#allocation5 + $0x98] sm:$0xff]  ;;  %v85_v30 = vld [vmem:[#allocation5 + $0x80] sm:$0xff] }
  0x3e   :  { %3438 = vmatprep.subr.bf16.mxu1 %v3437_v18  ;;  %v3429_v27 = vpack.c.bf16 %v90_v25, %v86_v24  ;;  %v92_v29 = vld [vmem:[#allocation5 + $0xb8] sm:$0xff]  ;;  %v89_v32 = vld [vmem:[#allocation5 + $0xa0] sm:$0xff]  ;;  %v87_v33 = vld [vmem:[#allocation5 + $0x90] sm:$0xff] }
  0x3f   :  { %v3441_v31 = vpack.c.bf16 %v92_v29, %v88_v28  ;;  %v91_v34 = vld [vmem:[#allocation5 + $0xb0] sm:$0xff]  ;;  %v3431_v35 = vpack.c.bf16 %v89_v32, %v85_v30  ;;  %v318_v36 = vld [vmem:[#allocation7 + $0x8] sm:$0xff]  ;;  %v320_v40 = vld [vmem:[#allocation7 + $0x18] sm:$0xff] }
  0x40   :  { %3428 = vmatpush1.bf16.msra.mxu0 %v3427_v22  ;;  %v322_v37 = vld [vmem:[#allocation7 + $0x28] sm:$0xff]  ;;  %v3443_v38 = vpack.c.bf16 %v91_v34, %v87_v33  ;;  %v324_v41 = vld [vmem:[#allocation7 + $0x38] sm:$0xff]  ;;  %v317_v42 = vld [vmem:[#allocation7] sm:$0xff] }
  0x41   :  { %3440 = vmatpush1.bf16.msra.mxu1 %v3439_v26  ;;  %3430 = vmatprep.subr.bf16.mxu0 %v3429_v27  ;;  %v4916_v39 = vpack.c.bf16 %v322_v37, %v318_v36  ;;  %v4918_v43 = vpack.c.bf16 %v324_v41, %v320_v40  ;;  %v321_v44 = vld [vmem:[#allocation7 + $0x20] sm:$0xff]  ;;  %v319_v45 = vld [vmem:[#allocation7 + $0x10] sm:$0xff]  ;;  %v326_v47 = vld [vmem:[#allocation7 + $0x48] sm:$0xff] }
  0x42   :  { %3442 = vmatprep.subr.bf16.mxu1 %v3441_v31  ;;  %v323_v46 = vld [vmem:[#allocation7 + $0x30] sm:$0xff]  ;;  %v330_v48 = vld [vmem:[#allocation7 + $0x68] sm:$0xff]  ;;  %v328_v49 = vld [vmem:[#allocation7 + $0x58] sm:$0xff]  ;;  %v4920_v51 = vpack.c.bf16 %v321_v44, %v317_v42 }
  0x43   :  { %v65_v50 = vld [vmem:[#allocation2] sm:$0xff]  ;;  %v332_v52 = vld [vmem:[#allocation7 + $0x78] sm:$0xff]  ;;  %v4923_v53 = vpack.c.bf16 %v323_v46, %v319_v45  ;;  %v4925_v54 = vpack.c.bf16 %v330_v48, %v326_v47  ;;  %v327_v57 = vld [vmem:[#allocation7 + $0x50] sm:$0xff] }
  0x44   :  { %3432 = vmatpush1.bf16.msra.mxu0 %v3431_v35  ;;  %v325_v55 = vld [vmem:[#allocation7 + $0x40] sm:$0xff]  ;;  %v4928_v58 = vpack.c.bf16 %v332_v52, %v328_v49  ;;  %v331_v59 = vld [vmem:[#allocation7 + $0x70] sm:$0xff]  ;;  %v334_v60 = vld [vmem:[#allocation7 + $0x88] sm:$0xff] }
  0x45   :  { %3444 = vmatpush1.bf16.msra.mxu1 %v3443_v38  ;;  %3446 = vmatprep.subr.bf16.mxu0 %v4916_v39  ;;  %v329_v56 = vld [vmem:[#allocation7 + $0x60] sm:$0xff]  ;;  %v338_v61 = vld [vmem:[#allocation7 + $0xa8] sm:$0xff]  ;;  %v336_v62 = vld [vmem:[#allocation7 + $0x98] sm:$0xff]  ;;  %v4937_v2 = vpack.c.bf16 %v331_v59, %v327_v57 }
  0x46   :  { %3478 = vmatprep.subr.bf16.mxu1 %v4918_v43  ;;  %v340_v63 = vld [vmem:[#allocation7 + $0xb8] sm:$0xff]  ;;  %v4933_v1 = vpack.c.bf16 %v329_v56, %v325_v55  ;;  %v4939_v3 = vpack.c.bf16 %v338_v61, %v334_v60  ;;  %v333_v4 = vld [vmem:[#allocation7 + $0x80] sm:$0xff]  ;;  %v335_v6 = vld [vmem:[#allocation7 + $0x90] sm:$0xff] }
  0x47   :  { %3365 = vmatmul.mubr.msk.f32.vlgmr.msra.gmra.mrb[0].mxu0 %vm115_vm0, %v65_v50  ;;  %v337_v5 = vld [vmem:[#allocation7 + $0xa0] sm:$0xff]  ;;  %v4942_v7 = vpack.c.bf16 %v340_v63, %v336_v62  ;;  %v339_v8 = vld [vmem:[#allocation7 + $0xb0] sm:$0xff]  ;;  %v342_v9 = vld [vmem:[#allocation7 + $0xc8] sm:$0xff] }
  0x48   :  { %3369 = vmatmul.mubr.msk.f32.vlgmr.msra.gmra.mrb[0].mxu1 %vm115_vm0, %v65_v50  ;;  %3448 = vmatpush1.bf16.msra.mxu0 %v4920_v51  ;;  %v346_v10 = vld [vmem:[#allocation7 + $0xe8] sm:$0xff]  ;;  %v344_v11 = vld [vmem:[#allocation7 + $0xd8] sm:$0xff]  ;;  %v4947_v13 = vpack.c.bf16 %v337_v5, %v333_v4  ;;  %v341_v14 = vld [vmem:[#allocation7 + $0xc0] sm:$0xff]  ;;  %v4951_v15 = vpack.c.bf16 %v339_v8, %v335_v6 }
  0x49   :  { %3480 = vmatpush1.bf16.msra.mxu1 %v4923_v53  ;;  %3450 = vmatprep.subr.bf16.mxu0 %v4925_v54  ;;  %v348_v12 = vld [vmem:[#allocation7 + $0xf8] sm:$0xff]  ;;  %v4953_v16 = vpack.c.bf16 %v346_v10, %v342_v9  ;;  %v345_v17 = vld [vmem:[#allocation7 + $0xe0] sm:$0xff]  ;;  %v343_v18 = vld [vmem:[#allocation7 + $0xd0] sm:$0xff] }
  0x4a   :  { %3482 = vmatprep.subr.bf16.mxu1 %v4928_v58  ;;  %198 = vmatprep.mubr.f32.mxu0 %v5792_v0  ;;  %v66_v19 = vld [vmem:[#allocation2 + $0x8] sm:$0xff]  ;;  %v4956_v20 = vpack.c.bf16 %v348_v12, %v344_v11  ;;  %v347_v21 = vld [vmem:[#allocation7 + $0xf0] sm:$0xff]  ;;  %v352_v24 = vld [vmem:[#allocation7 + $0x118] sm:$0xff]  ;;  %v4962_v26 = vpack.c.bf16 %v345_v17, %v341_v14 }
  0x4b   :  { %287 = vmatprep.mubr.f32.mxu1 %v5792_v0  ;;  %v350_v22 = vld [vmem:[#allocation7 + $0x108] sm:$0xff]  ;;  %3366 = vmatmul.mubr.msk.f32.gmra.mrb[2].mxu0 %vm115_vm0, %v66_v19  ;;  %v356_v25 = vld [vmem:[#allocation7 + $0x138] sm:$0xff]  ;;  %v67_v27 = vld [vmem:[#allocation2 + $0x10] sm:$0xff]  ;;  %v4967_v28 = vpack.c.bf16 %v347_v21, %v343_v18 }
  0x4c   :  { %3452 = vmatpush1.bf16.msra.mxu0 %v4933_v1  ;;  %v354_v23 = vld [vmem:[#allocation7 + $0x128] sm:$0xff]  ;;  %3370 = vmatmul.mubr.msk.f32.gmra.mrb[2].mxu1 %vm115_vm0, %v66_v19  ;;  %v349_v30 = vld [vmem:[#allocation7 + $0x100] sm:$0xff]  ;;  %v351_v32 = vld [vmem:[#allocation7 + $0x110] sm:$0xff]  ;;  %v4972_v33 = vpack.c.bf16 %v356_v25, %v352_v24 }
  0x4d   :  { %3484 = vmatpush1.bf16.msra.mxu1 %v4937_v2  ;;  %3454 = vmatprep.subr.bf16.mxu0 %v4939_v3  ;;  %v4969_v29 = vpack.c.bf16 %v354_v23, %v350_v22  ;;  %v353_v31 = vld [vmem:[#allocation7 + $0x120] sm:$0xff]  ;;  %v355_v34 = vld [vmem:[#allocation7 + $0x130] sm:$0xff]  ;;  %v358_v35 = vld [vmem:[#allocation7 + $0x148] sm:$0xff] }
  0x4e   :  { %3486 = vmatprep.subr.bf16.mxu1 %v4942_v7  ;;  %204 = vmatprep.mubr.f32.mxu0 %v5792_v0  ;;  %v362_v36 = vld [vmem:[#allocation7 + $0x168] sm:$0xff]  ;;  %v360_v37 = vld [vmem:[#allocation7 + $0x158] sm:$0xff]  ;;  %v4978_v41 = vpack.c.bf16 %v353_v31, %v349_v30  ;;  %v4983_v42 = vpack.c.bf16 %v355_v34, %v351_v32  ;;  %v357_v45 = vld [vmem:[#allocation7 + $0x140] sm:$0xff] }
  0x4f   :  { %293 = vmatprep.mubr.f32.mxu1 %v5792_v0  ;;  %3367 = vmatmul.mubr.msk.f32.gmra.mrb[4].mxu0 %vm115_vm0, %v67_v27  ;;  %v364_v38 = vld [vmem:[#allocation7 + $0x178] sm:$0xff]  ;;  %v4985_v44 = vpack.c.bf16 %v362_v36, %v358_v35  ;;  %v361_v46 = vld [vmem:[#allocation7 + $0x160] sm:$0xff]  ;;  %v359_v47 = vld [vmem:[#allocation7 + $0x150] sm:$0xff] }
  0x50   :  { %3456 = vmatpush1.bf16.msra.mxu0 %v4947_v13  ;;  %3371 = vmatmul.mubr.msk.f32.gmra.mrb[4].mxu1 %vm115_vm0, %v67_v27  ;;  %v68_v40 = vld [vmem:[#allocation2 + $0x18] sm:$0xff]  ;;  %v4988_v48 = vpack.c.bf16 %v364_v38, %v360_v37  ;;  %v363_v49 = vld [vmem:[#allocation7 + $0x170] sm:$0xff]  ;;  %v366_v50 = vld [vmem:[#allocation7 + $0x188] sm:$0xff]  ;;  %v4994_v57 = vpack.c.bf16 %v361_v46, %v357_v45  ;;  %v5791_v27 = vlaneseq }
  0x51   :  { %3488 = vmatpush1.bf16.msra.mxu1 %v4951_v15  ;;  %3458 = vmatprep.subr.bf16.mxu0 %v4953_v16  ;;  %v370_v52 = vld [vmem:[#allocation7 + $0x1a8] sm:$0xff]  ;;  %v368_v55 = vld [vmem:[#allocation7 + $0x198] sm:$0xff]  ;;  %v4999_v59 = vpack.c.bf16 %v363_v49, %v359_v47  ;;  %v365_v61 = vld [vmem:[#allocation7 + $0x180] sm:$0xff] }
  0x52   :  { %3490 = vmatprep.subr.bf16.mxu1 %v4956_v20  ;;  %210 = vmatprep.mubr.f32.mxu0 %v5792_v0  ;;  %v372_v56 = vld [vmem:[#allocation7 + $0x1b8] sm:$0xff]  ;;  %v5001_v60 = vpack.c.bf16 %v370_v52, %v366_v50  ;;  %v369_v62 = vld [vmem:[#allocation7 + $0x1a0] sm:$0xff]  ;;  %v367_v63 = vld [vmem:[#allocation7 + $0x190] sm:$0xff]  ;;  %v96_v30 = vshrl.u32 %v5791_v27, 7 }
  0x53   :  { %299 = vmatprep.mubr.f32.mxu1 %v5792_v0  ;;  %3368 = vmatmul.mubr.msk.f32.gmra.mrb[6].mxu0 %vm115_vm0, %v68_v40  ;;  %v5004_v4 = vpack.c.bf16 %v372_v56, %v368_v55  ;;  %v371_v5 = vld [vmem:[#allocation7 + $0x1b0] sm:$0xff]  ;;  %v374_v6 = vld [vmem:[#allocation7 + $0x1c8] sm:$0xff]  ;;  %v376_v9 = vld [vmem:[#allocation7 + $0x1d8] sm:$0xff]  ;;  %v5007_v11 = vpack.c.bf16 %v369_v62, %v365_v61 }
  0x54   :  { %3460 = vmatpush1.bf16.msra.mxu0 %v4962_v26  ;;  %3372 = vmatmul.mubr.msk.f32.gmra.mrb[6].mxu1 %vm115_vm0, %v68_v40  ;;  %v378_v8 = vld [vmem:[#allocation7 + $0x1e8] sm:$0xff]  ;;  %v380_v10 = vld [vmem:[#allocation7 + $0x1f8] sm:$0xff]  ;;  %v5011_v12 = vpack.c.bf16 %v371_v5, %v367_v63  ;;  %v373_v17 = vld [vmem:[#allocation7 + $0x1c0] sm:$0xff]  ;;  %v97_v35 = vsub.s32 0, %v96_v30  ;;  %v101_v38 = vsub.s32 1, %v96_v30  ;;  %v105_v40 = vsub.s32 2, %v96_v30 }
  0x55   :  { %3492 = vmatpush1.bf16.msra.mxu1 %v4967_v28  ;;  %3462 = vmatprep.subr.bf16.mxu0 %v4969_v29  ;;  %v5013_v14 = vpack.c.bf16 %v378_v8, %v374_v6  ;;  %v377_v18 = vld [vmem:[#allocation7 + $0x1e0] sm:$0xff]  ;;  %v5016_v19 = vpack.c.bf16 %v380_v10, %v376_v9  ;;  %v375_v21 = vld [vmem:[#allocation7 + $0x1d0] sm:$0xff]  ;;  %v109_v45 = vsub.s32 3, %v96_v30 }
  0x56   :  { %3494 = vmatprep.subr.bf16.mxu1 %v4972_v33  ;;  %445 = vmatprep.mubr.f32.mxu0 %v5792_v0  ;;  %v379_v22 = vld [vmem:[#allocation7 + $0x1f0] sm:$0xff]  ;;  %v5019_v23 = vpack.c.bf16 %v377_v18, %v373_v17  ;;  %v306_v25 = vld [vmem:[%s5788_s4] sm:$0x3] }
  0x57   :  { %516 = vmatprep.mubr.f32.mxu1 %v5792_v0  ;;  %v5023_v24 = vpack.c.bf16 %v379_v22, %v375_v21  ;;  %v93_v37 = vld [vmem:[%s5787_s3] sm:$0xf] }
  0x58   :  { %3464 = vmatpush1.bf16.msra.mxu0 %v4978_v41  ;;  %v98_v46 = vrot.slane %v93_v37, %v97_v35  ;;  %v102_v47 = vrot.slane %v93_v37, %v101_v38  ;;  %v106_v49 = vrot.slane %v93_v37, %v105_v40  ;;  %v110_v52 = vrot.slane %v93_v37, %v109_v45 }
  0x59   :  { %3496 = vmatpush1.bf16.msra.mxu1 %v4983_v42  ;;  %3466 = vmatprep.subr.bf16.mxu0 %v4985_v44 }
  0x5a   :  { %3498 = vmatprep.subr.bf16.mxu1 %v4988_v48 }
  0x5c   :  { %3468 = vmatpush1.bf16.msra.mxu0 %v4994_v57 }
  0x5d   :  { %3500 = vmatpush1.bf16.msra.mxu1 %v4999_v59  ;;  %3470 = vmatprep.subr.bf16.mxu0 %v5001_v60 }
  0x5e   :  { %3502 = vmatprep.subr.bf16.mxu1 %v5004_v4 }
  0x60   :  { %3472 = vmatpush1.bf16.msra.mxu0 %v5007_v11 }
  0x61   :  { %3504 = vmatpush1.bf16.msra.mxu1 %v5011_v12  ;;  %3474 = vmatprep.subr.bf16.mxu0 %v5013_v14 }
  0x62   :  { %3506 = vmatprep.subr.bf16.mxu1 %v5016_v19 }
  0x64   :  { %3476 = vmatpush1.bf16.msra.mxu0 %v5019_v23 }
  0x65   :  { %3508 = vmatpush1.bf16.msra.mxu1 %v5023_v24  ;;  %3510 = vmatprep.subr.bf16.mxu0 %v4916_v39 }
  0x66   :  { %3542 = vmatprep.subr.bf16.mxu1 %v4918_v43 }
  0x67   :  { %446 = vmatmul.mubr.f32.vlgmr.msra.gmra.mrb[8].mxu0 %v306_v25 }
  0x68   :  { %517 = vmatmul.mubr.f32.vlgmr.msra.gmra.mrb[8].mxu1 %v306_v25  ;;  %3512 = vmatpush1.bf16.msra.mxu0 %v4920_v51 }
  0x69   :  { %3544 = vmatpush1.bf16.msra.mxu1 %v4923_v53  ;;  %3514 = vmatprep.subr.bf16.mxu0 %v4925_v54 }
  0x6a   :  { %3546 = vmatprep.subr.bf16.mxu1 %v4928_v58  ;;  %615 = vmatprep.mubr.f32.mxu0 %v5792_v0 }
  0x6b   :  { %686 = vmatprep.mubr.f32.mxu1 %v5792_v0 }
  0x6c   :  { %3516 = vmatpush1.bf16.msra.mxu0 %v4933_v1 }
  0x6d   :  { %3548 = vmatpush1.bf16.msra.mxu1 %v4937_v2  ;;  %3518 = vmatprep.subr.bf16.mxu0 %v4939_v3 }
  0x6e   :  { %3550 = vmatprep.subr.bf16.mxu1 %v4942_v7 }
  0x70   :  { %3520 = vmatpush1.bf16.msra.mxu0 %v4947_v13 }
  0x71   :  { %3552 = vmatpush1.bf16.msra.mxu1 %v4951_v15  ;;  %3522 = vmatprep.subr.bf16.mxu0 %v4953_v16 }
  0x72   :  { %3554 = vmatprep.subr.bf16.mxu1 %v4956_v20 }
  0x74   :  { %3524 = vmatpush1.bf16.msra.mxu0 %v4962_v26 }
  0x75   :  { %3556 = vmatpush1.bf16.msra.mxu1 %v4967_v28  ;;  %3526 = vmatprep.subr.bf16.mxu0 %v4969_v29 }
  0x76   :  { %3558 = vmatprep.subr.bf16.mxu1 %v4972_v33 }
  0x78   :  { %3528 = vmatpush1.bf16.msra.mxu0 %v4978_v41 }
  0x79   :  { %3560 = vmatpush1.bf16.msra.mxu1 %v4983_v42  ;;  %3530 = vmatprep.subr.bf16.mxu0 %v4985_v44 }
  0x7a   :  { %3562 = vmatprep.subr.bf16.mxu1 %v4988_v48 }
  0x7c   :  { %3532 = vmatpush1.bf16.msra.mxu0 %v4994_v57 }
  0x7d   :  { %3564 = vmatpush1.bf16.msra.mxu1 %v4999_v59  ;;  %3534 = vmatprep.subr.bf16.mxu0 %v5001_v60 }
  0x7e   :  { %3566 = vmatprep.subr.bf16.mxu1 %v5004_v4 }
  0x80   :  { %3536 = vmatpush1.bf16.msra.mxu0 %v5007_v11 }
  0x81   :  { %3568 = vmatpush1.bf16.msra.mxu1 %v5011_v12  ;;  %3538 = vmatprep.subr.bf16.mxu0 %v5013_v14 }
  0x82   :  { %3570 = vmatprep.subr.bf16.mxu1 %v5016_v19 }
  0x84   :  { %3540 = vmatpush1.bf16.msra.mxu0 %v5019_v23 }
  0x85   :  { %3572 = vmatpush1.bf16.msra.mxu1 %v5023_v24  ;;  %3574 = vmatprep.subr.bf16.mxu0 %v4916_v39 }
  0x86   :  { %3606 = vmatprep.subr.bf16.mxu1 %v4918_v43 }
 0x11a   :  { %v194_v31 = vpop.f32.mrb[0].mxu0 }
 0x11b   :  { %v196_v32 = vpop.f32.mrb[1].mxu0  ;;  %v283_v34 = vpop.f32.mrb[0].mxu1 }
 0x11c   :  { %v285_v36 = vpop.f32.mrb[1].mxu1 }
 0x11e   :  { %v200_v50 = vpop.f32.mrb[2].mxu0 }
 0x11f   :  { %v5071_v55 = vadd.f32 %v200_v50, %v98_v46  ;;  %v202_v56 = vpop.f32.mrb[3].mxu0  ;;  %v289_v61 = vpop.f32.mrb[2].mxu1 }
 0x120   :  { %v5073_v62 = vadd.f32 %v202_v56, %v102_v47  ;;  %v5075_v63 = vadd.f32 %v289_v61, %v106_v49  ;;  %v291_v5 = vpop.f32.mrb[3].mxu1  ;;  %v5095_v61 = vadd.f32 %v194_v31, %v98_v46  ;;  %v5104_v31 = vadd.f32 %v283_v34, %v106_v49 }
 0x121   :  { %v5077_v6 = vadd.f32 %v291_v5, %v110_v52  ;;  %v5097_v5 = vadd.f32 %v196_v32, %v102_v47 }
 0x122   :  { %v206_v8 = vpop.f32.mrb[4].mxu0 }
 0x123   :  { %v5079_v9 = vadd.f32 %v206_v8, %v98_v46  ;;  %v208_v10 = vpop.f32.mrb[5].mxu0  ;;  %v295_v17 = vpop.f32.mrb[4].mxu1 }
 0x124   :  { %v5081_v18 = vadd.f32 %v208_v10, %v102_v47  ;;  %v5083_v21 = vadd.f32 %v295_v17, %v106_v49  ;;  %v297_v22 = vpop.f32.mrb[5].mxu1 }
 0x125   :  { %v5085_v25 = vadd.f32 %v297_v22, %v110_v52 }
 0x126   :  { %v212_v30 = vpop.f32.mrb[6].mxu0 }
 0x127   :  { %v5087_v35 = vadd.f32 %v212_v30, %v98_v46  ;;  %v214_v37 = vpop.f32.mrb[7].mxu0  ;;  %v301_v38 = vpop.f32.mrb[6].mxu1 }
 0x128   :  { %v5089_v40 = vadd.f32 %v214_v37, %v102_v47  ;;  %v5091_v45 = vadd.f32 %v301_v38, %v106_v49  ;;  %v303_v50 = vpop.f32.mrb[7].mxu1  ;;  %v5101_v38 = vadd.f32 %v285_v36, %v110_v52  ;;  %v307_v36 = vld [vmem:[%s5789_s5] sm:$0x3]  ;;  %s4836_s5 = smov [#allocation8]  }
 0x129   :  { %v5093_v56 = vadd.f32 %v303_v50, %v110_v52  ;;  %s3355_s14 = sshll.u32 %s4836_s5, 4  ;;  %s3356_s14 = int_to_ptr.vmem [resolvable:$true] %s3355_s14 }
 0x12a   :  { %5797 = vst [vmem:[#allocation12_spill] sm:$0xff] %v5089_v40  ;;  %5798 = vst [vmem:[#allocation13_spill] sm:$0xff] %v5091_v45  ;;  %s4800_s15 = scalar_lea.vmem %s3356_s14, 32  ;;  %p4805_p11 = scmp.lt.s32.totalorder %s3356_s14, %s3356_s14 }
 0x12b   :  { %5799 = vst [vmem:[#allocation14_spill] sm:$0xff] %v5093_v56  ;;  %p4801_p10 = scmp.ne.s32.totalorder %s3356_s14, %s4800_s15  ;;  %p4806_p12 = scmp.lt.s32.totalorder %s4800_s15, %s4800_s15 }
 0x12d   :  { %p4807_p13 = por %p4806_p12, %p4805_p11 }
 0x12f   :  { %p4808_p0 = pnand %p4807_p13, %p4801_p10 }
 0x13a   :  { %v447_v8 = vpop.f32.mrb[8].mxu0 }
 0x13b   :  { %v523_v10 = vadd.f32 %v447_v8, %v5095_v61  ;;  %v518_v17 = vpop.f32.mrb[8].mxu1  ;;  %v449_v22 = vpop.f32.mrb[9].mxu0 }
 0x13c   :  { %v524_v30 = vadd.f32 %v449_v22, %v5097_v5  ;;  %v520_v27 = vpop.f32.mrb[9].mxu1  ;;  %v525_v46 = vadd.f32 %v518_v17, %v5104_v31 }
 0x13d   :  { %v3373_v0 = vmul.f32 -1.442695, %v523_v10  ;;  %v526_v50 = vadd.f32 %v520_v27, %v5101_v38 }
 0x13e   :  { %v3374_v37 = vmul.f32 -1.442695, %v524_v30 }
 0x13f   :  { %4478 = vpow2.f32 %v3373_v0  ;;  %v3375_v32 = vmul.f32 -1.442695, %v526_v50 }
 0x140   :  { %4480 = vpow2.f32 %v3374_v37 }
 0x141   :  { %4482 = vpow2.f32 %v3375_v32  ;;  %v5800_v32 = vmov 0.0  }
 0x142   :  { %4484 = vtanh.f32 %v525_v46 }
 0x149   :  { %v4479_v47 = vpop.eup %4478 }
 0x14a   :  { %v4481_v8 = vpop.eup %4480  ;;  %v530_v45 = vadd.f32 1.0, %v4479_v47 }
 0x14b   :  { %v536_v22 = vadd.f32 1.0, %v4481_v8  ;;  %v4483_v10 = vpop.eup %4482 }
 0x14c   :  { %4486 = vrcp.f32 %v530_v45  ;;  %v4485_v0 = vpop.eup %4484  ;;  %v543_v52 = vadd.f32 1.0, %v4483_v10 }
 0x14d   :  { %4488 = vrcp.f32 %v536_v22 }
 0x14e   :  { %4490 = vrcp.f32 %v543_v52 }
 0x156   :  { %v4487_v27 = vpop.eup %4486 }
 0x157   :  { %v4489_v34 = vpop.eup %4488  ;;  %v547_v49 = vmul.f32 %v4487_v27, %v4485_v0 }
 0x158   :  { %v546_v30 = vmul.f32 %v4489_v34, %v307_v36  ;;  %v4491_v37 = vpop.eup %4490 }
 0x15a   :  { %v5110_v17 = vadd.f32 %v547_v49, %v546_v30 }
 0x15c   :  { %4492 = vtanh.f32 %v5110_v17 }
 0x166   :  { %v4493_v50 = vpop.eup %4492 }
 0x167   :  { %v550_v45 = vmul.f32 %v4493_v50, %v4491_v37 }
 0x169   :  { %616 = vmatmul.mubr.f32.vlgmr.msra.gmra.mrb[10].mxu0 %v550_v45  ;;  %687 = vmatmul.mubr.f32.vlgmr.msra.gmra.mrb[10].mxu1 %v550_v45 }
 0x16a   :  { %3576 = vmatpush1.bf16.msra.mxu0 %v4920_v51  ;;  %3608 = vmatpush1.bf16.msra.mxu1 %v4923_v53 }
 0x16b   :  { %3578 = vmatprep.subr.bf16.mxu0 %v4925_v54  ;;  %3610 = vmatprep.subr.bf16.mxu1 %v4928_v58 }
 0x16c   :  { %803 = vmatprep.mubr.f32.mxu0 %v5800_v32  ;;  %874 = vmatprep.mubr.f32.mxu1 %v5800_v32 }
 0x16e   :  { %3580 = vmatpush1.bf16.msra.mxu0 %v4933_v1  ;;  %3612 = vmatpush1.bf16.msra.mxu1 %v4937_v2 }
 0x16f   :  { %3582 = vmatprep.subr.bf16.mxu0 %v4939_v3  ;;  %3614 = vmatprep.subr.bf16.mxu1 %v4942_v7 }
 0x172   :  { %3584 = vmatpush1.bf16.msra.mxu0 %v4947_v13  ;;  %3616 = vmatpush1.bf16.msra.mxu1 %v4951_v15 }
 0x173   :  { %3586 = vmatprep.subr.bf16.mxu0 %v4953_v16  ;;  %3618 = vmatprep.subr.bf16.mxu1 %v4956_v20 }
 0x176   :  { %3588 = vmatpush1.bf16.msra.mxu0 %v4962_v26  ;;  %3620 = vmatpush1.bf16.msra.mxu1 %v4967_v28 }
 0x177   :  { %3590 = vmatprep.subr.bf16.mxu0 %v4969_v29  ;;  %3622 = vmatprep.subr.bf16.mxu1 %v4972_v33 }
 0x17a   :  { %3592 = vmatpush1.bf16.msra.mxu0 %v4978_v41  ;;  %3624 = vmatpush1.bf16.msra.mxu1 %v4983_v42 }
 0x17b   :  { %3594 = vmatprep.subr.bf16.mxu0 %v4985_v44  ;;  %3626 = vmatprep.subr.bf16.mxu1 %v4988_v48 }
 0x17e   :  { %3596 = vmatpush1.bf16.msra.mxu0 %v4994_v57  ;;  %3628 = vmatpush1.bf16.msra.mxu1 %v4999_v59 }
 0x17f   :  { %3598 = vmatprep.subr.bf16.mxu0 %v5001_v60  ;;  %3630 = vmatprep.subr.bf16.mxu1 %v5004_v4 }
 0x182   :  { %3600 = vmatpush1.bf16.msra.mxu0 %v5007_v11  ;;  %3632 = vmatpush1.bf16.msra.mxu1 %v5011_v12 }
 0x183   :  { %3602 = vmatprep.subr.bf16.mxu0 %v5013_v14  ;;  %3634 = vmatprep.subr.bf16.mxu1 %v5016_v19 }
 0x186   :  { %3604 = vmatpush1.bf16.msra.mxu0 %v5019_v23  ;;  %3636 = vmatpush1.bf16.msra.mxu1 %v5023_v24 }
 0x187   :  { %3638 = vmatprep.subr.bf16.mxu0 %v4916_v39  ;;  %3670 = vmatprep.subr.bf16.mxu1 %v4918_v43 }
 0x23c   :  { %v617_v46 = vpop.f32.mrb[10].mxu0  ;;  %v688_v47 = vpop.f32.mrb[10].mxu1 }
 0x23d   :  { %v697_v8 = vrot.slane %v617_v46, 6  ;;  %v619_v22 = vpop.f32.mrb[11].mxu0  ;;  %v690_v10 = vpop.f32.mrb[11].mxu1  ;;  %v699_v37 = vrot.slane %v688_v47, 6 }
 0x23e   :  { %v698_v0 = vrot.slane %v619_v22, 6  ;;  %v700_v52 = vrot.slane %v690_v10, 6  ;;  %v729_v10 = vrot.slane %v5110_v17, 6 }
 0x23f   :  { %v705_v36 = vadd.f32 %v697_v8, %v5095_v61  ;;  %v707_v45 = vadd.f32 %v699_v37, %v5104_v31 }
 0x240   :  { %v706_v27 = vadd.f32 %v698_v0, %v5097_v5  ;;  %v708_v30 = vadd.f32 %v700_v52, %v5101_v38 }
 0x241   :  { %v3376_v34 = vmul.f32 -1.442695, %v705_v36 }
 0x242   :  { %v3377_v49 = vmul.f32 -1.442695, %v706_v27  ;;  %v3378_v50 = vmul.f32 -1.442695, %v708_v30 }
 0x243   :  { %4494 = vpow2.f32 %v3376_v34 }
 0x244   :  { %4496 = vpow2.f32 %v3377_v49 }
 0x245   :  { %4498 = vpow2.f32 %v3378_v50 }
 0x246   :  { %4500 = vtanh.f32 %v707_v45 }
 0x24d   :  { %v4495_v56 = vpop.eup %4494 }
 0x24e   :  { %v4497_v46 = vpop.eup %4496  ;;  %v712_v40 = vadd.f32 1.0, %v4495_v56 }
 0x24f   :  { %v718_v22 = vadd.f32 1.0, %v4497_v46  ;;  %v4499_v8 = vpop.eup %4498 }
 0x250   :  { %4502 = vrcp.f32 %v712_v40  ;;  %v4501_v0 = vpop.eup %4500  ;;  %v725_v49 = vadd.f32 1.0, %v4499_v8 }
 0x251   :  { %4504 = vrcp.f32 %v718_v22 }
 0x252   :  { %4506 = vrcp.f32 %v725_v49 }
 0x25a   :  { %v4503_v36 = vpop.eup %4502 }
 0x25b   :  { %v4505_v27 = vpop.eup %4504  ;;  %v732_v34 = vmul.f32 %v4503_v36, %v4501_v0 }
 0x25c   :  { %v731_v47 = vmul.f32 %v4505_v27, %v729_v10  ;;  %v4507_v56 = vpop.eup %4506 }
 0x25e   :  { %v5152_v52 = vadd.f32 %v732_v34, %v731_v47 }
 0x260   :  { %4508 = vtanh.f32 %v5152_v52 }
 0x26a   :  { %v4509_v30 = vpop.eup %4508 }
 0x26b   :  { %v735_v37 = vmul.f32 %v4509_v30, %v4507_v56 }
 0x26d   :  { %v737_v50 = vrot.slane %v735_v37, 2 }
 0x26f   :  { %804 = vmatmul.mubr.f32.vlgmr.msra.gmra.mrb[12].mxu0 %v737_v50  ;;  %875 = vmatmul.mubr.f32.vlgmr.msra.gmra.mrb[12].mxu1 %v737_v50 }
 0x270   :  { %3640 = vmatpush1.bf16.msra.mxu0 %v4920_v51  ;;  %3672 = vmatpush1.bf16.msra.mxu1 %v4923_v53 }
 0x271   :  { %3642 = vmatprep.subr.bf16.mxu0 %v4925_v54  ;;  %3674 = vmatprep.subr.bf16.mxu1 %v4928_v58 }
 0x272   :  { %991 = vmatprep.mubr.f32.mxu0 %v5800_v32  ;;  %1062 = vmatprep.mubr.f32.mxu1 %v5800_v32 }
 0x274   :  { %3644 = vmatpush1.bf16.msra.mxu0 %v4933_v1  ;;  %3676 = vmatpush1.bf16.msra.mxu1 %v4937_v2 }
 0x275   :  { %3646 = vmatprep.subr.bf16.mxu0 %v4939_v3  ;;  %3678 = vmatprep.subr.bf16.mxu1 %v4942_v7 }
 0x278   :  { %3648 = vmatpush1.bf16.msra.mxu0 %v4947_v13  ;;  %3680 = vmatpush1.bf16.msra.mxu1 %v4951_v15 }
 0x279   :  { %3650 = vmatprep.subr.bf16.mxu0 %v4953_v16  ;;  %3682 = vmatprep.subr.bf16.mxu1 %v4956_v20 }
 0x27c   :  { %3652 = vmatpush1.bf16.msra.mxu0 %v4962_v26  ;;  %3684 = vmatpush1.bf16.msra.mxu1 %v4967_v28 }
 0x27d   :  { %3654 = vmatprep.subr.bf16.mxu0 %v4969_v29  ;;  %3686 = vmatprep.subr.bf16.mxu1 %v4972_v33 }
 0x280   :  { %3656 = vmatpush1.bf16.msra.mxu0 %v4978_v41  ;;  %3688 = vmatpush1.bf16.msra.mxu1 %v4983_v42 }
 0x281   :  { %3658 = vmatprep.subr.bf16.mxu0 %v4985_v44  ;;  %3690 = vmatprep.subr.bf16.mxu1 %v4988_v48 }
 0x284   :  { %3660 = vmatpush1.bf16.msra.mxu0 %v4994_v57  ;;  %3692 = vmatpush1.bf16.msra.mxu1 %v4999_v59 }
 0x285   :  { %3662 = vmatprep.subr.bf16.mxu0 %v5001_v60  ;;  %3694 = vmatprep.subr.bf16.mxu1 %v5004_v4 }
 0x288   :  { %3664 = vmatpush1.bf16.msra.mxu0 %v5007_v11  ;;  %3696 = vmatpush1.bf16.msra.mxu1 %v5011_v12 }
 0x289   :  { %3666 = vmatprep.subr.bf16.mxu0 %v5013_v14  ;;  %3698 = vmatprep.subr.bf16.mxu1 %v5016_v19 }
 0x28c   :  { %3668 = vmatpush1.bf16.msra.mxu0 %v5019_v23  ;;  %3700 = vmatpush1.bf16.msra.mxu1 %v5023_v24 }
 0x28d   :  { %3702 = vmatprep.subr.bf16.mxu0 %v4916_v39  ;;  %3734 = vmatprep.subr.bf16.mxu1 %v4918_v43 }
 0x342   :  { %v805_v40 = vpop.f32.mrb[12].mxu0  ;;  %v876_v17 = vpop.f32.mrb[12].mxu1 }
 0x343   :  { %v885_v45 = vrot.slane %v805_v40, 4  ;;  %v807_v46 = vpop.f32.mrb[13].mxu0  ;;  %v878_v22 = vpop.f32.mrb[13].mxu1  ;;  %v887_v47 = vrot.slane %v876_v17, 4 }
 0x344   :  { %v886_v8 = vrot.slane %v807_v46, 4  ;;  %v888_v34 = vrot.slane %v878_v22, 4  ;;  %v917_v22 = vrot.slane %v5152_v52, 6 }
 0x345   :  { %v893_v0 = vadd.f32 %v885_v45, %v5095_v61  ;;  %v895_v30 = vadd.f32 %v887_v47, %v5104_v31 }
 0x346   :  { %v894_v36 = vadd.f32 %v886_v8, %v5097_v5  ;;  %v896_v49 = vadd.f32 %v888_v34, %v5101_v38 }
 0x347   :  { %v3379_v10 = vmul.f32 -1.442695, %v893_v0 }
 0x348   :  { %v3380_v27 = vmul.f32 -1.442695, %v894_v36  ;;  %v3381_v56 = vmul.f32 -1.442695, %v896_v49 }
 0x349   :  { %4510 = vpow2.f32 %v3379_v10 }
 0x34a   :  { %4512 = vpow2.f32 %v3380_v27 }
 0x34b   :  { %4514 = vpow2.f32 %v3381_v56 }
 0x34c   :  { %4516 = vtanh.f32 %v895_v30 }
 0x353   :  { %v4511_v37 = vpop.eup %4510 }
 0x354   :  { %v4513_v50 = vpop.eup %4512  ;;  %v900_v40 = vadd.f32 1.0, %v4511_v37 }
 0x355   :  { %v906_v46 = vadd.f32 1.0, %v4513_v50  ;;  %v4515_v45 = vpop.eup %4514 }
 0x356   :  { %4518 = vrcp.f32 %v900_v40  ;;  %v4517_v8 = vpop.eup %4516  ;;  %v913_v27 = vadd.f32 1.0, %v4515_v45 }
 0x357   :  { %4520 = vrcp.f32 %v906_v46 }
 0x358   :  { %4522 = vrcp.f32 %v913_v27 }
 0x360   :  { %v4519_v0 = vpop.eup %4518 }
 0x361   :  { %v4521_v36 = vpop.eup %4520  ;;  %v920_v10 = vmul.f32 %v4519_v0, %v4517_v8 }
 0x362   :  { %v919_v17 = vmul.f32 %v4521_v36, %v917_v22  ;;  %v4523_v49 = vpop.eup %4522 }
 0x364   :  { %v5194_v34 = vadd.f32 %v920_v10, %v919_v17 }
 0x366   :  { %4524 = vtanh.f32 %v5194_v34 }
 0x370   :  { %v4525_v47 = vpop.eup %4524 }
 0x371   :  { %v923_v56 = vmul.f32 %v4525_v47, %v4523_v49 }
 0x373   :  { %v925_v30 = vrot.slane %v923_v56, 4 }
 0x375   :  { %992 = vmatmul.mubr.f32.vlgmr.msra.gmra.mrb[14].mxu0 %v925_v30  ;;  %1063 = vmatmul.mubr.f32.vlgmr.msra.gmra.mrb[14].mxu1 %v925_v30 }
 0x376   :  { %3704 = vmatpush1.bf16.msra.mxu0 %v4920_v51  ;;  %3736 = vmatpush1.bf16.msra.mxu1 %v4923_v53 }
 0x377   :  { %3706 = vmatprep.subr.bf16.mxu0 %v4925_v54  ;;  %3738 = vmatprep.subr.bf16.mxu1 %v4928_v58 }
 0x378   :  { %1179 = vmatprep.mubr.f32.mxu0 %v5800_v32  ;;  %1250 = vmatprep.mubr.f32.mxu1 %v5800_v32 }
 0x37a   :  { %3708 = vmatpush1.bf16.msra.mxu0 %v4933_v1  ;;  %3740 = vmatpush1.bf16.msra.mxu1 %v4937_v2 }
 0x37b   :  { %3710 = vmatprep.subr.bf16.mxu0 %v4939_v3  ;;  %3742 = vmatprep.subr.bf16.mxu1 %v4942_v7 }
 0x37e   :  { %3712 = vmatpush1.bf16.msra.mxu0 %v4947_v13  ;;  %3744 = vmatpush1.bf16.msra.mxu1 %v4951_v15 }
 0x37f   :  { %3714 = vmatprep.subr.bf16.mxu0 %v4953_v16  ;;  %3746 = vmatprep.subr.bf16.mxu1 %v4956_v20 }
 0x382   :  { %3716 = vmatpush1.bf16.msra.mxu0 %v4962_v26  ;;  %3748 = vmatpush1.bf16.msra.mxu1 %v4967_v28 }
 0x383   :  { %3718 = vmatprep.subr.bf16.mxu0 %v4969_v29  ;;  %3750 = vmatprep.subr.bf16.mxu1 %v4972_v33 }
 0x386   :  { %3720 = vmatpush1.bf16.msra.mxu0 %v4978_v41  ;;  %3752 = vmatpush1.bf16.msra.mxu1 %v4983_v42 }
 0x387   :  { %3722 = vmatprep.subr.bf16.mxu0 %v4985_v44  ;;  %3754 = vmatprep.subr.bf16.mxu1 %v4988_v48 }
 0x38a   :  { %3724 = vmatpush1.bf16.msra.mxu0 %v4994_v57  ;;  %3756 = vmatpush1.bf16.msra.mxu1 %v4999_v59 }
 0x38b   :  { %3726 = vmatprep.subr.bf16.mxu0 %v5001_v60  ;;  %3758 = vmatprep.subr.bf16.mxu1 %v5004_v4 }
 0x38e   :  { %3728 = vmatpush1.bf16.msra.mxu0 %v5007_v11  ;;  %3760 = vmatpush1.bf16.msra.mxu1 %v5011_v12 }
 0x38f   :  { %3730 = vmatprep.subr.bf16.mxu0 %v5013_v14  ;;  %3762 = vmatprep.subr.bf16.mxu1 %v5016_v19 }
 0x392   :  { %3732 = vmatpush1.bf16.msra.mxu0 %v5019_v23  ;;  %3764 = vmatpush1.bf16.msra.mxu1 %v5023_v24 }
 0x393   :  { %3766 = vmatprep.subr.bf16.mxu0 %v4916_v39  ;;  %3798 = vmatprep.subr.bf16.mxu1 %v4918_v43 }
 0x448   :  { %v993_v52 = vpop.f32.mrb[14].mxu0  ;;  %v1064_v37 = vpop.f32.mrb[14].mxu1 }
 0x449   :  { %v1073_v50 = vrot.slane %v993_v52, 2  ;;  %v995_v40 = vpop.f32.mrb[15].mxu0  ;;  %v1066_v46 = vpop.f32.mrb[15].mxu1  ;;  %v1075_v17 = vrot.slane %v1064_v37, 2 }
 0x44a   :  { %v1074_v45 = vrot.slane %v995_v40, 2  ;;  %v1076_v10 = vrot.slane %v1066_v46, 2  ;;  %v1105_v46 = vrot.slane %v5194_v34, 6 }
 0x44b   :  { %v1081_v8 = vadd.f32 %v1073_v50, %v5095_v61  ;;  %v1083_v47 = vadd.f32 %v1075_v17, %v5104_v31 }
 0x44c   :  { %v1082_v0 = vadd.f32 %v1074_v45, %v5097_v5  ;;  %v1084_v27 = vadd.f32 %v1076_v10, %v5101_v38 }
 0x44d   :  { %v3382_v22 = vmul.f32 -1.442695, %v1081_v8 }
 0x44e   :  { %v3383_v36 = vmul.f32 -1.442695, %v1082_v0  ;;  %v3384_v49 = vmul.f32 -1.442695, %v1084_v27 }
 0x44f   :  { %4526 = vpow2.f32 %v3382_v22 }
 0x450   :  { %4528 = vpow2.f32 %v3383_v36 }
 0x451   :  { %4530 = vpow2.f32 %v3384_v49 }
 0x452   :  { %4532 = vtanh.f32 %v1083_v47 }
 0x459   :  { %v4527_v56 = vpop.eup %4526 }
 0x45a   :  { %v4529_v30 = vpop.eup %4528  ;;  %v1088_v52 = vadd.f32 1.0, %v4527_v56 }
 0x45b   :  { %v1094_v40 = vadd.f32 1.0, %v4529_v30  ;;  %v4531_v61 = vpop.eup %4530 }
 0x45c   :  { %4534 = vrcp.f32 %v1088_v52  ;;  %v4533_v5 = vpop.eup %4532  ;;  %v1101_v38 = vadd.f32 1.0, %v4531_v61 }
 0x45d   :  { %4536 = vrcp.f32 %v1094_v40 }
 0x45e   :  { %4538 = vrcp.f32 %v1101_v38 }
 0x466   :  { %v4535_v50 = vpop.eup %4534 }
 0x467   :  { %v4537_v45 = vpop.eup %4536  ;;  %v1108_v8 = vmul.f32 %v4535_v50, %v4533_v5 }
 0x468   :  { %v1107_v37 = vmul.f32 %v4537_v45, %v1105_v46  ;;  %v4539_v31 = vpop.eup %4538 }
 0x46a   :  { %v5236_v0 = vadd.f32 %v1108_v8, %v1107_v37 }
 0x46c   :  { %4540 = vtanh.f32 %v5236_v0 }
 0x476   :  { %v4541_v22 = vpop.eup %4540 }
 0x477   :  { %v1111_v36 = vmul.f32 %v4541_v22, %v4539_v31  ;;  %v1281_v22 = vrot.slane %v5236_v0, 6 }
 0x479   :  { %v1113_v10 = vrot.slane %v1111_v36, 6 }
 0x47b   :  { %1180 = vmatmul.mubr.f32.vlgmr.msra.gmra.mrb[16].mxu0 %v1113_v10  ;;  %1251 = vmatmul.mubr.f32.vlgmr.msra.gmra.mrb[16].mxu1 %v1113_v10 }
 0x47c   :  { %3768 = vmatpush1.bf16.msra.mxu0 %v4920_v51  ;;  %3800 = vmatpush1.bf16.msra.mxu1 %v4923_v53 }
 0x47d   :  { %3770 = vmatprep.subr.bf16.mxu0 %v4925_v54  ;;  %3802 = vmatprep.subr.bf16.mxu1 %v4928_v58 }
 0x47e   :  { %1352 = vmatprep.mubr.f32.mxu0 %v5800_v32  ;;  %1423 = vmatprep.mubr.f32.mxu1 %v5800_v32 }
 0x480   :  { %3772 = vmatpush1.bf16.msra.mxu0 %v4933_v1  ;;  %3804 = vmatpush1.bf16.msra.mxu1 %v4937_v2 }
 0x481   :  { %3774 = vmatprep.subr.bf16.mxu0 %v4939_v3  ;;  %3806 = vmatprep.subr.bf16.mxu1 %v4942_v7 }
 0x484   :  { %3776 = vmatpush1.bf16.msra.mxu0 %v4947_v13  ;;  %3808 = vmatpush1.bf16.msra.mxu1 %v4951_v15 }
 0x485   :  { %3778 = vmatprep.subr.bf16.mxu0 %v4953_v16  ;;  %3810 = vmatprep.subr.bf16.mxu1 %v4956_v20 }
 0x488   :  { %3780 = vmatpush1.bf16.msra.mxu0 %v4962_v26  ;;  %3812 = vmatpush1.bf16.msra.mxu1 %v4967_v28 }
 0x489   :  { %3782 = vmatprep.subr.bf16.mxu0 %v4969_v29  ;;  %3814 = vmatprep.subr.bf16.mxu1 %v4972_v33 }
 0x48c   :  { %3784 = vmatpush1.bf16.msra.mxu0 %v4978_v41  ;;  %3816 = vmatpush1.bf16.msra.mxu1 %v4983_v42 }
 0x48d   :  { %3786 = vmatprep.subr.bf16.mxu0 %v4985_v44  ;;  %3818 = vmatprep.subr.bf16.mxu1 %v4988_v48 }
 0x490   :  { %3788 = vmatpush1.bf16.msra.mxu0 %v4994_v57  ;;  %3820 = vmatpush1.bf16.msra.mxu1 %v4999_v59 }
 0x491   :  { %3790 = vmatprep.subr.bf16.mxu0 %v5001_v60  ;;  %3822 = vmatprep.subr.bf16.mxu1 %v5004_v4 }
 0x494   :  { %3792 = vmatpush1.bf16.msra.mxu0 %v5007_v11  ;;  %3824 = vmatpush1.bf16.msra.mxu1 %v5011_v12 }
 0x495   :  { %3794 = vmatprep.subr.bf16.mxu0 %v5013_v14  ;;  %3826 = vmatprep.subr.bf16.mxu1 %v5016_v19 }
 0x498   :  { %3796 = vmatpush1.bf16.msra.mxu0 %v5019_v23  ;;  %3828 = vmatpush1.bf16.msra.mxu1 %v5023_v24 }
 0x499   :  { %3830 = vmatprep.subr.bf16.mxu0 %v4916_v39  ;;  %3862 = vmatprep.subr.bf16.mxu1 %v4918_v43 }
 0x54e   :  { %v1181_v34 = vpop.f32.mrb[16].mxu0  ;;  %v1252_v27 = vpop.f32.mrb[16].mxu1 }
 0x54f   :  { %v1257_v17 = vadd.f32 %v1181_v34, %v5071_v55  ;;  %v1183_v49 = vpop.f32.mrb[17].mxu0  ;;  %v1254_v47 = vpop.f32.mrb[17].mxu1  ;;  %v1259_v5 = vadd.f32 %v1252_v27, %v5075_v63 }
 0x550   :  { %v1258_v56 = vadd.f32 %v1183_v49, %v5073_v62  ;;  %v1260_v40 = vadd.f32 %v1254_v47, %v5077_v6 }
 0x551   :  { %v3385_v30 = vmul.f32 -1.442695, %v1257_v17 }
 0x552   :  { %v3386_v52 = vmul.f32 -1.442695, %v1258_v56  ;;  %v3387_v61 = vmul.f32 -1.442695, %v1260_v40 }
 0x553   :  { %4542 = vpow2.f32 %v3385_v30 }
 0x554   :  { %4544 = vpow2.f32 %v3386_v52 }
 0x555   :  { %4546 = vpow2.f32 %v3387_v61 }
 0x556   :  { %4548 = vtanh.f32 %v1259_v5 }
 0x55d   :  { %v4543_v50 = vpop.eup %4542 }
 0x55e   :  { %v4545_v46 = vpop.eup %4544  ;;  %v1264_v45 = vadd.f32 1.0, %v4543_v50 }
 0x55f   :  { %v1270_v8 = vadd.f32 1.0, %v4545_v46  ;;  %v4547_v38 = vpop.eup %4546 }
 0x560   :  { %4550 = vrcp.f32 %v1264_v45  ;;  %v4549_v37 = vpop.eup %4548  ;;  %v1277_v34 = vadd.f32 1.0, %v4547_v38 }
 0x561   :  { %4552 = vrcp.f32 %v1270_v8 }
 0x562   :  { %4554 = vrcp.f32 %v1277_v34 }
 0x56a   :  { %v4551_v31 = vpop.eup %4550 }
 0x56b   :  { %v4553_v36 = vpop.eup %4552  ;;  %v1284_v10 = vmul.f32 %v4551_v31, %v4549_v37 }
 0x56c   :  { %v1283_v17 = vmul.f32 %v4553_v36, %v1281_v22  ;;  %v4555_v27 = vpop.eup %4554 }
 0x56e   :  { %v5278_v49 = vadd.f32 %v1284_v10, %v1283_v17 }
 0x570   :  { %4556 = vtanh.f32 %v5278_v49 }
 0x57a   :  { %v4557_v47 = vpop.eup %4556 }
 0x57b   :  { %v1287_v56 = vmul.f32 %v4557_v47, %v4555_v27 }
 0x57d   :  { %1353 = vmatmul.mubr.f32.vlgmr.msra.gmra.mrb[18].mxu0 %v1287_v56  ;;  %1424 = vmatmul.mubr.f32.vlgmr.msra.gmra.mrb[18].mxu1 %v1287_v56 }
 0x57e   :  { %3832 = vmatpush1.bf16.msra.mxu0 %v4920_v51  ;;  %3864 = vmatpush1.bf16.msra.mxu1 %v4923_v53 }
 0x57f   :  { %3834 = vmatprep.subr.bf16.mxu0 %v4925_v54  ;;  %3866 = vmatprep.subr.bf16.mxu1 %v4928_v58 }
 0x580   :  { %1540 = vmatprep.mubr.f32.mxu0 %v5800_v32  ;;  %1611 = vmatprep.mubr.f32.mxu1 %v5800_v32 }
 0x582   :  { %3836 = vmatpush1.bf16.msra.mxu0 %v4933_v1  ;;  %3868 = vmatpush1.bf16.msra.mxu1 %v4937_v2 }
 0x583   :  { %3838 = vmatprep.subr.bf16.mxu0 %v4939_v3  ;;  %3870 = vmatprep.subr.bf16.mxu1 %v4942_v7 }
 0x586   :  { %3840 = vmatpush1.bf16.msra.mxu0 %v4947_v13  ;;  %3872 = vmatpush1.bf16.msra.mxu1 %v4951_v15 }
 0x587   :  { %3842 = vmatprep.subr.bf16.mxu0 %v4953_v16  ;;  %3874 = vmatprep.subr.bf16.mxu1 %v4956_v20 }
 0x58a   :  { %3844 = vmatpush1.bf16.msra.mxu0 %v4962_v26  ;;  %3876 = vmatpush1.bf16.msra.mxu1 %v4967_v28 }
 0x58b   :  { %3846 = vmatprep.subr.bf16.mxu0 %v4969_v29  ;;  %3878 = vmatprep.subr.bf16.mxu1 %v4972_v33 }
 0x58e   :  { %3848 = vmatpush1.bf16.msra.mxu0 %v4978_v41  ;;  %3880 = vmatpush1.bf16.msra.mxu1 %v4983_v42 }
 0x58f   :  { %3850 = vmatprep.subr.bf16.mxu0 %v4985_v44  ;;  %3882 = vmatprep.subr.bf16.mxu1 %v4988_v48 }
 0x592   :  { %3852 = vmatpush1.bf16.msra.mxu0 %v4994_v57  ;;  %3884 = vmatpush1.bf16.msra.mxu1 %v4999_v59 }
 0x593   :  { %3854 = vmatprep.subr.bf16.mxu0 %v5001_v60  ;;  %3886 = vmatprep.subr.bf16.mxu1 %v5004_v4 }
 0x596   :  { %3856 = vmatpush1.bf16.msra.mxu0 %v5007_v11  ;;  %3888 = vmatpush1.bf16.msra.mxu1 %v5011_v12 }
 0x597   :  { %3858 = vmatprep.subr.bf16.mxu0 %v5013_v14  ;;  %3890 = vmatprep.subr.bf16.mxu1 %v5016_v19 }
 0x59a   :  { %3860 = vmatpush1.bf16.msra.mxu0 %v5019_v23  ;;  %3892 = vmatpush1.bf16.msra.mxu1 %v5023_v24 }
 0x59b   :  { %3894 = vmatprep.subr.bf16.mxu0 %v4916_v39  ;;  %3926 = vmatprep.subr.bf16.mxu1 %v4918_v43 }
 0x650   :  { %v1354_v0 = vpop.f32.mrb[18].mxu0  ;;  %v1425_v30 = vpop.f32.mrb[18].mxu1 }
 0x651   :  { %v1434_v52 = vrot.slane %v1354_v0, 6  ;;  %v1356_v40 = vpop.f32.mrb[19].mxu0  ;;  %v1427_v61 = vpop.f32.mrb[19].mxu1  ;;  %v1436_v31 = vrot.slane %v1425_v30, 6 }
 0x652   :  { %v1435_v5 = vrot.slane %v1356_v40, 6  ;;  %v1437_v38 = vrot.slane %v1427_v61, 6 }
 0x653   :  { %v1442_v50 = vadd.f32 %v1434_v52, %v5071_v55  ;;  %v1444_v36 = vadd.f32 %v1436_v31, %v5075_v63  ;;  %v1466_v52 = vrot.slane %v5278_v49, 6 }
 0x654   :  { %v1443_v46 = vadd.f32 %v1435_v5, %v5073_v62  ;;  %v1445_v37 = vadd.f32 %v1437_v38, %v5077_v6 }
 0x655   :  { %v3388_v45 = vmul.f32 -1.442695, %v1442_v50 }
 0x656   :  { %v3389_v8 = vmul.f32 -1.442695, %v1443_v46  ;;  %v3390_v22 = vmul.f32 -1.442695, %v1445_v37 }
 0x657   :  { %4558 = vpow2.f32 %v3388_v45 }
 0x658   :  { %4560 = vpow2.f32 %v3389_v8 }
 0x659   :  { %4562 = vpow2.f32 %v3390_v22 }
 0x65a   :  { %4564 = vtanh.f32 %v1444_v36 }
 0x661   :  { %v4559_v10 = vpop.eup %4558 }
 0x662   :  { %v4561_v34 = vpop.eup %4560  ;;  %v1449_v17 = vadd.f32 1.0, %v4559_v10 }
 0x663   :  { %v1455_v27 = vadd.f32 1.0, %v4561_v34  ;;  %v4563_v47 = vpop.eup %4562 }
 0x664   :  { %4566 = vrcp.f32 %v1449_v17  ;;  %v4565_v56 = vpop.eup %4564  ;;  %v1462_v5 = vadd.f32 1.0, %v4563_v47 }
 0x665   :  { %4568 = vrcp.f32 %v1455_v27 }
 0x666   :  { %4570 = vrcp.f32 %v1462_v5 }
 0x66e   :  { %v4567_v0 = vpop.eup %4566 }
 0x66f   :  { %v4569_v40 = vpop.eup %4568  ;;  %v1469_v61 = vmul.f32 %v4567_v0, %v4565_v56 }
 0x670   :  { %v1468_v30 = vmul.f32 %v4569_v40, %v1466_v52  ;;  %v4571_v46 = vpop.eup %4570 }
 0x672   :  { %v5320_v50 = vadd.f32 %v1469_v61, %v1468_v30 }
 0x674   :  { %4572 = vtanh.f32 %v5320_v50 }
 0x67e   :  { %v4573_v45 = vpop.eup %4572 }
 0x67f   :  { %v1472_v8 = vmul.f32 %v4573_v45, %v4571_v46 }
 0x681   :  { %v1474_v38 = vrot.slane %v1472_v8, 2 }
 0x683   :  { %1541 = vmatmul.mubr.f32.vlgmr.msra.gmra.mrb[20].mxu0 %v1474_v38  ;;  %1612 = vmatmul.mubr.f32.vlgmr.msra.gmra.mrb[20].mxu1 %v1474_v38 }
 0x684   :  { %3896 = vmatpush1.bf16.msra.mxu0 %v4920_v51  ;;  %3928 = vmatpush1.bf16.msra.mxu1 %v4923_v53 }
 0x685   :  { %3898 = vmatprep.subr.bf16.mxu0 %v4925_v54  ;;  %3930 = vmatprep.subr.bf16.mxu1 %v4928_v58 }
 0x686   :  { %1728 = vmatprep.mubr.f32.mxu0 %v5800_v32  ;;  %1799 = vmatprep.mubr.f32.mxu1 %v5800_v32 }
 0x688   :  { %3900 = vmatpush1.bf16.msra.mxu0 %v4933_v1  ;;  %3932 = vmatpush1.bf16.msra.mxu1 %v4937_v2 }
 0x689   :  { %3902 = vmatprep.subr.bf16.mxu0 %v4939_v3  ;;  %3934 = vmatprep.subr.bf16.mxu1 %v4942_v7 }
 0x68c   :  { %3904 = vmatpush1.bf16.msra.mxu0 %v4947_v13  ;;  %3936 = vmatpush1.bf16.msra.mxu1 %v4951_v15 }
 0x68d   :  { %3906 = vmatprep.subr.bf16.mxu0 %v4953_v16  ;;  %3938 = vmatprep.subr.bf16.mxu1 %v4956_v20 }
 0x690   :  { %3908 = vmatpush1.bf16.msra.mxu0 %v4962_v26  ;;  %3940 = vmatpush1.bf16.msra.mxu1 %v4967_v28 }
 0x691   :  { %3910 = vmatprep.subr.bf16.mxu0 %v4969_v29  ;;  %3942 = vmatprep.subr.bf16.mxu1 %v4972_v33 }
 0x694   :  { %3912 = vmatpush1.bf16.msra.mxu0 %v4978_v41  ;;  %3944 = vmatpush1.bf16.msra.mxu1 %v4983_v42 }
 0x695   :  { %3914 = vmatprep.subr.bf16.mxu0 %v4985_v44  ;;  %3946 = vmatprep.subr.bf16.mxu1 %v4988_v48 }
 0x698   :  { %3916 = vmatpush1.bf16.msra.mxu0 %v4994_v57  ;;  %3948 = vmatpush1.bf16.msra.mxu1 %v4999_v59 }
 0x699   :  { %3918 = vmatprep.subr.bf16.mxu0 %v5001_v60  ;;  %3950 = vmatprep.subr.bf16.mxu1 %v5004_v4 }
 0x69c   :  { %3920 = vmatpush1.bf16.msra.mxu0 %v5007_v11  ;;  %3952 = vmatpush1.bf16.msra.mxu1 %v5011_v12 }
 0x69d   :  { %3922 = vmatprep.subr.bf16.mxu0 %v5013_v14  ;;  %3954 = vmatprep.subr.bf16.mxu1 %v5016_v19 }
 0x6a0   :  { %3924 = vmatpush1.bf16.msra.mxu0 %v5019_v23  ;;  %3956 = vmatpush1.bf16.msra.mxu1 %v5023_v24 }
 0x6a1   :  { %3958 = vmatprep.subr.bf16.mxu0 %v4916_v39  ;;  %3990 = vmatprep.subr.bf16.mxu1 %v4918_v43 }
 0x756   :  { %v1542_v49 = vpop.f32.mrb[20].mxu0  ;;  %v1613_v37 = vpop.f32.mrb[20].mxu1 }
 0x757   :  { %v1622_v31 = vrot.slane %v1542_v49, 4  ;;  %v1544_v22 = vpop.f32.mrb[21].mxu0  ;;  %v1615_v36 = vpop.f32.mrb[21].mxu1  ;;  %v1624_v52 = vrot.slane %v1613_v37, 4 }
 0x758   :  { %v1623_v10 = vrot.slane %v1544_v22, 4  ;;  %v1625_v56 = vrot.slane %v1615_v36, 4 }
 0x759   :  { %v1630_v34 = vadd.f32 %v1622_v31, %v5071_v55  ;;  %v1632_v61 = vadd.f32 %v1624_v52, %v5075_v63  ;;  %v1654_v31 = vrot.slane %v5320_v50, 6 }
 0x75a   :  { %v1631_v17 = vadd.f32 %v1623_v10, %v5073_v62  ;;  %v1633_v0 = vadd.f32 %v1625_v56, %v5077_v6 }
 0x75b   :  { %v3391_v27 = vmul.f32 -1.442695, %v1630_v34 }
 0x75c   :  { %v3392_v47 = vmul.f32 -1.442695, %v1631_v17  ;;  %v3393_v40 = vmul.f32 -1.442695, %v1633_v0 }
 0x75d   :  { %4574 = vpow2.f32 %v3391_v27 }
 0x75e   :  { %4576 = vpow2.f32 %v3392_v47 }
 0x75f   :  { %4578 = vpow2.f32 %v3393_v40 }
 0x760   :  { %4580 = vtanh.f32 %v1632_v61 }
 0x767   :  { %v4575_v5 = vpop.eup %4574 }
 0x768   :  { %v4577_v30 = vpop.eup %4576  ;;  %v1637_v46 = vadd.f32 1.0, %v4575_v5 }
 0x769   :  { %v1643_v45 = vadd.f32 1.0, %v4577_v30  ;;  %v4579_v8 = vpop.eup %4578 }
 0x76a   :  { %4582 = vrcp.f32 %v1637_v46  ;;  %v4581_v38 = vpop.eup %4580  ;;  %v1650_v10 = vadd.f32 1.0, %v4579_v8 }
 0x76b   :  { %4584 = vrcp.f32 %v1643_v45 }
 0x76c   :  { %4586 = vrcp.f32 %v1650_v10 }
 0x774   :  { %v4583_v49 = vpop.eup %4582 }
 0x775   :  { %v4585_v22 = vpop.eup %4584  ;;  %v1657_v36 = vmul.f32 %v4583_v49, %v4581_v38 }
 0x776   :  { %v1656_v37 = vmul.f32 %v4585_v22, %v1654_v31  ;;  %v4587_v17 = vpop.eup %4586 }
 0x778   :  { %v5362_v34 = vadd.f32 %v1657_v36, %v1656_v37 }
 0x77a   :  { %4588 = vtanh.f32 %v5362_v34 }
 0x784   :  { %v4589_v27 = vpop.eup %4588 }
 0x785   :  { %v1660_v47 = vmul.f32 %v4589_v27, %v4587_v17 }
 0x787   :  { %v1662_v56 = vrot.slane %v1660_v47, 4 }
 0x789   :  { %1729 = vmatmul.mubr.f32.vlgmr.msra.gmra.mrb[22].mxu0 %v1662_v56  ;;  %1800 = vmatmul.mubr.f32.vlgmr.msra.gmra.mrb[22].mxu1 %v1662_v56  ;;  %v1842_v56 = vrot.slane %v5362_v34, 6 }
 0x78a   :  { %3960 = vmatpush1.bf16.msra.mxu0 %v4920_v51  ;;  %3992 = vmatpush1.bf16.msra.mxu1 %v4923_v53 }
 0x78b   :  { %3962 = vmatprep.subr.bf16.mxu0 %v4925_v54  ;;  %3994 = vmatprep.subr.bf16.mxu1 %v4928_v58 }
 0x78c   :  { %1916 = vmatprep.mubr.f32.mxu0 %v5800_v32  ;;  %1987 = vmatprep.mubr.f32.mxu1 %v5800_v32 }
 0x78e   :  { %3964 = vmatpush1.bf16.msra.mxu0 %v4933_v1  ;;  %3996 = vmatpush1.bf16.msra.mxu1 %v4937_v2 }
 0x78f   :  { %3966 = vmatprep.subr.bf16.mxu0 %v4939_v3  ;;  %3998 = vmatprep.subr.bf16.mxu1 %v4942_v7 }
 0x792   :  { %3968 = vmatpush1.bf16.msra.mxu0 %v4947_v13  ;;  %4000 = vmatpush1.bf16.msra.mxu1 %v4951_v15 }
 0x793   :  { %3970 = vmatprep.subr.bf16.mxu0 %v4953_v16  ;;  %4002 = vmatprep.subr.bf16.mxu1 %v4956_v20 }
 0x796   :  { %3972 = vmatpush1.bf16.msra.mxu0 %v4962_v26  ;;  %4004 = vmatpush1.bf16.msra.mxu1 %v4967_v28 }
 0x797   :  { %3974 = vmatprep.subr.bf16.mxu0 %v4969_v29  ;;  %4006 = vmatprep.subr.bf16.mxu1 %v4972_v33 }
 0x79a   :  { %3976 = vmatpush1.bf16.msra.mxu0 %v4978_v41  ;;  %4008 = vmatpush1.bf16.msra.mxu1 %v4983_v42 }
 0x79b   :  { %3978 = vmatprep.subr.bf16.mxu0 %v4985_v44  ;;  %4010 = vmatprep.subr.bf16.mxu1 %v4988_v48 }
 0x79e   :  { %3980 = vmatpush1.bf16.msra.mxu0 %v4994_v57  ;;  %4012 = vmatpush1.bf16.msra.mxu1 %v4999_v59 }
 0x79f   :  { %3982 = vmatprep.subr.bf16.mxu0 %v5001_v60  ;;  %4014 = vmatprep.subr.bf16.mxu1 %v5004_v4 }
 0x7a2   :  { %3984 = vmatpush1.bf16.msra.mxu0 %v5007_v11  ;;  %4016 = vmatpush1.bf16.msra.mxu1 %v5011_v12 }
 0x7a3   :  { %3986 = vmatprep.subr.bf16.mxu0 %v5013_v14  ;;  %4018 = vmatprep.subr.bf16.mxu1 %v5016_v19 }
 0x7a6   :  { %3988 = vmatpush1.bf16.msra.mxu0 %v5019_v23  ;;  %4020 = vmatpush1.bf16.msra.mxu1 %v5023_v24 }
 0x7a7   :  { %4022 = vmatprep.subr.bf16.mxu0 %v4916_v39  ;;  %4054 = vmatprep.subr.bf16.mxu1 %v4918_v43 }
 0x85c   :  { %v1730_v50 = vpop.f32.mrb[22].mxu0  ;;  %v1801_v0 = vpop.f32.mrb[22].mxu1 }
 0x85d   :  { %v1810_v52 = vrot.slane %v1730_v50, 2  ;;  %v1732_v40 = vpop.f32.mrb[23].mxu0  ;;  %v1803_v61 = vpop.f32.mrb[23].mxu1  ;;  %v1812_v31 = vrot.slane %v1801_v0, 2 }
 0x85e   :  { %v1811_v5 = vrot.slane %v1732_v40, 2  ;;  %v1813_v38 = vrot.slane %v1803_v61, 2 }
 0x85f   :  { %v1818_v30 = vadd.f32 %v1810_v52, %v5071_v55  ;;  %v1820_v36 = vadd.f32 %v1812_v31, %v5075_v63 }
 0x860   :  { %v1819_v46 = vadd.f32 %v1811_v5, %v5073_v62  ;;  %v1821_v49 = vadd.f32 %v1813_v38, %v5077_v6 }
 0x861   :  { %v3394_v45 = vmul.f32 -1.442695, %v1818_v30 }
 0x862   :  { %v3395_v8 = vmul.f32 -1.442695, %v1819_v46  ;;  %v3396_v22 = vmul.f32 -1.442695, %v1821_v49 }
 0x863   :  { %4590 = vpow2.f32 %v3394_v45 }
 0x864   :  { %4592 = vpow2.f32 %v3395_v8 }
 0x865   :  { %4594 = vpow2.f32 %v3396_v22 }
 0x866   :  { %4596 = vtanh.f32 %v1820_v36 }
 0x86d   :  { %v4591_v10 = vpop.eup %4590 }
 0x86e   :  { %v4593_v37 = vpop.eup %4592  ;;  %v1825_v17 = vadd.f32 1.0, %v4591_v10 }
 0x86f   :  { %v1831_v27 = vadd.f32 1.0, %v4593_v37  ;;  %v4595_v55 = vpop.eup %4594 }
 0x870   :  { %4598 = vrcp.f32 %v1825_v17  ;;  %v4597_v62 = vpop.eup %4596  ;;  %v1838_v6 = vadd.f32 1.0, %v4595_v55 }
 0x871   :  { %4600 = vrcp.f32 %v1831_v27 }
 0x872   :  { %4602 = vrcp.f32 %v1838_v6 }
 0x87a   :  { %v4599_v47 = vpop.eup %4598 }
 0x87b   :  { %v4601_v50 = vpop.eup %4600  ;;  %v1845_v52 = vmul.f32 %v4599_v47, %v4597_v62 }
 0x87c   :  { %v1844_v0 = vmul.f32 %v4601_v50, %v1842_v56  ;;  %v4603_v63 = vpop.eup %4602 }
 0x87e   :  { %v5404_v40 = vadd.f32 %v1845_v52, %v1844_v0 }
 0x880   :  { %4604 = vtanh.f32 %v5404_v40  ;;  %v5453_v52 = vrot.slane %v5404_v40, 6 }
 0x88a   :  { %v4605_v61 = vpop.eup %4604 }
 0x88b   :  { %v5407_v5 = vmul.f32 %v4605_v61, %v4603_v63 }
 0x88d   :  { %v5410_v30 = vrot.slane %v5407_v5, 6 }
 0x88f   :  { %1917 = vmatmul.mubr.f32.vlgmr.msra.gmra.mrb[24].mxu0 %v5410_v30  ;;  %1988 = vmatmul.mubr.f32.vlgmr.msra.gmra.mrb[24].mxu1 %v5410_v30 }
 0x890   :  { %4024 = vmatpush1.bf16.msra.mxu0 %v4920_v51  ;;  %4056 = vmatpush1.bf16.msra.mxu1 %v4923_v53 }
 0x891   :  { %4026 = vmatprep.subr.bf16.mxu0 %v4925_v54  ;;  %4058 = vmatprep.subr.bf16.mxu1 %v4928_v58 }
 0x892   :  { %2093 = vmatprep.mubr.f32.mxu0 %v5800_v32  ;;  %2164 = vmatprep.mubr.f32.mxu1 %v5800_v32 }
 0x894   :  { %4028 = vmatpush1.bf16.msra.mxu0 %v4933_v1  ;;  %4060 = vmatpush1.bf16.msra.mxu1 %v4937_v2 }
 0x895   :  { %4030 = vmatprep.subr.bf16.mxu0 %v4939_v3  ;;  %4062 = vmatprep.subr.bf16.mxu1 %v4942_v7 }
 0x898   :  { %4032 = vmatpush1.bf16.msra.mxu0 %v4947_v13  ;;  %4064 = vmatpush1.bf16.msra.mxu1 %v4951_v15 }
 0x899   :  { %4034 = vmatprep.subr.bf16.mxu0 %v4953_v16  ;;  %4066 = vmatprep.subr.bf16.mxu1 %v4956_v20 }
 0x89c   :  { %4036 = vmatpush1.bf16.msra.mxu0 %v4962_v26  ;;  %4068 = vmatpush1.bf16.msra.mxu1 %v4967_v28 }
 0x89d   :  { %4038 = vmatprep.subr.bf16.mxu0 %v4969_v29  ;;  %4070 = vmatprep.subr.bf16.mxu1 %v4972_v33 }
 0x8a0   :  { %4040 = vmatpush1.bf16.msra.mxu0 %v4978_v41  ;;  %4072 = vmatpush1.bf16.msra.mxu1 %v4983_v42 }
 0x8a1   :  { %4042 = vmatprep.subr.bf16.mxu0 %v4985_v44  ;;  %4074 = vmatprep.subr.bf16.mxu1 %v4988_v48 }
 0x8a4   :  { %4044 = vmatpush1.bf16.msra.mxu0 %v4994_v57  ;;  %4076 = vmatpush1.bf16.msra.mxu1 %v4999_v59 }
 0x8a5   :  { %4046 = vmatprep.subr.bf16.mxu0 %v5001_v60  ;;  %4078 = vmatprep.subr.bf16.mxu1 %v5004_v4 }
 0x8a8   :  { %4048 = vmatpush1.bf16.msra.mxu0 %v5007_v11  ;;  %4080 = vmatpush1.bf16.msra.mxu1 %v5011_v12 }
 0x8a9   :  { %4050 = vmatprep.subr.bf16.mxu0 %v5013_v14  ;;  %4082 = vmatprep.subr.bf16.mxu1 %v5016_v19 }
 0x8ac   :  { %4052 = vmatpush1.bf16.msra.mxu0 %v5019_v23  ;;  %4084 = vmatpush1.bf16.msra.mxu1 %v5023_v24 }
 0x8ad   :  { %4086 = vmatprep.subr.bf16.mxu0 %v4916_v39  ;;  %4118 = vmatprep.subr.bf16.mxu1 %v4918_v43 }
 0x962   :  { %v1918_v34 = vpop.f32.mrb[24].mxu0  ;;  %v1989_v46 = vpop.f32.mrb[24].mxu1 }
 0x963   :  { %v1994_v45 = vadd.f32 %v1918_v34, %v5079_v9  ;;  %v1920_v8 = vpop.f32.mrb[25].mxu0  ;;  %v1991_v38 = vpop.f32.mrb[25].mxu1  ;;  %v1996_v37 = vadd.f32 %v1989_v46, %v5083_v21  ;;  %v5801_v46 = vlaneseq }
 0x964   :  { %v1995_v49 = vadd.f32 %v1920_v8, %v5081_v18  ;;  %v1997_v36 = vadd.f32 %v1991_v38, %v5085_v25 }
 0x965   :  { %v3397_v31 = vmul.f32 -1.442695, %v1994_v45  ;;  %v309_v45 = vand.u32 127, %v5801_v46 }
 0x966   :  { %v3398_v22 = vmul.f32 -1.442695, %v1995_v49  ;;  %v3399_v10 = vmul.f32 -1.442695, %v1997_v36 }
 0x967   :  { %4606 = vpow2.f32 %v3397_v31  ;;  %vm310_vm1 = vcmp.ge.s32.totalorder %v309_v45, 64  ;;  %vm311_vm2 = vcmp.lt.s32.totalorder %v309_v45, 96  ;;  %vm313_vm4 = vcmp.ge.s32.totalorder %v309_v45, 96 }
 0x968   :  { %4608 = vpow2.f32 %v3398_v22  ;;  %vm312_vm3 = vmand %vm310_vm1, %vm311_vm2 }
 0x969   :  { %4610 = vpow2.f32 %v3399_v10  ;;  %vm5460_vm5 = vmor %vm312_vm3, %vm313_vm4 }
 0x96a   :  { %4612 = vtanh.f32 %v1996_v37 }
 0x971   :  { %v4607_v17 = vpop.eup %4606 }
 0x972   :  { %v4609_v27 = vpop.eup %4608  ;;  %v2001_v55 = vadd.f32 1.0, %v4607_v17 }
 0x973   :  { %v2007_v62 = vadd.f32 1.0, %v4609_v27  ;;  %v4611_v47 = vpop.eup %4610 }
 0x974   :  { %4614 = vrcp.f32 %v2001_v55  ;;  %v4613_v56 = vpop.eup %4612  ;;  %v2014_v63 = vadd.f32 1.0, %v4611_v47 }
 0x975   :  { %4616 = vrcp.f32 %v2007_v62 }
 0x976   :  { %4618 = vrcp.f32 %v2014_v63 }
 0x97e   :  { %v4615_v50 = vpop.eup %4614 }
 0x97f   :  { %v4617_v6 = vpop.eup %4616  ;;  %v2021_v0 = vmul.f32 %v4615_v50, %v4613_v56 }
 0x980   :  { %v2020_v61 = vmul.f32 %v4617_v6, %v5453_v52  ;;  %v4619_v8 = vpop.eup %4618 }
 0x982   :  { %v5456_v34 = vadd.f32 %v2021_v0, %v2020_v61 }
 0x984   :  { %4620 = vtanh.f32 %v5456_v34 }
 0x98e   :  { %v4621_v38 = vpop.eup %4620 }
 0x98f   :  { %v2024_v49 = vmul.f32 %v4621_v38, %v4619_v8 }
 0x991   :  { %v2027_v22 = vsel %vm5460_vm5, %v2024_v49, %v5410_v30 }
 0x992   :  { %2094 = vmatmul.mubr.f32.vlgmr.msra.gmra.mrb[26].mxu0 %v2027_v22  ;;  %2165 = vmatmul.mubr.f32.vlgmr.msra.gmra.mrb[26].mxu1 %v2027_v22  ;;  %v2028_v22 = vsel %vm5460_vm5, %v5456_v34, %v5453_v52 }
 0x993   :  { %4088 = vmatpush1.bf16.msra.mxu0 %v4920_v51  ;;  %4120 = vmatpush1.bf16.msra.mxu1 %v4923_v53 }
 0x994   :  { %4090 = vmatprep.subr.bf16.mxu0 %v4925_v54  ;;  %4122 = vmatprep.subr.bf16.mxu1 %v4928_v58 }
 0x995   :  { %2287 = vmatprep.mubr.f32.mxu0 %v5800_v32  ;;  %2358 = vmatprep.mubr.f32.mxu1 %v5800_v32 }
 0x997   :  { %4092 = vmatpush1.bf16.msra.mxu0 %v4933_v1  ;;  %4124 = vmatpush1.bf16.msra.mxu1 %v4937_v2 }
 0x998   :  { %4094 = vmatprep.subr.bf16.mxu0 %v4939_v3  ;;  %4126 = vmatprep.subr.bf16.mxu1 %v4942_v7 }
 0x99b   :  { %4096 = vmatpush1.bf16.msra.mxu0 %v4947_v13  ;;  %4128 = vmatpush1.bf16.msra.mxu1 %v4951_v15 }
 0x99c   :  { %4098 = vmatprep.subr.bf16.mxu0 %v4953_v16  ;;  %4130 = vmatprep.subr.bf16.mxu1 %v4956_v20 }
 0x99f   :  { %4100 = vmatpush1.bf16.msra.mxu0 %v4962_v26  ;;  %4132 = vmatpush1.bf16.msra.mxu1 %v4967_v28 }
 0x9a0   :  { %4102 = vmatprep.subr.bf16.mxu0 %v4969_v29  ;;  %4134 = vmatprep.subr.bf16.mxu1 %v4972_v33 }
 0x9a3   :  { %4104 = vmatpush1.bf16.msra.mxu0 %v4978_v41  ;;  %4136 = vmatpush1.bf16.msra.mxu1 %v4983_v42 }
 0x9a4   :  { %4106 = vmatprep.subr.bf16.mxu0 %v4985_v44  ;;  %4138 = vmatprep.subr.bf16.mxu1 %v4988_v48 }
 0x9a7   :  { %4108 = vmatpush1.bf16.msra.mxu0 %v4994_v57  ;;  %4140 = vmatpush1.bf16.msra.mxu1 %v4999_v59 }
 0x9a8   :  { %4110 = vmatprep.subr.bf16.mxu0 %v5001_v60  ;;  %4142 = vmatprep.subr.bf16.mxu1 %v5004_v4 }
 0x9ab   :  { %4112 = vmatpush1.bf16.msra.mxu0 %v5007_v11  ;;  %4144 = vmatpush1.bf16.msra.mxu1 %v5011_v12 }
 0x9ac   :  { %4114 = vmatprep.subr.bf16.mxu0 %v5013_v14  ;;  %4146 = vmatprep.subr.bf16.mxu1 %v5016_v19 }
 0x9af   :  { %4116 = vmatpush1.bf16.msra.mxu0 %v5019_v23  ;;  %4148 = vmatpush1.bf16.msra.mxu1 %v5023_v24 }
 0x9b0   :  { %4150 = vmatprep.subr.bf16.mxu0 %v4916_v39  ;;  %4182 = vmatprep.subr.bf16.mxu1 %v4918_v43 }
 0xa65   :  { %v2095_v36 = vpop.f32.mrb[26].mxu0  ;;  %v2166_v10 = vpop.f32.mrb[26].mxu1 }
 0xa66   :  { %v2175_v37 = vrot.slane %v2095_v36, 6  ;;  %v2097_v17 = vpop.f32.mrb[27].mxu0  ;;  %v2168_v27 = vpop.f32.mrb[27].mxu1  ;;  %v2177_v63 = vrot.slane %v2166_v10, 6  ;;  %v2207_v10 = vrot.slane %v2028_v22, 6 }
 0xa67   :  { %v2176_v55 = vrot.slane %v2097_v17, 6  ;;  %v2178_v6 = vrot.slane %v2168_v27, 6 }
 0xa68   :  { %v2183_v62 = vadd.f32 %v2175_v37, %v5079_v9  ;;  %v2185_v46 = vadd.f32 %v2177_v63, %v5083_v21  ;;  %v2214_v63 = vrot.slane %v5407_v5, 4 }
 0xa69   :  { %v2184_v47 = vadd.f32 %v2176_v55, %v5081_v18  ;;  %v2186_v0 = vadd.f32 %v2178_v6, %v5085_v25 }
 0xa6a   :  { %v3400_v56 = vmul.f32 -1.442695, %v2183_v62 }
 0xa6b   :  { %v3401_v50 = vmul.f32 -1.442695, %v2184_v47  ;;  %v3402_v61 = vmul.f32 -1.442695, %v2186_v0 }
 0xa6c   :  { %4622 = vpow2.f32 %v3400_v56 }
 0xa6d   :  { %4624 = vpow2.f32 %v3401_v50 }
 0xa6e   :  { %4626 = vpow2.f32 %v3402_v61 }
 0xa6f   :  { %4628 = vtanh.f32 %v2185_v46 }
 0xa76   :  { %v4623_v45 = vpop.eup %4622 }
 0xa77   :  { %v4625_v8 = vpop.eup %4624  ;;  %v2190_v38 = vadd.f32 1.0, %v4623_v45 }
 0xa78   :  { %v2196_v49 = vadd.f32 1.0, %v4625_v8  ;;  %v4627_v36 = vpop.eup %4626 }
 0xa79   :  { %4630 = vrcp.f32 %v2190_v38  ;;  %v4629_v37 = vpop.eup %4628  ;;  %v2203_v62 = vadd.f32 1.0, %v4627_v36 }
 0xa7a   :  { %4632 = vrcp.f32 %v2196_v49 }
 0xa7b   :  { %4634 = vrcp.f32 %v2203_v62 }
 0xa83   :  { %v4631_v17 = vpop.eup %4630 }
 0xa84   :  { %v4633_v27 = vpop.eup %4632  ;;  %v2210_v55 = vmul.f32 %v4631_v17, %v4629_v37 }
 0xa85   :  { %v2209_v47 = vmul.f32 %v4633_v27, %v2207_v10  ;;  %v4635_v50 = vpop.eup %4634 }
 0xa87   :  { %v5509_v56 = vadd.f32 %v2210_v55, %v2209_v47 }
 0xa89   :  { %4636 = vtanh.f32 %v5509_v56 }
 0xa93   :  { %v4637_v6 = vpop.eup %4636 }
 0xa94   :  { %v2213_v0 = vmul.f32 %v4637_v6, %v4635_v50 }
 0xa96   :  { %v2216_v34 = vsel %vm5460_vm5, %v2213_v0, %v2214_v63 }
 0xa97   :  { %v2221_v61 = vrot.slane %v2216_v34, 2 }
 0xa99   :  { %2288 = vmatmul.mubr.f32.vlgmr.msra.gmra.mrb[28].mxu0 %v2221_v61  ;;  %2359 = vmatmul.mubr.f32.vlgmr.msra.gmra.mrb[28].mxu1 %v2221_v61 }
 0xa9a   :  { %4152 = vmatpush1.bf16.msra.mxu0 %v4920_v51  ;;  %4184 = vmatpush1.bf16.msra.mxu1 %v4923_v53 }
 0xa9b   :  { %4154 = vmatprep.subr.bf16.mxu0 %v4925_v54  ;;  %4186 = vmatprep.subr.bf16.mxu1 %v4928_v58 }
 0xa9c   :  { %2481 = vmatprep.mubr.f32.mxu0 %v5800_v32  ;;  %2552 = vmatprep.mubr.f32.mxu1 %v5800_v32 }
 0xa9e   :  { %4156 = vmatpush1.bf16.msra.mxu0 %v4933_v1  ;;  %4188 = vmatpush1.bf16.msra.mxu1 %v4937_v2 }
 0xa9f   :  { %4158 = vmatprep.subr.bf16.mxu0 %v4939_v3  ;;  %4190 = vmatprep.subr.bf16.mxu1 %v4942_v7 }
 0xaa2   :  { %4160 = vmatpush1.bf16.msra.mxu0 %v4947_v13  ;;  %4192 = vmatpush1.bf16.msra.mxu1 %v4951_v15 }
 0xaa3   :  { %4162 = vmatprep.subr.bf16.mxu0 %v4953_v16  ;;  %4194 = vmatprep.subr.bf16.mxu1 %v4956_v20 }
 0xaa6   :  { %4164 = vmatpush1.bf16.msra.mxu0 %v4962_v26  ;;  %4196 = vmatpush1.bf16.msra.mxu1 %v4967_v28 }
 0xaa7   :  { %4166 = vmatprep.subr.bf16.mxu0 %v4969_v29  ;;  %4198 = vmatprep.subr.bf16.mxu1 %v4972_v33 }
 0xaaa   :  { %4168 = vmatpush1.bf16.msra.mxu0 %v4978_v41  ;;  %4200 = vmatpush1.bf16.msra.mxu1 %v4983_v42 }
 0xaab   :  { %4170 = vmatprep.subr.bf16.mxu0 %v4985_v44  ;;  %4202 = vmatprep.subr.bf16.mxu1 %v4988_v48 }
 0xaae   :  { %4172 = vmatpush1.bf16.msra.mxu0 %v4994_v57  ;;  %4204 = vmatpush1.bf16.msra.mxu1 %v4999_v59 }
 0xaaf   :  { %4174 = vmatprep.subr.bf16.mxu0 %v5001_v60  ;;  %4206 = vmatprep.subr.bf16.mxu1 %v5004_v4 }
 0xab2   :  { %4176 = vmatpush1.bf16.msra.mxu0 %v5007_v11  ;;  %4208 = vmatpush1.bf16.msra.mxu1 %v5011_v12 }
 0xab3   :  { %4178 = vmatprep.subr.bf16.mxu0 %v5013_v14  ;;  %4210 = vmatprep.subr.bf16.mxu1 %v5016_v19 }
 0xab6   :  { %4180 = vmatpush1.bf16.msra.mxu0 %v5019_v23  ;;  %4212 = vmatpush1.bf16.msra.mxu1 %v5023_v24 }
 0xab7   :  { %4214 = vmatprep.subr.bf16.mxu0 %v4916_v39  ;;  %4246 = vmatprep.subr.bf16.mxu1 %v4918_v43 }
 0xb6c   :  { %v2289_v46 = vpop.f32.mrb[28].mxu0  ;;  %v2360_v45 = vpop.f32.mrb[28].mxu1 }
 0xb6d   :  { %v2369_v8 = vrot.slane %v2289_v46, 4  ;;  %v2291_v38 = vpop.f32.mrb[29].mxu0  ;;  %v2362_v49 = vpop.f32.mrb[29].mxu1  ;;  %v2371_v62 = vrot.slane %v2360_v45, 4  ;;  %v2217_v46 = vrot.slane %v5404_v40, 4 }
 0xb6e   :  { %v2370_v22 = vrot.slane %v2291_v38, 4  ;;  %v2372_v27 = vrot.slane %v2362_v49, 4 }
 0xb6f   :  { %v2377_v36 = vadd.f32 %v2369_v8, %v5079_v9  ;;  %v2379_v50 = vadd.f32 %v2371_v62, %v5083_v21  ;;  %v2219_v8 = vsel %vm5460_vm5, %v5509_v56, %v2217_v46 }
 0xb70   :  { %v2378_v37 = vadd.f32 %v2370_v22, %v5081_v18  ;;  %v2380_v55 = vadd.f32 %v2372_v27, %v5085_v25  ;;  %v2401_v22 = vrot.slane %v2219_v8, 6 }
 0xb71   :  { %v3403_v17 = vmul.f32 -1.442695, %v2377_v36 }
 0xb72   :  { %v3404_v10 = vmul.f32 -1.442695, %v2378_v37  ;;  %v3405_v47 = vmul.f32 -1.442695, %v2380_v55 }
 0xb73   :  { %4638 = vpow2.f32 %v3403_v17 }
 0xb74   :  { %4640 = vpow2.f32 %v3404_v10 }
 0xb75   :  { %4642 = vpow2.f32 %v3405_v47 }
 0xb76   :  { %4644 = vtanh.f32 %v2379_v50  ;;  %v2408_v50 = vrot.slane %v5407_v5, 2 }
 0xb7d   :  { %v4639_v6 = vpop.eup %4638 }
 0xb7e   :  { %v4641_v0 = vpop.eup %4640  ;;  %v2384_v34 = vadd.f32 1.0, %v4639_v6 }
 0xb7f   :  { %v2390_v61 = vadd.f32 1.0, %v4641_v0  ;;  %v4643_v45 = vpop.eup %4642 }
 0xb80   :  { %4646 = vrcp.f32 %v2384_v34  ;;  %v4645_v38 = vpop.eup %4644  ;;  %v2397_v17 = vadd.f32 1.0, %v4643_v45 }
 0xb81   :  { %4648 = vrcp.f32 %v2390_v61 }
 0xb82   :  { %4650 = vrcp.f32 %v2397_v17 }
 0xb8a   :  { %v4647_v49 = vpop.eup %4646 }
 0xb8b   :  { %v4649_v36 = vpop.eup %4648  ;;  %v2404_v37 = vmul.f32 %v4647_v49, %v4645_v38 }
 0xb8c   :  { %v2403_v10 = vmul.f32 %v4649_v36, %v2401_v22  ;;  %v4651_v55 = vpop.eup %4650 }
 0xb8e   :  { %v5561_v27 = vadd.f32 %v2404_v37, %v2403_v10 }
 0xb90   :  { %4652 = vtanh.f32 %v5561_v27 }
 0xb9a   :  { %v4653_v62 = vpop.eup %4652 }
 0xb9b   :  { %v2407_v47 = vmul.f32 %v4653_v62, %v4651_v55 }
 0xb9d   :  { %v2410_v56 = vsel %vm5460_vm5, %v2407_v47, %v2408_v50 }
 0xb9e   :  { %v2415_v6 = vrot.slane %v2410_v56, 4 }
 0xba0   :  { %2482 = vmatmul.mubr.f32.vlgmr.msra.gmra.mrb[30].mxu0 %v2415_v6  ;;  %2553 = vmatmul.mubr.f32.vlgmr.msra.gmra.mrb[30].mxu1 %v2415_v6 }
 0xba1   :  { %4216 = vmatpush1.bf16.msra.mxu0 %v4920_v51  ;;  %4248 = vmatpush1.bf16.msra.mxu1 %v4923_v53 }
 0xba2   :  { %4218 = vmatprep.subr.bf16.mxu0 %v4925_v54  ;;  %4250 = vmatprep.subr.bf16.mxu1 %v4928_v58 }
 0xba3   :  { %2671 = vmatprep.mubr.f32.mxu0 %v5800_v32  ;;  %2742 = vmatprep.mubr.f32.mxu1 %v5800_v32 }
 0xba5   :  { %4220 = vmatpush1.bf16.msra.mxu0 %v4933_v1  ;;  %4252 = vmatpush1.bf16.msra.mxu1 %v4937_v2 }
 0xba6   :  { %4222 = vmatprep.subr.bf16.mxu0 %v4939_v3  ;;  %4254 = vmatprep.subr.bf16.mxu1 %v4942_v7 }
 0xba9   :  { %4224 = vmatpush1.bf16.msra.mxu0 %v4947_v13  ;;  %4256 = vmatpush1.bf16.msra.mxu1 %v4951_v15 }
 0xbaa   :  { %4226 = vmatprep.subr.bf16.mxu0 %v4953_v16  ;;  %4258 = vmatprep.subr.bf16.mxu1 %v4956_v20 }
 0xbad   :  { %4228 = vmatpush1.bf16.msra.mxu0 %v4962_v26  ;;  %4260 = vmatpush1.bf16.msra.mxu1 %v4967_v28 }
 0xbae   :  { %4230 = vmatprep.subr.bf16.mxu0 %v4969_v29  ;;  %4262 = vmatprep.subr.bf16.mxu1 %v4972_v33 }
 0xbb1   :  { %4232 = vmatpush1.bf16.msra.mxu0 %v4978_v41  ;;  %4264 = vmatpush1.bf16.msra.mxu1 %v4983_v42 }
 0xbb2   :  { %4234 = vmatprep.subr.bf16.mxu0 %v4985_v44  ;;  %4266 = vmatprep.subr.bf16.mxu1 %v4988_v48 }
 0xbb5   :  { %4236 = vmatpush1.bf16.msra.mxu0 %v4994_v57  ;;  %4268 = vmatpush1.bf16.msra.mxu1 %v4999_v59 }
 0xbb6   :  { %4238 = vmatprep.subr.bf16.mxu0 %v5001_v60  ;;  %4270 = vmatprep.subr.bf16.mxu1 %v5004_v4 }
 0xbb9   :  { %4240 = vmatpush1.bf16.msra.mxu0 %v5007_v11  ;;  %4272 = vmatpush1.bf16.msra.mxu1 %v5011_v12 }
 0xbba   :  { %4242 = vmatprep.subr.bf16.mxu0 %v5013_v14  ;;  %4274 = vmatprep.subr.bf16.mxu1 %v5016_v19 }
 0xbbd   :  { %4244 = vmatpush1.bf16.msra.mxu0 %v5019_v23  ;;  %4276 = vmatpush1.bf16.msra.mxu1 %v5023_v24 }
 0xbbe   :  { %4278 = vmatprep.subr.bf16.mxu0 %v4916_v39  ;;  %4310 = vmatprep.subr.bf16.mxu1 %v4918_v43 }
 0xc73   :  { %v2483_v0 = vpop.f32.mrb[30].mxu0  ;;  %v2554_v34 = vpop.f32.mrb[30].mxu1 }
 0xc74   :  { %v2563_v61 = vrot.slane %v2483_v0, 2  ;;  %v2485_v8 = vpop.f32.mrb[31].mxu0  ;;  %v2556_v45 = vpop.f32.mrb[31].mxu1  ;;  %v2565_v55 = vrot.slane %v2554_v34, 2 }
 0xc75   :  { %v2564_v38 = vrot.slane %v2485_v8, 2  ;;  %v2566_v17 = vrot.slane %v2556_v45, 2 }
 0xc76   :  { %v2571_v49 = vadd.f32 %v2563_v61, %v5079_v9  ;;  %v2573_v47 = vadd.f32 %v2565_v55, %v5083_v21  ;;  %v2411_v9 = vrot.slane %v5404_v40, 2 }
 0xc77   :  { %v2572_v22 = vadd.f32 %v2564_v38, %v5081_v18  ;;  %v2574_v10 = vadd.f32 %v2566_v17, %v5085_v25 }
 0xc78   :  { %v3406_v36 = vmul.f32 -1.442695, %v2571_v49  ;;  %v2413_v18 = vsel %vm5460_vm5, %v5561_v27, %v2411_v9 }
 0xc79   :  { %v3407_v37 = vmul.f32 -1.442695, %v2572_v22  ;;  %v3408_v62 = vmul.f32 -1.442695, %v2574_v10  ;;  %v2595_v21 = vrot.slane %v2413_v18, 6 }
 0xc7a   :  { %4654 = vpow2.f32 %v3406_v36 }
 0xc7b   :  { %4656 = vpow2.f32 %v3407_v37 }
 0xc7c   :  { %4658 = vpow2.f32 %v3408_v62 }
 0xc7d   :  { %4660 = vtanh.f32 %v2573_v47 }
 0xc84   :  { %v4655_v56 = vpop.eup %4654 }
 0xc85   :  { %v4657_v6 = vpop.eup %4656  ;;  %v2578_v0 = vadd.f32 1.0, %v4655_v56 }
 0xc86   :  { %v2584_v8 = vadd.f32 1.0, %v4657_v6  ;;  %v4659_v25 = vpop.eup %4658 }
 0xc87   :  { %4662 = vrcp.f32 %v2578_v0  ;;  %v4661_v34 = vpop.eup %4660  ;;  %v2591_v49 = vadd.f32 1.0, %v4659_v25 }
 0xc88   :  { %4664 = vrcp.f32 %v2584_v8  ;;  %v5804_v8 = vld [vmem:[#allocation12_spill] sm:$0xff] }
 0xc89   :  { %4666 = vrcp.f32 %v2591_v49 }
 0xc91   :  { %v4663_v61 = vpop.eup %4662 }
 0xc92   :  { %v4665_v45 = vpop.eup %4664  ;;  %v2598_v38 = vmul.f32 %v4663_v61, %v4661_v34  ;;  %v5805_v61 = vld [vmem:[#allocation14_spill] sm:$0xff] }
 0xc93   :  { %v2597_v22 = vmul.f32 %v4665_v45, %v2595_v21  ;;  %v4667_v37 = vpop.eup %4666 }
 0xc95   :  { %v5613_v36 = vadd.f32 %v2598_v38, %v2597_v22  ;;  %v5806_v38 = vld [vmem:[#allocation13_spill] sm:$0xff] }
 0xc97   :  { %4668 = vtanh.f32 %v5613_v36 }
 0xca1   :  { %v4669_v17 = vpop.eup %4668 }
 0xca2   :  { %v2601_v10 = vmul.f32 %v4669_v17, %v4667_v37 }
 0xca4   :  { %v2602_v27 = vsel %vm5460_vm5, %v2601_v10, %v5407_v5 }
 0xca5   :  { %v2605_v55 = vrot.slane %v2602_v27, 6  ;;  %v2603_v27 = vsel %vm5460_vm5, %v5613_v36, %v5404_v40 }
 0xca7   :  { %2672 = vmatmul.mubr.f32.vlgmr.msra.gmra.mrb[32].mxu0 %v2605_v55  ;;  %2743 = vmatmul.mubr.f32.vlgmr.msra.gmra.mrb[32].mxu1 %v2605_v55 }
 0xca8   :  { %4280 = vmatpush1.bf16.msra.mxu0 %v4920_v51  ;;  %4312 = vmatpush1.bf16.msra.mxu1 %v4923_v53 }
 0xca9   :  { %4282 = vmatprep.subr.bf16.mxu0 %v4925_v54  ;;  %4314 = vmatprep.subr.bf16.mxu1 %v4928_v58 }
 0xcaa   :  { %2846 = vmatprep.mubr.f32.mxu0 %v5800_v32  ;;  %2917 = vmatprep.mubr.f32.mxu1 %v5800_v32 }
 0xcac   :  { %4284 = vmatpush1.bf16.msra.mxu0 %v4933_v1  ;;  %4316 = vmatpush1.bf16.msra.mxu1 %v4937_v2 }
 0xcad   :  { %4286 = vmatprep.subr.bf16.mxu0 %v4939_v3  ;;  %4318 = vmatprep.subr.bf16.mxu1 %v4942_v7 }
 0xcb0   :  { %4288 = vmatpush1.bf16.msra.mxu0 %v4947_v13  ;;  %4320 = vmatpush1.bf16.msra.mxu1 %v4951_v15 }
 0xcb1   :  { %4290 = vmatprep.subr.bf16.mxu0 %v4953_v16  ;;  %4322 = vmatprep.subr.bf16.mxu1 %v4956_v20 }
 0xcb4   :  { %4292 = vmatpush1.bf16.msra.mxu0 %v4962_v26  ;;  %4324 = vmatpush1.bf16.msra.mxu1 %v4967_v28 }
 0xcb5   :  { %4294 = vmatprep.subr.bf16.mxu0 %v4969_v29  ;;  %4326 = vmatprep.subr.bf16.mxu1 %v4972_v33 }
 0xcb8   :  { %4296 = vmatpush1.bf16.msra.mxu0 %v4978_v41  ;;  %4328 = vmatpush1.bf16.msra.mxu1 %v4983_v42 }
 0xcb9   :  { %4298 = vmatprep.subr.bf16.mxu0 %v4985_v44  ;;  %4330 = vmatprep.subr.bf16.mxu1 %v4988_v48 }
 0xcbc   :  { %4300 = vmatpush1.bf16.msra.mxu0 %v4994_v57  ;;  %4332 = vmatpush1.bf16.msra.mxu1 %v4999_v59 }
 0xcbd   :  { %4302 = vmatprep.subr.bf16.mxu0 %v5001_v60  ;;  %4334 = vmatprep.subr.bf16.mxu1 %v5004_v4 }
 0xcc0   :  { %4304 = vmatpush1.bf16.msra.mxu0 %v5007_v11  ;;  %4336 = vmatpush1.bf16.msra.mxu1 %v5011_v12 }
 0xcc1   :  { %4306 = vmatprep.subr.bf16.mxu0 %v5013_v14  ;;  %4338 = vmatprep.subr.bf16.mxu1 %v5016_v19 }
 0xcc4   :  { %4308 = vmatpush1.bf16.msra.mxu0 %v5019_v23  ;;  %4340 = vmatpush1.bf16.msra.mxu1 %v5023_v24 }
 0xcc5   :  { %4342 = vmatprep.subr.bf16.mxu0 %v4916_v39  ;;  %4374 = vmatprep.subr.bf16.mxu1 %v4918_v43 }
 0xd7a   :  { %v2673_v62 = vpop.f32.mrb[32].mxu0  ;;  %v2744_v47 = vpop.f32.mrb[32].mxu1 }
 0xd7b   :  { %v2749_v56 = vadd.f32 %v2673_v62, %v5087_v35  ;;  %v2675_v6 = vpop.f32.mrb[33].mxu0  ;;  %v2746_v0 = vpop.f32.mrb[33].mxu1  ;;  %v2751_v49 = vadd.f32 %v2744_v47, %v5806_v38 }
 0xd7c   :  { %v2750_v18 = vadd.f32 %v2675_v6, %v5804_v8  ;;  %v2752_v21 = vadd.f32 %v2746_v0, %v5805_v61  ;;  %v2773_v6 = vrot.slane %v2603_v27, 6 }
 0xd7d   :  { %v3409_v25 = vmul.f32 -1.442695, %v2749_v56 }
 0xd7e   :  { %v3410_v34 = vmul.f32 -1.442695, %v2750_v18  ;;  %v3411_v45 = vmul.f32 -1.442695, %v2752_v21 }
 0xd7f   :  { %4670 = vpow2.f32 %v3409_v25 }
 0xd80   :  { %4672 = vpow2.f32 %v3410_v34 }
 0xd81   :  { %4674 = vpow2.f32 %v3411_v45 }
 0xd82   :  { %4676 = vtanh.f32 %v2751_v49 }
 0xd89   :  { %v4671_v22 = vpop.eup %4670 }
 0xd8a   :  { %v4673_v37 = vpop.eup %4672  ;;  %v2756_v17 = vadd.f32 1.0, %v4671_v22 }
 0xd8b   :  { %v2762_v10 = vadd.f32 1.0, %v4673_v37  ;;  %v4675_v55 = vpop.eup %4674 }
 0xd8c   :  { %4678 = vrcp.f32 %v2756_v17  ;;  %v4677_v62 = vpop.eup %4676  ;;  %v2769_v47 = vadd.f32 1.0, %v4675_v55 }
 0xd8d   :  { %4680 = vrcp.f32 %v2762_v10 }
 0xd8e   :  { %4682 = vrcp.f32 %v2769_v47 }
 0xd96   :  { %v4679_v56 = vpop.eup %4678 }
 0xd97   :  { %v4681_v0 = vpop.eup %4680  ;;  %v2776_v18 = vmul.f32 %v4679_v56, %v4677_v62 }
 0xd98   :  { %v2775_v25 = vmul.f32 %v4681_v0, %v2773_v6  ;;  %v4683_v21 = vpop.eup %4682 }
 0xd9a   :  { %v5661_v34 = vadd.f32 %v2776_v18, %v2775_v25 }
 0xd9c   :  { %4684 = vtanh.f32 %v5661_v34 }
 0xda6   :  { %v4685_v45 = vpop.eup %4684 }
 0xda7   :  { %v2779_v49 = vmul.f32 %v4685_v45, %v4683_v21 }
 0xda9   :  { %v2780_v36 = vsel %vm5460_vm5, %v2779_v49, %v5410_v30 }
 0xdaa   :  { %2847 = vmatmul.mubr.f32.vlgmr.msra.gmra.mrb[34].mxu0 %v2780_v36  ;;  %2918 = vmatmul.mubr.f32.vlgmr.msra.gmra.mrb[34].mxu1 %v2780_v36  ;;  %v2781_v36 = vsel %vm5460_vm5, %v5661_v34, %v5453_v52 }
 0xdab   :  { %4344 = vmatpush1.bf16.msra.mxu0 %v4920_v51  ;;  %4376 = vmatpush1.bf16.msra.mxu1 %v4923_v53 }
 0xdac   :  { %4346 = vmatprep.subr.bf16.mxu0 %v4925_v54  ;;  %4378 = vmatprep.subr.bf16.mxu1 %v4928_v58 }
 0xdad   :  { %3036 = vmatprep.mubr.f32.mxu0 %v5800_v32  ;;  %3107 = vmatprep.mubr.f32.mxu1 %v5800_v32 }
 0xdaf   :  { %4348 = vmatpush1.bf16.msra.mxu0 %v4933_v1  ;;  %4380 = vmatpush1.bf16.msra.mxu1 %v4937_v2 }
 0xdb0   :  { %4350 = vmatprep.subr.bf16.mxu0 %v4939_v3  ;;  %4382 = vmatprep.subr.bf16.mxu1 %v4942_v7 }
 0xdb3   :  { %4352 = vmatpush1.bf16.msra.mxu0 %v4947_v13  ;;  %4384 = vmatpush1.bf16.msra.mxu1 %v4951_v15 }
 0xdb4   :  { %4354 = vmatprep.subr.bf16.mxu0 %v4953_v16  ;;  %4386 = vmatprep.subr.bf16.mxu1 %v4956_v20 }
 0xdb7   :  { %4356 = vmatpush1.bf16.msra.mxu0 %v4962_v26  ;;  %4388 = vmatpush1.bf16.msra.mxu1 %v4967_v28 }
 0xdb8   :  { %4358 = vmatprep.subr.bf16.mxu0 %v4969_v29  ;;  %4390 = vmatprep.subr.bf16.mxu1 %v4972_v33 }
 0xdbb   :  { %4360 = vmatpush1.bf16.msra.mxu0 %v4978_v41  ;;  %4392 = vmatpush1.bf16.msra.mxu1 %v4983_v42 }
 0xdbc   :  { %4362 = vmatprep.subr.bf16.mxu0 %v4985_v44  ;;  %4394 = vmatprep.subr.bf16.mxu1 %v4988_v48 }
 0xdbf   :  { %4364 = vmatpush1.bf16.msra.mxu0 %v4994_v57  ;;  %4396 = vmatpush1.bf16.msra.mxu1 %v4999_v59 }
 0xdc0   :  { %4366 = vmatprep.subr.bf16.mxu0 %v5001_v60  ;;  %4398 = vmatprep.subr.bf16.mxu1 %v5004_v4 }
 0xdc3   :  { %4368 = vmatpush1.bf16.msra.mxu0 %v5007_v11  ;;  %4400 = vmatpush1.bf16.msra.mxu1 %v5011_v12 }
 0xdc4   :  { %4370 = vmatprep.subr.bf16.mxu0 %v5013_v14  ;;  %4402 = vmatprep.subr.bf16.mxu1 %v5016_v19 }
 0xdc7   :  { %4372 = vmatpush1.bf16.msra.mxu0 %v5019_v23  ;;  %4404 = vmatpush1.bf16.msra.mxu1 %v5023_v24 }
 0xdc8   :  { %4406 = vmatprep.subr.bf16.mxu0 %v4916_v39  ;;  %4438 = vmatprep.subr.bf16.mxu1 %v4918_v43 }
 0xe7d   :  { %v2848_v30 = vpop.f32.mrb[34].mxu0  ;;  %v2919_v22 = vpop.f32.mrb[34].mxu1 }
 0xe7e   :  { %v2928_v37 = vrot.slane %v2848_v30, 6  ;;  %v2850_v17 = vpop.f32.mrb[35].mxu0  ;;  %v2921_v10 = vpop.f32.mrb[35].mxu1  ;;  %v2930_v39 = vrot.slane %v2919_v22, 6  ;;  %v2960_v22 = vrot.slane %v2781_v36, 6 }
 0xe7f   :  { %v2929_v27 = vrot.slane %v2850_v17, 6  ;;  %v2931_v0 = vrot.slane %v2921_v10, 6 }
 0xe80   :  { %v2936_v55 = vadd.f32 %v2928_v37, %v5087_v35  ;;  %v2938_v43 = vadd.f32 %v2930_v39, %v5806_v38 }
 0xe81   :  { %v2937_v62 = vadd.f32 %v2929_v27, %v5804_v8  ;;  %v2939_v18 = vadd.f32 %v2931_v0, %v5805_v61 }
 0xe82   :  { %v3412_v56 = vmul.f32 -1.442695, %v2936_v55 }
 0xe83   :  { %v3413_v6 = vmul.f32 -1.442695, %v2937_v62  ;;  %v3414_v47 = vmul.f32 -1.442695, %v2939_v18 }
 0xe84   :  { %4686 = vpow2.f32 %v3412_v56 }
 0xe85   :  { %4688 = vpow2.f32 %v3413_v6 }
 0xe86   :  { %4690 = vpow2.f32 %v3414_v47 }
 0xe87   :  { %4692 = vtanh.f32 %v2938_v43 }
 0xe8e   :  { %v4687_v25 = vpop.eup %4686 }
 0xe8f   :  { %v4689_v21 = vpop.eup %4688  ;;  %v2943_v45 = vadd.f32 1.0, %v4687_v25 }
 0xe90   :  { %v2949_v49 = vadd.f32 1.0, %v4689_v21  ;;  %v4691_v30 = vpop.eup %4690 }
 0xe91   :  { %4694 = vrcp.f32 %v2943_v45  ;;  %v4693_v37 = vpop.eup %4692  ;;  %v2956_v55 = vadd.f32 1.0, %v4691_v30 }
 0xe92   :  { %4696 = vrcp.f32 %v2949_v49 }
 0xe93   :  { %4698 = vrcp.f32 %v2956_v55 }
 0xe9b   :  { %v4695_v17 = vpop.eup %4694 }
 0xe9c   :  { %v4697_v10 = vpop.eup %4696  ;;  %v2963_v27 = vmul.f32 %v4695_v17, %v4693_v37 }
 0xe9d   :  { %v2962_v62 = vmul.f32 %v4697_v10, %v2960_v22  ;;  %v4699_v6 = vpop.eup %4698 }
 0xe9f   :  { %v5709_v56 = vadd.f32 %v2963_v27, %v2962_v62 }
 0xea1   :  { %4700 = vtanh.f32 %v5709_v56 }
 0xeab   :  { %v4701_v0 = vpop.eup %4700 }
 0xeac   :  { %v2966_v18 = vmul.f32 %v4701_v0, %v4699_v6 }
 0xeae   :  { %v2967_v52 = vsel %vm5460_vm5, %v2966_v18, %v2214_v63 }
 0xeaf   :  { %v2970_v34 = vrot.slane %v2967_v52, 2 }
 0xeb1   :  { %3037 = vmatmul.mubr.f32.vlgmr.msra.gmra.mrb[36].mxu0 %v2970_v34  ;;  %3108 = vmatmul.mubr.f32.vlgmr.msra.gmra.mrb[36].mxu1 %v2970_v34 }
 0xeb2   :  { %4408 = vmatpush1.bf16.msra.mxu0 %v4920_v51  ;;  %4440 = vmatpush1.bf16.msra.mxu1 %v4923_v53 }
 0xeb3   :  { %4410 = vmatprep.subr.bf16.mxu0 %v4925_v54  ;;  %4442 = vmatprep.subr.bf16.mxu1 %v4928_v58 }
 0xeb4   :  { %3226 = vmatprep.mubr.f32.mxu0 %v5800_v32  ;;  %3297 = vmatprep.mubr.f32.mxu1 %v5800_v32 }
 0xeb6   :  { %4412 = vmatpush1.bf16.msra.mxu0 %v4933_v1  ;;  %4444 = vmatpush1.bf16.msra.mxu1 %v4937_v2 }
 0xeb7   :  { %4414 = vmatprep.subr.bf16.mxu0 %v4939_v3  ;;  %4446 = vmatprep.subr.bf16.mxu1 %v4942_v7 }
 0xeba   :  { %4416 = vmatpush1.bf16.msra.mxu0 %v4947_v13  ;;  %4448 = vmatpush1.bf16.msra.mxu1 %v4951_v15 }
 0xebb   :  { %4418 = vmatprep.subr.bf16.mxu0 %v4953_v16  ;;  %4450 = vmatprep.subr.bf16.mxu1 %v4956_v20 }
 0xebe   :  { %4420 = vmatpush1.bf16.msra.mxu0 %v4962_v26  ;;  %4452 = vmatpush1.bf16.msra.mxu1 %v4967_v28 }
 0xebf   :  { %4422 = vmatprep.subr.bf16.mxu0 %v4969_v29  ;;  %4454 = vmatprep.subr.bf16.mxu1 %v4972_v33 }
 0xec2   :  { %4424 = vmatpush1.bf16.msra.mxu0 %v4978_v41  ;;  %4456 = vmatpush1.bf16.msra.mxu1 %v4983_v42 }
 0xec3   :  { %4426 = vmatprep.subr.bf16.mxu0 %v4985_v44  ;;  %4458 = vmatprep.subr.bf16.mxu1 %v4988_v48  ;;  %v2968_v48 = vsel %vm5460_vm5, %v5709_v56, %v2217_v46 }
 0xec6   :  { %4428 = vmatpush1.bf16.msra.mxu0 %v4994_v57  ;;  %4460 = vmatpush1.bf16.msra.mxu1 %v4999_v59 }
 0xec7   :  { %4430 = vmatprep.subr.bf16.mxu0 %v5001_v60  ;;  %4462 = vmatprep.subr.bf16.mxu1 %v5004_v4  ;;  %v3150_v4 = vrot.slane %v2968_v48, 6 }
 0xeca   :  { %4432 = vmatpush1.bf16.msra.mxu0 %v5007_v11  ;;  %4464 = vmatpush1.bf16.msra.mxu1 %v5011_v12 }
 0xecb   :  { %4434 = vmatprep.subr.bf16.mxu0 %v5013_v14  ;;  %4466 = vmatprep.subr.bf16.mxu1 %v5016_v19 }
 0xece   :  { %4436 = vmatpush1.bf16.msra.mxu0 %v5019_v23  ;;  %4468 = vmatpush1.bf16.msra.mxu1 %v5023_v24 }
 0xf84   :  { %v3038_v51 = vpop.f32.mrb[36].mxu0  ;;  %v3109_v53 = vpop.f32.mrb[36].mxu1 }
 0xf85   :  { %v3118_v54 = vrot.slane %v3038_v51, 4  ;;  %v3040_v58 = vpop.f32.mrb[37].mxu0  ;;  %v3111_v1 = vpop.f32.mrb[37].mxu1  ;;  %v3120_v26 = vrot.slane %v3109_v53, 4 }
 0xf86   :  { %v3119_v2 = vrot.slane %v3040_v58, 4  ;;  %v3121_v16 = vrot.slane %v3111_v1, 4 }
 0xf87   :  { %v3126_v3 = vadd.f32 %v3118_v54, %v5087_v35  ;;  %v3128_v29 = vadd.f32 %v3120_v26, %v5806_v38 }
 0xf88   :  { %v3127_v7 = vadd.f32 %v3119_v2, %v5804_v8  ;;  %v3129_v20 = vadd.f32 %v3121_v16, %v5805_v61 }
 0xf89   :  { %v3415_v13 = vmul.f32 -1.442695, %v3126_v3 }
 0xf8a   :  { %v3416_v15 = vmul.f32 -1.442695, %v3127_v7  ;;  %v3417_v28 = vmul.f32 -1.442695, %v3129_v20 }
 0xf8b   :  { %4702 = vpow2.f32 %v3415_v13 }
 0xf8c   :  { %4704 = vpow2.f32 %v3416_v15 }
 0xf8d   :  { %4706 = vpow2.f32 %v3417_v28 }
 0xf8e   :  { %4708 = vtanh.f32 %v3128_v29 }
 0xf95   :  { %v4703_v33 = vpop.eup %4702 }
 0xf96   :  { %v4705_v41 = vpop.eup %4704  ;;  %v3133_v42 = vadd.f32 1.0, %v4703_v33 }
 0xf97   :  { %v3139_v44 = vadd.f32 1.0, %v4705_v41  ;;  %v4707_v57 = vpop.eup %4706 }
 0xf98   :  { %4710 = vrcp.f32 %v3133_v42  ;;  %v4709_v59 = vpop.eup %4708  ;;  %v3146_v14 = vadd.f32 1.0, %v4707_v57 }
 0xf99   :  { %4712 = vrcp.f32 %v3139_v44 }
 0xf9a   :  { %4714 = vrcp.f32 %v3146_v14 }
 0xfa2   :  { %v4711_v60 = vpop.eup %4710 }
 0xfa3   :  { %v4713_v11 = vpop.eup %4712  ;;  %v3153_v12 = vmul.f32 %v4711_v60, %v4709_v59 }
 0xfa4   :  { %v3152_v19 = vmul.f32 %v4713_v11, %v3150_v4  ;;  %v4715_v24 = vpop.eup %4714 }
 0xfa6   :  { %v3154_v23 = vadd.f32 %v3153_v12, %v3152_v19 }
 0xfa8   :  { %4716 = vtanh.f32 %v3154_v23 }
 0xfb2   :  { %v4717_v32 = vpop.eup %4716 }
 0xfb3   :  { %v3156_v63 = vmul.f32 %v4717_v32, %v4715_v24 }
 0xfb5   :  { %v3157_v39 = vsel %vm5460_vm5, %v3156_v63, %v2408_v50 }
 0xfb6   :  { %v3160_v46 = vrot.slane %v3157_v39, 4 }
 0xfb8   :  { %3227 = vmatmul.mubr.f32.vlgmr.msra.gmra.mrb[38].mxu0 %v3160_v46  ;;  %3298 = vmatmul.mubr.f32.vlgmr.msra.gmra.mrb[38].mxu1 %v3160_v46 }
0x108b   :  { %v3228_v47 = vpop.f32.mrb[38].mxu0  ;;  %v3299_v43 = vpop.f32.mrb[38].mxu1 }
0x108c   :  { %v3308_v25 = vrot.slane %v3228_v47, 2  ;;  %v3230_v21 = vpop.f32.mrb[39].mxu0  ;;  %v3301_v45 = vpop.f32.mrb[39].mxu1  ;;  %v3310_v10 = vrot.slane %v3299_v43, 2 }
0x108d   :  { %v3309_v49 = vrot.slane %v3230_v21, 2  ;;  %v3311_v22 = vrot.slane %v3301_v45, 2 }
0x108e   :  { %v3316_v36 = vadd.f32 %v3308_v25, %v5087_v35  ;;  %v3318_v55 = vadd.f32 %v3310_v10, %v5806_v38  ;;  %v3158_v35 = vsel %vm5460_vm5, %v3154_v23, %v2411_v9 }
0x108f   :  { %v3317_v30 = vadd.f32 %v3309_v49, %v5804_v8  ;;  %v3319_v50 = vadd.f32 %v3311_v22, %v5805_v61  ;;  %v3340_v52 = vrot.slane %v3158_v35, 6 }
0x1090   :  { %v3418_v37 = vmul.f32 -1.442695, %v3316_v36 }
0x1091   :  { %v3419_v17 = vmul.f32 -1.442695, %v3317_v30  ;;  %v3420_v27 = vmul.f32 -1.442695, %v3319_v50 }
0x1092   :  { %4718 = vpow2.f32 %v3418_v37 }
0x1093   :  { %4720 = vpow2.f32 %v3419_v17 }
0x1094   :  { %4722 = vpow2.f32 %v3420_v27 }
0x1095   :  { %4724 = vtanh.f32 %v3318_v55 }
0x109c   :  { %v4719_v62 = vpop.eup %4718 }
0x109d   :  { %v4721_v56 = vpop.eup %4720  ;;  %v3323_v6 = vadd.f32 1.0, %v4719_v62 }
0x109e   :  { %v3329_v0 = vadd.f32 1.0, %v4721_v56  ;;  %v4723_v8 = vpop.eup %4722 }
0x109f   :  { %4726 = vrcp.f32 %v3323_v6  ;;  %v4725_v18 = vpop.eup %4724  ;;  %v3336_v38 = vadd.f32 1.0, %v4723_v8 }
0x10a0   :  { %4728 = vrcp.f32 %v3329_v0 }
0x10a1   :  { %4730 = vrcp.f32 %v3336_v38 }
0x10a9   :  { %v4727_v61 = vpop.eup %4726 }
0x10aa   :  { %v4729_v34 = vpop.eup %4728  ;;  %v3343_v51 = vmul.f32 %v4727_v61, %v4725_v18 }
0x10ab   :  { %v3342_v53 = vmul.f32 %v4729_v34, %v3340_v52  ;;  %v4731_v58 = vpop.eup %4730 }
0x10ad   :  { %v3344_v54 = vadd.f32 %v3343_v51, %v3342_v53 }
0x10af   :  { %4732 = vtanh.f32 %v3344_v54 }
0x10b9   :  { %v4733_v1 = vpop.eup %4732 }
0x10ba   :  { %v3346_v2 = vmul.f32 %v4733_v1, %v4731_v58 }
0x10bc   :  { %v3347_v40 = vsel %vm5460_vm5, %v3346_v2, %v5407_v5 }
0x10bd   :  { %3348 = vst [vmem:[#allocation8 - $0x6] sm:$0xc0] %v3347_v40 }
0x10be   :  { %4811 = shalt.err (!%p4808_p0)
}
0x10bf   :  { %s4812_s18 = scalar_lea.hbm %s5790_s6, 32 }
0x10c0   :  { %p4813_p1 = scmp.ne.s32.totalorder %s5790_s6, %s4812_s18  ;;  %p4816_p2 = scmp.lt.u32.totalorder %s4812_s18, %s5790_s6 }
0x10c2   :  { %p4818_p3 = pnand %p4816_p2, %p4813_p1 }
0x10c4   :  { %4821 = shalt.err (!%p4818_p3)
}
0x10c5   :  { %3358 = dma.vmem_to_hbm [thread:$0]  %s3356_s14, 32, %s5790_s6, [#allocation4]  }
0x10c6   :  { %4826 = dma.done.wait [#allocation4], 32  }
0x10c7   :  { %4827 = vsyncadd [#allocation4], 4294967264 }
0x10c8   :  { %3362 = vsyncpa [#allocation3], 1 }
0x10c9   :  { %3363 = vsyncpa [#allocation6], 1 }
0x10ca   :  { %3364 = vsyncpa [#allocation4], 1 }

</bundles_post_ra>
